<compile_context>
chip_gen: v5e
topology: v5e:2x2
jax: 0.10.0
libtpu: 0.0.40
codegen_flags: <defaults>
</compile_context>

<pallas_src>
import math

import jax
import jax.numpy as jnp
from jax.experimental import pallas as pl
from jax.experimental.pallas import tpu as pltpu


def _round_up(v, m):
    return ((v + m - 1) // m) * m


def _bclassifier_kernel(
    x_ref, xd_ref, rna_ref,
    w_rna_ref, b_rna_ref, w_rproj_ref, b_rproj_ref,
    w_q_ref, b_q_ref, w_a_ref, w_dproj_ref, b_dproj_ref,
    vec_out_ref, af_out_ref, ap_out_ref,
):
    f32 = jnp.float32
    bf16 = jnp.bfloat16

    x = x_ref[...]                         # (Bt, N, Df)  bf16 patch features
    xd = xd_ref[...]                       # (Bt, N, Dd)  bf16 deep patch features
    rna = rna_ref[...].astype(bf16)        # (Bt, G)      gene expression vectors

    bt, n, df = x.shape
    dd = xd.shape[-1]
    h_dim = w_rna_ref.shape[-1]

    # ---- gene embedding branch (Bt-row matmuls, bf16 in / f32 accumulate) ----
    rna_emb = jnp.tanh(
        jnp.dot(rna, w_rna_ref[...], preferred_element_type=f32) + b_rna_ref[...])    # (Bt, H)
    rna_proj = (jnp.dot(rna_emb.astype(bf16), w_rproj_ref[...],
                        preferred_element_type=f32) + b_rproj_ref[...])               # (Bt, Df)

    # ---- gene <-> patch similarity attention; softmax over N (lane axis) -----
    # Inherently M=1 per bag, so VPU multiply + lane reduce (MXU stays free).
    # The 1/sqrt(Df) scale is folded into the (Bt, Df) query, not the N-wide
    # score tile.
    q = rna_proj * (1.0 / math.sqrt(df))                                              # (Bt, Df)
    scores = jnp.sum(q[:, None, :] * x.astype(f32), axis=-1)                          # (Bt, N)
    m1 = jnp.max(scores, axis=-1, keepdims=True)
    e1 = jnp.exp(scores - m1)
    a_feat = e1 * pl.reciprocal(jnp.sum(e1, axis=-1, keepdims=True), approx=True)     # (Bt, N)
    b_feat = jnp.einsum('bkn,bnd->bkd', a_feat[:, None, :].astype(bf16), x,
                        preferred_element_type=f32)[:, 0, :]                          # (Bt, Df)

    # ---- deep-feature gated attention (one flat M = Bt*N MXU matmul) ----------
    xd_flat = xd.reshape(bt * n, dd)
    hfeat = jnp.tanh(
        jnp.dot(xd_flat, w_q_ref[...], preferred_element_type=f32) + b_q_ref[...])    # (Bt*N, H)
    h3 = hfeat.reshape(bt, n, h_dim)                                                  # (Bt, N, H)
    # Attention logit per patch: VPU multiply + lane reduce against the single
    # w_a row (avoids Bt separate 1-row MXU matmuls / broadcast_in_dim per bag).
    s = jnp.sum(h3 * w_a_ref[...].astype(f32)[:, None, :], axis=-1)                   # (Bt, N)
    m2 = jnp.max(s, axis=-1, keepdims=True)
    e2 = jnp.exp(s - m2)
    a_patch = e2 * pl.reciprocal(jnp.sum(e2, axis=-1, keepdims=True), approx=True)    # (Bt, N)
    b_deep = jnp.einsum('bkn,bnd->bkd', a_patch[:, None, :].astype(bf16), xd,
                        preferred_element_type=f32)[:, 0, :]                          # (Bt, Dd)
    b_deep_proj = jnp.maximum(
        jnp.dot(b_deep.astype(bf16), w_dproj_ref[...],
                preferred_element_type=f32) + b_dproj_ref[...],
        0.0)                                                                          # (Bt, Df)

    # ---- lane/sublane-dense outputs --------------------------------------------
    # Every slab piece gets its own 128-lane-aligned slot so the concatenation
    # never shifts data across 128-lane boundaries and the store is unmasked.
    def pad128(v):
        w = _round_up(v.shape[-1], 128)
        if w > v.shape[-1]:
            v = jnp.concatenate(
                [v, jnp.zeros((v.shape[0], w - v.shape[-1]), v.dtype)], axis=-1)
        return v

    vec_out_ref[...] = jnp.concatenate(
        [pad128(b_feat), pad128(b_deep_proj), pad128(b_deep),
         pad128(rna_proj), pad128(rna_emb)], axis=-1)                                 # (Bt, W_pad)
    af_out_ref[...] = a_feat                                                          # (Bt, N)
    ap_out_ref[...] = a_patch                                                         # (Bt, N)


def init_params(key, G, H, Df, Dd):
    ks = jax.random.split(key, 5)
    s = 0.05
    return dict(
        w_rna=jax.random.normal(ks[0], (G, H), jnp.float32) * s,
        b_rna=jnp.zeros((1, H), jnp.float32),
        w_rproj=jax.random.normal(ks[1], (H, Df), jnp.float32) * s,
        b_rproj=jnp.zeros((1, Df), jnp.float32),
        w_q=jax.random.normal(ks[2], (Dd, H), jnp.float32) * s,
        b_q=jnp.zeros((1, H), jnp.float32),
        w_a=jax.random.normal(ks[3], (1, H), jnp.float32) * s,   # stored as a row vector
        w_dproj=jax.random.normal(ks[4], (Dd, Df), jnp.float32) * s,
        b_dproj=jnp.zeros((1, Df), jnp.float32),
    )


def _select_bt(B, N, Df, Dd, G, *, m_target=256, stream_budget_bytes=8 * 1024 * 1024):
    """Bags per block: make the flattened matmul M = Bt*N fill the MXU height
    (>=128 on v5e, >=256 on v6e/v7x) while keeping the double-buffered bf16
    patch streams within a per-step VMEM budget (v7x has only 64 MiB total)."""
    bt = max(8, _round_up(-(-m_target // max(N, 1)), 8))
    bt = min(bt, _round_up(B, 8))

    def stream_bytes(b):
        return 2 * (b * N * (Df + Dd) * 2) + 2 * (b * G * 4)   # double-buffered

    while bt > 8 and stream_bytes(bt) > stream_budget_bytes:
        bt -= 8
    return bt


def mil_net_forward(x, x_deep, rna_seq, params, *, topk=4, training="no", b_tile=None):
    B, N, Df = x.shape
    Dd = x_deep.shape[-1]
    G = rna_seq.shape[-1]
    H = params["w_rna"].shape[-1]

    # ---- batch tiling: many bags per grid step --------------------------------
    auto = b_tile is None
    Bt = _select_bt(B, N, Df, Dd, G) if auto else max(8, _round_up(b_tile, 8))
    Bt = min(Bt, _round_up(B, 8))
    # v7x megacore: prefer >=2 grid points so "parallel" can shard across both
    # TensorCores (no effect on v5e/v6e, which have a single TC).
    if auto and _round_up(B, Bt) // Bt < 2 and Bt >= 16 and (Bt // 2) % 8 == 0:
        Bt //= 2
    B_pad = _round_up(B, Bt)
    num_blocks = B_pad // Bt

    def pad_b(a):
        if B_pad == B:
            return a
        return jnp.pad(a, [(0, B_pad - B)] + [(0, 0)] * (a.ndim - 1))

    bf16 = jnp.bfloat16
    xp = pad_b(x).astype(bf16)          # patch streams dominate HBM traffic -> bf16
    xdp = pad_b(x_deep).astype(bf16)
    rnap = pad_b(rna_seq)               # small; stays f32, cast in-kernel
    wb = {k: (v.astype(bf16) if k.startswith("w_") else v) for k, v in params.items()}

    # coalesced output slab: one 128-lane-aligned slot per piece
    Df_pad = _round_up(Df, 128)
    Dd_pad = _round_up(Dd, 128)
    H_pad = _round_up(H, 128)
    W_pad = 3 * Df_pad + Dd_pad + H_pad

    weights = (wb["w_rna"], wb["b_rna"], wb["w_rproj"], wb["b_rproj"],
               wb["w_q"], wb["b_q"], wb["w_a"], wb["w_dproj"], wb["b_dproj"])

    weight_bytes = sum(int(v.size) * v.dtype.itemsize for v in weights)
    block_bytes = (2 * (Bt * N * (Df + Dd) * 2)              # x / x_deep blocks (bf16, 2x buffered)
                   + 2 * (Bt * G * 4)                        # rna block
                   + 2 * (Bt * W_pad * 4 + 2 * Bt * N * 4)   # output blocks
                   + 2 * weight_bytes)                       # weights (worst case 2x buffered)
    vmem_limit = int(min(max(4 * block_bytes, 4 * 1024 * 1024), 64 * 1024 * 1024))

    flops = (2 * B_pad * (G * H + H * Df + Dd * Df)
             + 2 * B_pad * N * (Dd * H + H + 2 * Df + Dd))
    transc = B_pad * (H + N * H + 2 * N + 2)
    bytes_accessed = (int(xp.size) * 2 + int(xdp.size) * 2 + int(rnap.size) * 4
                      + weight_bytes + B_pad * W_pad * 4 + 2 * B_pad * N * 4)

    def weight_spec(arr, single_buffer):
        nd = arr.ndim
        idx = lambda i, _nd=nd: (0,) * _nd
        if single_buffer:
            # grid-invariant block: single-buffer it (never re-DMA'd anyway)
            return pl.BlockSpec(arr.shape, idx, pipeline_mode=pl.Buffered(1))
        return pl.BlockSpec(arr.shape, idx)

    def build(single_buffer_weights):
        in_specs = [
            pl.BlockSpec((Bt, N, Df), lambda i: (i, 0, 0)),
            pl.BlockSpec((Bt, N, Dd), lambda i: (i, 0, 0)),
            pl.BlockSpec((Bt, G), lambda i: (i, 0)),
        ] + [weight_spec(w, single_buffer_weights) for w in weights]
        out_specs = (
            pl.BlockSpec((Bt, W_pad), lambda i: (i, 0)),
            pl.BlockSpec((Bt, N), lambda i: (i, 0)),
            pl.BlockSpec((Bt, N), lambda i: (i, 0)),
        )
        out_shape = (
            jax.ShapeDtypeStruct((B_pad, W_pad), jnp.float32),   # coalesced vector slab
            jax.ShapeDtypeStruct((B_pad, N), jnp.float32),       # A_feat (dense 2-D)
            jax.ShapeDtypeStruct((B_pad, N), jnp.float32),       # A_patch (dense 2-D)
        )
        return pl.pallas_call(
            _bclassifier_kernel,
            out_shape=out_shape,
            grid_spec=pltpu.PrefetchScalarGridSpec(
                num_scalar_prefetch=0,
                grid=(num_blocks,),
                in_specs=in_specs,
                out_specs=out_specs,
            ),
            compiler_params=pltpu.CompilerParams(
                dimension_semantics=("parallel",),
                vmem_limit_bytes=vmem_limit,
            ),
            cost_estimate=pl.CostEstimate(flops=int(flops), transcendentals=int(transc),
                                          bytes_accessed=int(bytes_accessed)),
        )

    args = (xp, xdp, rnap) + weights
    try:
        outs = build(single_buffer_weights=hasattr(pl, "Buffered"))(*args)
    except Exception:
        # pipeline_mode=pl.Buffered(1) not supported on this Pallas build:
        # fall back to default double-buffered weight blocks.
        outs = build(single_buffer_weights=False)(*args)

    vec, a_feat_full, a_patch_full = outs
    vec = vec[:B]
    a_feat = a_feat_full[:B]      # (B, N)
    a_patch = a_patch_full[:B]    # (B, N)

    b_feat = vec[:, 0:Df]
    b_deep_proj = vec[:, Df_pad:Df_pad + Df]
    b_deep = vec[:, 2 * Df_pad:2 * Df_pad + Dd]
    rna_proj = vec[:, 2 * Df_pad + Dd_pad:2 * Df_pad + Dd_pad + Df]
    rna_emb = vec[:, 3 * Df_pad + Dd_pad:3 * Df_pad + Dd_pad + H]

    # hard top-k patch selection by gene-similarity attention (glue, not hot path)
    # TODO(synk): the perturbed (noise-injected, differentiable) top-k used when
    #             training != 'no' is not implemented; only hard top-k is provided.
    k = min(topk, N)
    _, idx = jax.lax.top_k(a_feat, k)
    perturbed_topk_feats = jnp.take_along_axis(x, idx[:, :, None], axis=1)  # (B, K, Df)

    return (b_feat, perturbed_topk_feats, b_deep_proj, b_deep,
            rna_proj, rna_emb, a_feat, a_patch)


if __name__ == "__main__":
    key = jax.random.PRNGKey(0)
    B, N, Df, Dd, G, H, K = 2, 16, 32, 16, 64, 32, 4
    k1, k2, k3, kp, k4, k5, k6 = jax.random.split(key, 7)
    x = jax.random.normal(k1, (B, N, Df), jnp.float32)
    x_deep = jax.random.normal(k2, (B, N, Dd), jnp.float32)
    rna_seq = jax.random.normal(k3, (B, G), jnp.float32)
    params = init_params(kp, G, H, Df, Dd)

    outs = mil_net_forward(x, x_deep, rna_seq, params, topk=K, training="no")
    jax.block_until_ready(outs)

    # also exercise the multi-block grid path (B > Bt, batch padding, >=2 grid points)
    B2 = 20
    x2 = jax.random.normal(k4, (B2, N, Df), jnp.float32)
    xd2 = jax.random.normal(k5, (B2, N, Dd), jnp.float32)
    rna2 = jax.random.normal(k6, (B2, G), jnp.float32)
    outs2 = mil_net_forward(x2, xd2, rna2, params, topk=K)
    jax.block_until_ready(outs2)

    print("KERNEL_OK")
</pallas_src>

<mosaic_0001>
module attributes {stable_mosaic.version = 11 : i64} {
  func.func @_bclassifier_kernel(%arg0: i32, %arg1: memref<8x16x32xbf16, #tpu.memory_space<vmem>>, %arg2: memref<8x16x16xbf16, #tpu.memory_space<vmem>>, %arg3: memref<8x64xf32, #tpu.memory_space<vmem>>, %arg4: memref<64x32xbf16, #tpu.memory_space<vmem>>, %arg5: memref<1x32xf32, #tpu.memory_space<vmem>>, %arg6: memref<32x32xbf16, #tpu.memory_space<vmem>>, %arg7: memref<1x32xf32, #tpu.memory_space<vmem>>, %arg8: memref<16x32xbf16, #tpu.memory_space<vmem>>, %arg9: memref<1x32xf32, #tpu.memory_space<vmem>>, %arg10: memref<1x32xbf16, #tpu.memory_space<vmem>>, %arg11: memref<16x32xbf16, #tpu.memory_space<vmem>>, %arg12: memref<1x32xf32, #tpu.memory_space<vmem>>, %arg13: memref<8x640xf32, #tpu.memory_space<vmem>>, %arg14: memref<8x16xf32, #tpu.memory_space<vmem>>, %arg15: memref<8x16xf32, #tpu.memory_space<vmem>>) attributes {dimension_semantics = [#tpu.dimension_semantics<parallel>], iteration_bounds = array<i64: 1>, scalar_prefetch = 0 : i64, scratch_operands = 0 : i64, tpu.core_type = #tpu.core_type<tc>, window_params = [{transform_indices = @transform_0, window_bounds = array<i64: 8, 16, 32>}, {transform_indices = @transform_1, window_bounds = array<i64: 8, 16, 16>}, {transform_indices = @transform_2, window_bounds = array<i64: 8, 64>}, {pipeline_mode = #tpu.pipeline_mode<synchronous>, transform_indices = @transform_3, window_bounds = array<i64: 64, 32>}, {pipeline_mode = #tpu.pipeline_mode<synchronous>, transform_indices = @transform_4, window_bounds = array<i64: 1, 32>}, {pipeline_mode = #tpu.pipeline_mode<synchronous>, transform_indices = @transform_5, window_bounds = array<i64: 32, 32>}, {pipeline_mode = #tpu.pipeline_mode<synchronous>, transform_indices = @transform_6, window_bounds = array<i64: 1, 32>}, {pipeline_mode = #tpu.pipeline_mode<synchronous>, transform_indices = @transform_7, window_bounds = array<i64: 16, 32>}, {pipeline_mode = #tpu.pipeline_mode<synchronous>, transform_indices = @transform_8, window_bounds = array<i64: 1, 32>}, {pipeline_mode = #tpu.pipeline_mode<synchronous>, transform_indices = @transform_9, window_bounds = array<i64: 1, 32>}, {pipeline_mode = #tpu.pipeline_mode<synchronous>, transform_indices = @transform_10, window_bounds = array<i64: 16, 32>}, {pipeline_mode = #tpu.pipeline_mode<synchronous>, transform_indices = @transform_11, window_bounds = array<i64: 1, 32>}, {transform_indices = @transform_12, window_bounds = array<i64: 8, 640>}, {transform_indices = @transform_13, window_bounds = array<i64: 8, 16>}, {transform_indices = @transform_14, window_bounds = array<i64: 8, 16>}]} {
    %c0 = arith.constant 0 : index
    %c0_0 = arith.constant 0 : index
    %c0_1 = arith.constant 0 : index
    %0 = vector.load %arg1[%c0, %c0_0, %c0_1] : memref<8x16x32xbf16, #tpu.memory_space<vmem>>, vector<8x16x32xbf16>
    %c0_2 = arith.constant 0 : index
    %c0_3 = arith.constant 0 : index
    %c0_4 = arith.constant 0 : index
    %1 = vector.load %arg2[%c0_2, %c0_3, %c0_4] : memref<8x16x16xbf16, #tpu.memory_space<vmem>>, vector<8x16x16xbf16>
    %c0_5 = arith.constant 0 : index
    %c0_6 = arith.constant 0 : index
    %2 = vector.load %arg3[%c0_5, %c0_6] : memref<8x64xf32, #tpu.memory_space<vmem>>, vector<8x64xf32>
    %3 = arith.truncf %2 : vector<8x64xf32> to vector<8x64xbf16>
    %c0_7 = arith.constant 0 : index
    %c0_8 = arith.constant 0 : index
    %4 = vector.load %arg4[%c0_7, %c0_8] : memref<64x32xbf16, #tpu.memory_space<vmem>>, vector<64x32xbf16>
    %cst = arith.constant dense<0.000000e+00> : vector<8x32xf32>
    %5 = tpu.matmul %3, %4, %cst {dimension_numbers = #tpu.dot_dimension_numbers<[1], [0], [0], [1], [0, 0, 1, 1], [], []>} : vector<8x64xbf16>, vector<64x32xbf16>, vector<8x32xf32> -> vector<8x32xf32>
    %c0_9 = arith.constant 0 : index
    %c0_10 = arith.constant 0 : index
    %6 = vector.load %arg5[%c0_9, %c0_10] : memref<1x32xf32, #tpu.memory_space<vmem>>, vector<1x32xf32>
    %7 = vector.broadcast %6 : vector<1x32xf32> to vector<8x32xf32>
    %8 = arith.addf %5, %7 : vector<8x32xf32>
    %9 = math.tanh %8 : vector<8x32xf32>
    %10 = arith.truncf %9 : vector<8x32xf32> to vector<8x32xbf16>
    %c0_11 = arith.constant 0 : index
    %c0_12 = arith.constant 0 : index
    %11 = vector.load %arg6[%c0_11, %c0_12] : memref<32x32xbf16, #tpu.memory_space<vmem>>, vector<32x32xbf16>
    %cst_13 = arith.constant dense<0.000000e+00> : vector<8x32xf32>
    %12 = tpu.matmul %10, %11, %cst_13 {dimension_numbers = #tpu.dot_dimension_numbers<[1], [0], [0], [1], [0, 0, 1, 1], [], []>} : vector<8x32xbf16>, vector<32x32xbf16>, vector<8x32xf32> -> vector<8x32xf32>
    %c0_14 = arith.constant 0 : index
    %c0_15 = arith.constant 0 : index
    %13 = vector.load %arg7[%c0_14, %c0_15] : memref<1x32xf32, #tpu.memory_space<vmem>>, vector<1x32xf32>
    %14 = vector.broadcast %13 : vector<1x32xf32> to vector<8x32xf32>
    %15 = arith.addf %12, %14 : vector<8x32xf32>
    %cst_16 = arith.constant 0.176776692 : f32
    %16 = vector.broadcast %cst_16 : f32 to vector<8x32xf32>
    %17 = arith.mulf %15, %16 : vector<8x32xf32>
    %18 = vector.shape_cast %17 : vector<8x32xf32> to vector<8x1x32xf32>
    %19 = arith.extf %0 : vector<8x16x32xbf16> to vector<8x16x32xf32>
    %20 = vector.broadcast %18 : vector<8x1x32xf32> to vector<8x16x32xf32>
    %21 = arith.mulf %20, %19 : vector<8x16x32xf32>
    %cst_17 = arith.constant dense<0.000000e+00> : vector<8x16xf32>
    %22 = vector.multi_reduction <add>, %21, %cst_17 [2] : vector<8x16x32xf32> to vector<8x16xf32>
    %cst_18 = arith.constant dense<0xFF800000> : vector<8xf32>
    %23 = vector.multi_reduction <maximumf>, %22, %cst_18 [1] : vector<8x16xf32> to vector<8xf32>
    %24 = vector.shape_cast %23 : vector<8xf32> to vector<8x1xf32>
    %25 = vector.broadcast %24 : vector<8x1xf32> to vector<8x16xf32>
    %26 = arith.subf %22, %25 : vector<8x16xf32>
    %27 = math.exp %26 : vector<8x16xf32>
    %cst_19 = arith.constant dense<0.000000e+00> : vector<8xf32>
    %28 = vector.multi_reduction <add>, %27, %cst_19 [1] : vector<8x16xf32> to vector<8xf32>
    %29 = vector.shape_cast %28 : vector<8xf32> to vector<8x1xf32>
    %30 = tpu.reciprocal %29 {approx = true} : vector<8x1xf32> -> vector<8x1xf32>
    %31 = vector.broadcast %30 : vector<8x1xf32> to vector<8x16xf32>
    %32 = arith.mulf %27, %31 : vector<8x16xf32>
    %33 = vector.shape_cast %32 : vector<8x16xf32> to vector<8x1x16xf32>
    %34 = arith.truncf %33 : vector<8x1x16xf32> to vector<8x1x16xbf16>
    "tpu.trace_start"() <{level = 10 : i32, message = "bkn,bnd->bkd"}> : () -> ()
    %cst_20 = arith.constant dense<0.000000e+00> : vector<8x1x32xf32>
    %35 = tpu.matmul %34, %0, %cst_20 {dimension_numbers = #tpu.dot_dimension_numbers<[2], [1], [1], [2], [0, 0, 0, 1, 1, 2], [0], [0]>} : vector<8x1x16xbf16>, vector<8x16x32xbf16>, vector<8x1x32xf32> -> vector<8x1x32xf32>
    "tpu.trace_stop"() : () -> ()
    %36 = vector.shape_cast %35 : vector<8x1x32xf32> to vector<8x32xf32>
    %37 = vector.shape_cast %1 : vector<8x16x16xbf16> to vector<128x16xbf16>
    %c0_21 = arith.constant 0 : index
    %c0_22 = arith.constant 0 : index
    %38 = vector.load %arg8[%c0_21, %c0_22] : memref<16x32xbf16, #tpu.memory_space<vmem>>, vector<16x32xbf16>
    %cst_23 = arith.constant dense<0.000000e+00> : vector<128x32xf32>
    %39 = tpu.matmul %37, %38, %cst_23 {dimension_numbers = #tpu.dot_dimension_numbers<[1], [0], [0], [1], [0, 0, 1, 1], [], []>} : vector<128x16xbf16>, vector<16x32xbf16>, vector<128x32xf32> -> vector<128x32xf32>
    %c0_24 = arith.constant 0 : index
    %c0_25 = arith.constant 0 : index
    %40 = vector.load %arg9[%c0_24, %c0_25] : memref<1x32xf32, #tpu.memory_space<vmem>>, vector<1x32xf32>
    %41 = vector.broadcast %40 : vector<1x32xf32> to vector<128x32xf32>
    %42 = arith.addf %39, %41 : vector<128x32xf32>
    %43 = math.tanh %42 : vector<128x32xf32>
    %44 = vector.shape_cast %43 : vector<128x32xf32> to vector<8x16x32xf32>
    %c0_26 = arith.constant 0 : index
    %c0_27 = arith.constant 0 : index
    %45 = vector.load %arg10[%c0_26, %c0_27] : memref<1x32xbf16, #tpu.memory_space<vmem>>, vector<1x32xbf16>
    %46 = arith.extf %45 : vector<1x32xbf16> to vector<1x32xf32>
    %47 = vector.shape_cast %46 : vector<1x32xf32> to vector<1x1x32xf32>
    %48 = vector.broadcast %47 : vector<1x1x32xf32> to vector<8x16x32xf32>
    %49 = arith.mulf %44, %48 : vector<8x16x32xf32>
    %cst_28 = arith.constant dense<0.000000e+00> : vector<8x16xf32>
    %50 = vector.multi_reduction <add>, %49, %cst_28 [2] : vector<8x16x32xf32> to vector<8x16xf32>
    %cst_29 = arith.constant dense<0xFF800000> : vector<8xf32>
    %51 = vector.multi_reduction <maximumf>, %50, %cst_29 [1] : vector<8x16xf32> to vector<8xf32>
    %52 = vector.shape_cast %51 : vector<8xf32> to vector<8x1xf32>
    %53 = vector.broadcast %52 : vector<8x1xf32> to vector<8x16xf32>
    %54 = arith.subf %50, %53 : vector<8x16xf32>
    %55 = math.exp %54 : vector<8x16xf32>
    %cst_30 = arith.constant dense<0.000000e+00> : vector<8xf32>
    %56 = vector.multi_reduction <add>, %55, %cst_30 [1] : vector<8x16xf32> to vector<8xf32>
    %57 = vector.shape_cast %56 : vector<8xf32> to vector<8x1xf32>
    %58 = tpu.reciprocal %57 {approx = true} : vector<8x1xf32> -> vector<8x1xf32>
    %59 = vector.broadcast %58 : vector<8x1xf32> to vector<8x16xf32>
    %60 = arith.mulf %55, %59 : vector<8x16xf32>
    %61 = vector.shape_cast %60 : vector<8x16xf32> to vector<8x1x16xf32>
    %62 = arith.truncf %61 : vector<8x1x16xf32> to vector<8x1x16xbf16>
    "tpu.trace_start"() <{level = 10 : i32, message = "bkn,bnd->bkd"}> : () -> ()
    %cst_31 = arith.constant dense<0.000000e+00> : vector<8x1x16xf32>
    %63 = tpu.matmul %62, %1, %cst_31 {dimension_numbers = #tpu.dot_dimension_numbers<[2], [1], [1], [2], [0, 0, 0, 1, 1, 2], [0], [0]>} : vector<8x1x16xbf16>, vector<8x16x16xbf16>, vector<8x1x16xf32> -> vector<8x1x16xf32>
    "tpu.trace_stop"() : () -> ()
    %64 = vector.shape_cast %63 : vector<8x1x16xf32> to vector<8x16xf32>
    %65 = arith.truncf %64 : vector<8x16xf32> to vector<8x16xbf16>
    %c0_32 = arith.constant 0 : index
    %c0_33 = arith.constant 0 : index
    %66 = vector.load %arg11[%c0_32, %c0_33] : memref<16x32xbf16, #tpu.memory_space<vmem>>, vector<16x32xbf16>
    %cst_34 = arith.constant dense<0.000000e+00> : vector<8x32xf32>
    %67 = tpu.matmul %65, %66, %cst_34 {dimension_numbers = #tpu.dot_dimension_numbers<[1], [0], [0], [1], [0, 0, 1, 1], [], []>} : vector<8x16xbf16>, vector<16x32xbf16>, vector<8x32xf32> -> vector<8x32xf32>
    %c0_35 = arith.constant 0 : index
    %c0_36 = arith.constant 0 : index
    %68 = vector.load %arg12[%c0_35, %c0_36] : memref<1x32xf32, #tpu.memory_space<vmem>>, vector<1x32xf32>
    %69 = vector.broadcast %68 : vector<1x32xf32> to vector<8x32xf32>
    %70 = arith.addf %67, %69 : vector<8x32xf32>
    %cst_37 = arith.constant 0.000000e+00 : f32
    %71 = vector.broadcast %cst_37 : f32 to vector<8x32xf32>
    %72 = arith.maximumf %70, %71 : vector<8x32xf32>
    %cst_38 = arith.constant 0.000000e+00 : f32
    %73 = vector.broadcast %cst_38 : f32 to vector<8x96xf32>
    %74 = tpu.concatenate %36, %73 in 1 : vector<8x32xf32>, vector<8x96xf32> -> vector<8x128xf32>
    %cst_39 = arith.constant 0.000000e+00 : f32
    %75 = vector.broadcast %cst_39 : f32 to vector<8x96xf32>
    %76 = tpu.concatenate %72, %75 in 1 : vector<8x32xf32>, vector<8x96xf32> -> vector<8x128xf32>
    %cst_40 = arith.constant 0.000000e+00 : f32
    %77 = vector.broadcast %cst_40 : f32 to vector<8x112xf32>
    %78 = tpu.concatenate %64, %77 in 1 : vector<8x16xf32>, vector<8x112xf32> -> vector<8x128xf32>
    %cst_41 = arith.constant 0.000000e+00 : f32
    %79 = vector.broadcast %cst_41 : f32 to vector<8x96xf32>
    %80 = tpu.concatenate %15, %79 in 1 : vector<8x32xf32>, vector<8x96xf32> -> vector<8x128xf32>
    %cst_42 = arith.constant 0.000000e+00 : f32
    %81 = vector.broadcast %cst_42 : f32 to vector<8x96xf32>
    %82 = tpu.concatenate %9, %81 in 1 : vector<8x32xf32>, vector<8x96xf32> -> vector<8x128xf32>
    %83 = tpu.concatenate %74, %76, %78, %80, %82 in 1 : vector<8x128xf32>, vector<8x128xf32>, vector<8x128xf32>, vector<8x128xf32>, vector<8x128xf32> -> vector<8x640xf32>
    %c0_43 = arith.constant 0 : index
    %c0_44 = arith.constant 0 : index
    %84 = vector.load %arg13[%c0_43, %c0_44] : memref<8x640xf32, #tpu.memory_space<vmem>>, vector<8x640xf32>
    tpu.vector_store %arg13[%c0_43, %c0_44], %83 {strides = array<i32>} : memref<8x640xf32, #tpu.memory_space<vmem>>, vector<8x640xf32>,
    %c0_45 = arith.constant 0 : index
    %c0_46 = arith.constant 0 : index
    %85 = vector.load %arg14[%c0_45, %c0_46] : memref<8x16xf32, #tpu.memory_space<vmem>>, vector<8x16xf32>
    tpu.vector_store %arg14[%c0_45, %c0_46], %32 {strides = array<i32>} : memref<8x16xf32, #tpu.memory_space<vmem>>, vector<8x16xf32>,
    %c0_47 = arith.constant 0 : index
    %c0_48 = arith.constant 0 : index
    %86 = vector.load %arg15[%c0_47, %c0_48] : memref<8x16xf32, #tpu.memory_space<vmem>>, vector<8x16xf32>
    tpu.vector_store %arg15[%c0_47, %c0_48], %60 {strides = array<i32>} : memref<8x16xf32, #tpu.memory_space<vmem>>, vector<8x16xf32>,
    return
  }
  func.func @transform_0(%arg0: i32) -> (i32, i32, i32) {
    %c0_i32 = arith.constant 0 : i32
    %c0_i32_0 = arith.constant 0 : i32
    %c0_i32_1 = arith.constant 0 : i32
    return %arg0, %c0_i32, %c0_i32_0 : i32, i32, i32
  }
  func.func @transform_1(%arg0: i32) -> (i32, i32, i32) {
    %c0_i32 = arith.constant 0 : i32
    %c0_i32_0 = arith.constant 0 : i32
    %c0_i32_1 = arith.constant 0 : i32
    return %arg0, %c0_i32, %c0_i32_0 : i32, i32, i32
  }
  func.func @transform_2(%arg0: i32) -> (i32, i32) {
    %c0_i32 = arith.constant 0 : i32
    %c0_i32_0 = arith.constant 0 : i32
    return %arg0, %c0_i32 : i32, i32
  }
  func.func @transform_3(%arg0: i32) -> (i32, i32) {
    %c0_i32 = arith.constant 0 : i32
    %c0_i32_0 = arith.constant 0 : i32
    %c0_i32_1 = arith.constant 0 : i32
    return %c0_i32, %c0_i32_0 : i32, i32
  }
  func.func @transform_4(%arg0: i32) -> (i32, i32) {
    %c0_i32 = arith.constant 0 : i32
    %c0_i32_0 = arith.constant 0 : i32
    %c0_i32_1 = arith.constant 0 : i32
    return %c0_i32, %c0_i32_0 : i32, i32
  }
  func.func @transform_5(%arg0: i32) -> (i32, i32) {
    %c0_i32 = arith.constant 0 : i32
    %c0_i32_0 = arith.constant 0 : i32
    %c0_i32_1 = arith.constant 0 : i32
    return %c0_i32, %c0_i32_0 : i32, i32
  }
  func.func @transform_6(%arg0: i32) -> (i32, i32) {
    %c0_i32 = arith.constant 0 : i32
    %c0_i32_0 = arith.constant 0 : i32
    %c0_i32_1 = arith.constant 0 : i32
    return %c0_i32, %c0_i32_0 : i32, i32
  }
  func.func @transform_7(%arg0: i32) -> (i32, i32) {
    %c0_i32 = arith.constant 0 : i32
    %c0_i32_0 = arith.constant 0 : i32
    %c0_i32_1 = arith.constant 0 : i32
    return %c0_i32, %c0_i32_0 : i32, i32
  }
  func.func @transform_8(%arg0: i32) -> (i32, i32) {
    %c0_i32 = arith.constant 0 : i32
    %c0_i32_0 = arith.constant 0 : i32
    %c0_i32_1 = arith.constant 0 : i32
    return %c0_i32, %c0_i32_0 : i32, i32
  }
  func.func @transform_9(%arg0: i32) -> (i32, i32) {
    %c0_i32 = arith.constant 0 : i32
    %c0_i32_0 = arith.constant 0 : i32
    %c0_i32_1 = arith.constant 0 : i32
    return %c0_i32, %c0_i32_0 : i32, i32
  }
  func.func @transform_10(%arg0: i32) -> (i32, i32) {
    %c0_i32 = arith.constant 0 : i32
    %c0_i32_0 = arith.constant 0 : i32
    %c0_i32_1 = arith.constant 0 : i32
    return %c0_i32, %c0_i32_0 : i32, i32
  }
  func.func @transform_11(%arg0: i32) -> (i32, i32) {
    %c0_i32 = arith.constant 0 : i32
    %c0_i32_0 = arith.constant 0 : i32
    %c0_i32_1 = arith.constant 0 : i32
    return %c0_i32, %c0_i32_0 : i32, i32
  }
  func.func @transform_12(%arg0: i32) -> (i32, i32) {
    %c0_i32 = arith.constant 0 : i32
    %c0_i32_0 = arith.constant 0 : i32
    return %arg0, %c0_i32 : i32, i32
  }
  func.func @transform_13(%arg0: i32) -> (i32, i32) {
    %c0_i32 = arith.constant 0 : i32
    %c0_i32_0 = arith.constant 0 : i32
    return %arg0, %c0_i32 : i32, i32
  }
  func.func @transform_14(%arg0: i32) -> (i32, i32) {
    %c0_i32 = arith.constant 0 : i32
    %c0_i32_0 = arith.constant 0 : i32
    return %arg0, %c0_i32 : i32, i32
  }
}

module attributes {stable_mosaic.version = 11 : i64} {
  func.func @_bclassifier_kernel(%arg0: i32, %arg1: memref<8x16x32xbf16, #tpu.memory_space<vmem>>, %arg2: memref<8x16x16xbf16, #tpu.memory_space<vmem>>, %arg3: memref<8x64xf32, #tpu.memory_space<vmem>>, %arg4: memref<64x32xbf16, #tpu.memory_space<vmem>>, %arg5: memref<1x32xf32, #tpu.memory_space<vmem>>, %arg6: memref<32x32xbf16, #tpu.memory_space<vmem>>, %arg7: memref<1x32xf32, #tpu.memory_space<vmem>>, %arg8: memref<16x32xbf16, #tpu.memory_space<vmem>>, %arg9: memref<1x32xf32, #tpu.memory_space<vmem>>, %arg10: memref<1x32xbf16, #tpu.memory_space<vmem>>, %arg11: memref<16x32xbf16, #tpu.memory_space<vmem>>, %arg12: memref<1x32xf32, #tpu.memory_space<vmem>>, %arg13: memref<8x640xf32, #tpu.memory_space<vmem>>, %arg14: memref<8x16xf32, #tpu.memory_space<vmem>>, %arg15: memref<8x16xf32, #tpu.memory_space<vmem>>) attributes {dimension_semantics = [#tpu.dimension_semantics<parallel>], iteration_bounds = array<i64: 1>, scalar_prefetch = 0 : i64, scratch_operands = 0 : i64, tpu.core_type = #tpu.core_type<tc>, window_params = [{transform_indices = @transform_0, window_bounds = array<i64: 8, 16, 32>}, {transform_indices = @transform_1, window_bounds = array<i64: 8, 16, 16>}, {transform_indices = @transform_2, window_bounds = array<i64: 8, 64>}, {pipeline_mode = #tpu.pipeline_mode<synchronous>, transform_indices = @transform_3, window_bounds = array<i64: 64, 32>}, {pipeline_mode = #tpu.pipeline_mode<synchronous>, transform_indices = @transform_4, window_bounds = array<i64: 1, 32>}, {pipeline_mode = #tpu.pipeline_mode<synchronous>, transform_indices = @transform_5, window_bounds = array<i64: 32, 32>}, {pipeline_mode = #tpu.pipeline_mode<synchronous>, transform_indices = @transform_6, window_bounds = array<i64: 1, 32>}, {pipeline_mode = #tpu.pipeline_mode<synchronous>, transform_indices = @transform_7, window_bounds = array<i64: 16, 32>}, {pipeline_mode = #tpu.pipeline_mode<synchronous>, transform_indices = @transform_8, window_bounds = array<i64: 1, 32>}, {pipeline_mode = #tpu.pipeline_mode<synchronous>, transform_indices = @transform_9, window_bounds = array<i64: 1, 32>}, {pipeline_mode = #tpu.pipeline_mode<synchronous>, transform_indices = @transform_10, window_bounds = array<i64: 16, 32>}, {pipeline_mode = #tpu.pipeline_mode<synchronous>, transform_indices = @transform_11, window_bounds = array<i64: 1, 32>}, {transform_indices = @transform_12, window_bounds = array<i64: 8, 640>}, {transform_indices = @transform_13, window_bounds = array<i64: 8, 16>}, {transform_indices = @transform_14, window_bounds = array<i64: 8, 16>}]} {
    %c0 = arith.constant 0 : index
    %c0_0 = arith.constant 0 : index
    %c0_1 = arith.constant 0 : index
    %0 = vector.load %arg1[%c0, %c0_0, %c0_1] : memref<8x16x32xbf16, #tpu.memory_space<vmem>>, vector<8x16x32xbf16>
    %c0_2 = arith.constant 0 : index
    %c0_3 = arith.constant 0 : index
    %c0_4 = arith.constant 0 : index
    %1 = vector.load %arg2[%c0_2, %c0_3, %c0_4] : memref<8x16x16xbf16, #tpu.memory_space<vmem>>, vector<8x16x16xbf16>
    %c0_5 = arith.constant 0 : index
    %c0_6 = arith.constant 0 : index
    %2 = vector.load %arg3[%c0_5, %c0_6] : memref<8x64xf32, #tpu.memory_space<vmem>>, vector<8x64xf32>
    %3 = arith.truncf %2 : vector<8x64xf32> to vector<8x64xbf16>
    %c0_7 = arith.constant 0 : index
    %c0_8 = arith.constant 0 : index
    %4 = vector.load %arg4[%c0_7, %c0_8] : memref<64x32xbf16, #tpu.memory_space<vmem>>, vector<64x32xbf16>
    %cst = arith.constant dense<0.000000e+00> : vector<8x32xf32>
    %5 = tpu.matmul %3, %4, %cst {dimension_numbers = #tpu.dot_dimension_numbers<[1], [0], [0], [1], [0, 0, 1, 1], [], []>} : vector<8x64xbf16>, vector<64x32xbf16>, vector<8x32xf32> -> vector<8x32xf32>
    %c0_9 = arith.constant 0 : index
    %c0_10 = arith.constant 0 : index
    %6 = vector.load %arg5[%c0_9, %c0_10] : memref<1x32xf32, #tpu.memory_space<vmem>>, vector<1x32xf32>
    %7 = vector.broadcast %6 : vector<1x32xf32> to vector<8x32xf32>
    %8 = arith.addf %5, %7 : vector<8x32xf32>
    %9 = math.tanh %8 : vector<8x32xf32>
    %10 = arith.truncf %9 : vector<8x32xf32> to vector<8x32xbf16>
    %c0_11 = arith.constant 0 : index
    %c0_12 = arith.constant 0 : index
    %11 = vector.load %arg6[%c0_11, %c0_12] : memref<32x32xbf16, #tpu.memory_space<vmem>>, vector<32x32xbf16>
    %cst_13 = arith.constant dense<0.000000e+00> : vector<8x32xf32>
    %12 = tpu.matmul %10, %11, %cst_13 {dimension_numbers = #tpu.dot_dimension_numbers<[1], [0], [0], [1], [0, 0, 1, 1], [], []>} : vector<8x32xbf16>, vector<32x32xbf16>, vector<8x32xf32> -> vector<8x32xf32>
    %c0_14 = arith.constant 0 : index
    %c0_15 = arith.constant 0 : index
    %13 = vector.load %arg7[%c0_14, %c0_15] : memref<1x32xf32, #tpu.memory_space<vmem>>, vector<1x32xf32>
    %14 = vector.broadcast %13 : vector<1x32xf32> to vector<8x32xf32>
    %15 = arith.addf %12, %14 : vector<8x32xf32>
    %cst_16 = arith.constant 0.176776692 : f32
    %16 = vector.broadcast %cst_16 : f32 to vector<8x32xf32>
    %17 = arith.mulf %15, %16 : vector<8x32xf32>
    %18 = vector.shape_cast %17 : vector<8x32xf32> to vector<8x1x32xf32>
    %19 = arith.extf %0 : vector<8x16x32xbf16> to vector<8x16x32xf32>
    %20 = vector.broadcast %18 : vector<8x1x32xf32> to vector<8x16x32xf32>
    %21 = arith.mulf %20, %19 : vector<8x16x32xf32>
    %cst_17 = arith.constant dense<0.000000e+00> : vector<8x16xf32>
    %22 = vector.multi_reduction <add>, %21, %cst_17 [2] : vector<8x16x32xf32> to vector<8x16xf32>
    %cst_18 = arith.constant dense<0xFF800000> : vector<8xf32>
    %23 = vector.multi_reduction <maximumf>, %22, %cst_18 [1] : vector<8x16xf32> to vector<8xf32>
    %24 = vector.shape_cast %23 : vector<8xf32> to vector<8x1xf32>
    %25 = vector.broadcast %24 : vector<8x1xf32> to vector<8x16xf32>
    %26 = arith.subf %22, %25 : vector<8x16xf32>
    %27 = math.exp %26 : vector<8x16xf32>
    %cst_19 = arith.constant dense<0.000000e+00> : vector<8xf32>
    %28 = vector.multi_reduction <add>, %27, %cst_19 [1] : vector<8x16xf32> to vector<8xf32>
    %29 = vector.shape_cast %28 : vector<8xf32> to vector<8x1xf32>
    %30 = tpu.reciprocal %29 {approx = true} : vector<8x1xf32> -> vector<8x1xf32>
    %31 = vector.broadcast %30 : vector<8x1xf32> to vector<8x16xf32>
    %32 = arith.mulf %27, %31 : vector<8x16xf32>
    %33 = vector.shape_cast %32 : vector<8x16xf32> to vector<8x1x16xf32>
    %34 = arith.truncf %33 : vector<8x1x16xf32> to vector<8x1x16xbf16>
    "tpu.trace_start"() <{level = 10 : i32, message = "bkn,bnd->bkd"}> : () -> ()
    %cst_20 = arith.constant dense<0.000000e+00> : vector<8x1x32xf32>
    %35 = tpu.matmul %34, %0, %cst_20 {dimension_numbers = #tpu.dot_dimension_numbers<[2], [1], [1], [2], [0, 0, 0, 1, 1, 2], [0], [0]>} : vector<8x1x16xbf16>, vector<8x16x32xbf16>, vector<8x1x32xf32> -> vector<8x1x32xf32>
    "tpu.trace_stop"() : () -> ()
    %36 = vector.shape_cast %35 : vector<8x1x32xf32> to vector<8x32xf32>
    %37 = vector.shape_cast %1 : vector<8x16x16xbf16> to vector<128x16xbf16>
    %c0_21 = arith.constant 0 : index
    %c0_22 = arith.constant 0 : index
    %38 = vector.load %arg8[%c0_21, %c0_22] : memref<16x32xbf16, #tpu.memory_space<vmem>>, vector<16x32xbf16>
    %cst_23 = arith.constant dense<0.000000e+00> : vector<128x32xf32>
    %39 = tpu.matmul %37, %38, %cst_23 {dimension_numbers = #tpu.dot_dimension_numbers<[1], [0], [0], [1], [0, 0, 1, 1], [], []>} : vector<128x16xbf16>, vector<16x32xbf16>, vector<128x32xf32> -> vector<128x32xf32>
    %c0_24 = arith.constant 0 : index
    %c0_25 = arith.constant 0 : index
    %40 = vector.load %arg9[%c0_24, %c0_25] : memref<1x32xf32, #tpu.memory_space<vmem>>, vector<1x32xf32>
    %41 = vector.broadcast %40 : vector<1x32xf32> to vector<128x32xf32>
    %42 = arith.addf %39, %41 : vector<128x32xf32>
    %43 = math.tanh %42 : vector<128x32xf32>
    %44 = vector.shape_cast %43 : vector<128x32xf32> to vector<8x16x32xf32>
    %c0_26 = arith.constant 0 : index
    %c0_27 = arith.constant 0 : index
    %45 = vector.load %arg10[%c0_26, %c0_27] : memref<1x32xbf16, #tpu.memory_space<vmem>>, vector<1x32xbf16>
    %46 = arith.extf %45 : vector<1x32xbf16> to vector<1x32xf32>
    %47 = vector.shape_cast %46 : vector<1x32xf32> to vector<1x1x32xf32>
    %48 = vector.broadcast %47 : vector<1x1x32xf32> to vector<8x16x32xf32>
    %49 = arith.mulf %44, %48 : vector<8x16x32xf32>
    %cst_28 = arith.constant dense<0.000000e+00> : vector<8x16xf32>
    %50 = vector.multi_reduction <add>, %49, %cst_28 [2] : vector<8x16x32xf32> to vector<8x16xf32>
    %cst_29 = arith.constant dense<0xFF800000> : vector<8xf32>
    %51 = vector.multi_reduction <maximumf>, %50, %cst_29 [1] : vector<8x16xf32> to vector<8xf32>
    %52 = vector.shape_cast %51 : vector<8xf32> to vector<8x1xf32>
    %53 = vector.broadcast %52 : vector<8x1xf32> to vector<8x16xf32>
    %54 = arith.subf %50, %53 : vector<8x16xf32>
    %55 = math.exp %54 : vector<8x16xf32>
    %cst_30 = arith.constant dense<0.000000e+00> : vector<8xf32>
    %56 = vector.multi_reduction <add>, %55, %cst_30 [1] : vector<8x16xf32> to vector<8xf32>
    %57 = vector.shape_cast %56 : vector<8xf32> to vector<8x1xf32>
    %58 = tpu.reciprocal %57 {approx = true} : vector<8x1xf32> -> vector<8x1xf32>
    %59 = vector.broadcast %58 : vector<8x1xf32> to vector<8x16xf32>
    %60 = arith.mulf %55, %59 : vector<8x16xf32>
    %61 = vector.shape_cast %60 : vector<8x16xf32> to vector<8x1x16xf32>
    %62 = arith.truncf %61 : vector<8x1x16xf32> to vector<8x1x16xbf16>
    "tpu.trace_start"() <{level = 10 : i32, message = "bkn,bnd->bkd"}> : () -> ()
    %cst_31 = arith.constant dense<0.000000e+00> : vector<8x1x16xf32>
    %63 = tpu.matmul %62, %1, %cst_31 {dimension_numbers = #tpu.dot_dimension_numbers<[2], [1], [1], [2], [0, 0, 0, 1, 1, 2], [0], [0]>} : vector<8x1x16xbf16>, vector<8x16x16xbf16>, vector<8x1x16xf32> -> vector<8x1x16xf32>
    "tpu.trace_stop"() : () -> ()
    %64 = vector.shape_cast %63 : vector<8x1x16xf32> to vector<8x16xf32>
    %65 = arith.truncf %64 : vector<8x16xf32> to vector<8x16xbf16>
    %c0_32 = arith.constant 0 : index
    %c0_33 = arith.constant 0 : index
    %66 = vector.load %arg11[%c0_32, %c0_33] : memref<16x32xbf16, #tpu.memory_space<vmem>>, vector<16x32xbf16>
    %cst_34 = arith.constant dense<0.000000e+00> : vector<8x32xf32>
    %67 = tpu.matmul %65, %66, %cst_34 {dimension_numbers = #tpu.dot_dimension_numbers<[1], [0], [0], [1], [0, 0, 1, 1], [], []>} : vector<8x16xbf16>, vector<16x32xbf16>, vector<8x32xf32> -> vector<8x32xf32>
    %c0_35 = arith.constant 0 : index
    %c0_36 = arith.constant 0 : index
    %68 = vector.load %arg12[%c0_35, %c0_36] : memref<1x32xf32, #tpu.memory_space<vmem>>, vector<1x32xf32>
    %69 = vector.broadcast %68 : vector<1x32xf32> to vector<8x32xf32>
    %70 = arith.addf %67, %69 : vector<8x32xf32>
    %cst_37 = arith.constant 0.000000e+00 : f32
    %71 = vector.broadcast %cst_37 : f32 to vector<8x32xf32>
    %72 = arith.maximumf %70, %71 : vector<8x32xf32>
    %cst_38 = arith.constant 0.000000e+00 : f32
    %73 = vector.broadcast %cst_38 : f32 to vector<8x96xf32>
    %74 = tpu.concatenate %36, %73 in 1 : vector<8x32xf32>, vector<8x96xf32> -> vector<8x128xf32>
    %cst_39 = arith.constant 0.000000e+00 : f32
    %75 = vector.broadcast %cst_39 : f32 to vector<8x96xf32>
    %76 = tpu.concatenate %72, %75 in 1 : vector<8x32xf32>, vector<8x96xf32> -> vector<8x128xf32>
    %cst_40 = arith.constant 0.000000e+00 : f32
    %77 = vector.broadcast %cst_40 : f32 to vector<8x112xf32>
    %78 = tpu.concatenate %64, %77 in 1 : vector<8x16xf32>, vector<8x112xf32> -> vector<8x128xf32>
    %cst_41 = arith.constant 0.000000e+00 : f32
    %79 = vector.broadcast %cst_41 : f32 to vector<8x96xf32>
    %80 = tpu.concatenate %15, %79 in 1 : vector<8x32xf32>, vector<8x96xf32> -> vector<8x128xf32>
    %cst_42 = arith.constant 0.000000e+00 : f32
    %81 = vector.broadcast %cst_42 : f32 to vector<8x96xf32>
    %82 = tpu.concatenate %9, %81 in 1 : vector<8x32xf32>, vector<8x96xf32> -> vector<8x128xf32>
    %83 = tpu.concatenate %74, %76, %78, %80, %82 in 1 : vector<8x128xf32>, vector<8x128xf32>, vector<8x128xf32>, vector<8x128xf32>, vector<8x128xf32> -> vector<8x640xf32>
    %c0_43 = arith.constant 0 : index
    %c0_44 = arith.constant 0 : index
    %84 = vector.load %arg13[%c0_43, %c0_44] : memref<8x640xf32, #tpu.memory_space<vmem>>, vector<8x640xf32>
    tpu.vector_store %arg13[%c0_43, %c0_44], %83 {strides = array<i32>} : memref<8x640xf32, #tpu.memory_space<vmem>>, vector<8x640xf32>,
    %c0_45 = arith.constant 0 : index
    %c0_46 = arith.constant 0 : index
    %85 = vector.load %arg14[%c0_45, %c0_46] : memref<8x16xf32, #tpu.memory_space<vmem>>, vector<8x16xf32>
    tpu.vector_store %arg14[%c0_45, %c0_46], %32 {strides = array<i32>} : memref<8x16xf32, #tpu.memory_space<vmem>>, vector<8x16xf32>,
    %c0_47 = arith.constant 0 : index
    %c0_48 = arith.constant 0 : index
    %86 = vector.load %arg15[%c0_47, %c0_48] : memref<8x16xf32, #tpu.memory_space<vmem>>, vector<8x16xf32>
    tpu.vector_store %arg15[%c0_47, %c0_48], %60 {strides = array<i32>} : memref<8x16xf32, #tpu.memory_space<vmem>>, vector<8x16xf32>,
    return
  }
  func.func @transform_0(%arg0: i32) -> (i32, i32, i32) {
    %c0_i32 = arith.constant 0 : i32
    %c0_i32_0 = arith.constant 0 : i32
    %c0_i32_1 = arith.constant 0 : i32
    return %arg0, %c0_i32, %c0_i32_0 : i32, i32, i32
  }
  func.func @transform_1(%arg0: i32) -> (i32, i32, i32) {
    %c0_i32 = arith.constant 0 : i32
    %c0_i32_0 = arith.constant 0 : i32
    %c0_i32_1 = arith.constant 0 : i32
    return %arg0, %c0_i32, %c0_i32_0 : i32, i32, i32
  }
  func.func @transform_2(%arg0: i32) -> (i32, i32) {
    %c0_i32 = arith.constant 0 : i32
    %c0_i32_0 = arith.constant 0 : i32
    return %arg0, %c0_i32 : i32, i32
  }
  func.func @transform_3(%arg0: i32) -> (i32, i32) {
    %c0_i32 = arith.constant 0 : i32
    %c0_i32_0 = arith.constant 0 : i32
    %c0_i32_1 = arith.constant 0 : i32
    return %c0_i32, %c0_i32_0 : i32, i32
  }
  func.func @transform_4(%arg0: i32) -> (i32, i32) {
    %c0_i32 = arith.constant 0 : i32
    %c0_i32_0 = arith.constant 0 : i32
    %c0_i32_1 = arith.constant 0 : i32
    return %c0_i32, %c0_i32_0 : i32, i32
  }
  func.func @transform_5(%arg0: i32) -> (i32, i32) {
    %c0_i32 = arith.constant 0 : i32
    %c0_i32_0 = arith.constant 0 : i32
    %c0_i32_1 = arith.constant 0 : i32
    return %c0_i32, %c0_i32_0 : i32, i32
  }
  func.func @transform_6(%arg0: i32) -> (i32, i32) {
    %c0_i32 = arith.constant 0 : i32
    %c0_i32_0 = arith.constant 0 : i32
    %c0_i32_1 = arith.constant 0 : i32
    return %c0_i32, %c0_i32_0 : i32, i32
  }
  func.func @transform_7(%arg0: i32) -> (i32, i32) {
    %c0_i32 = arith.constant 0 : i32
    %c0_i32_0 = arith.constant 0 : i32
    %c0_i32_1 = arith.constant 0 : i32
    return %c0_i32, %c0_i32_0 : i32, i32
  }
  func.func @transform_8(%arg0: i32) -> (i32, i32) {
    %c0_i32 = arith.constant 0 : i32
    %c0_i32_0 = arith.constant 0 : i32
    %c0_i32_1 = arith.constant 0 : i32
    return %c0_i32, %c0_i32_0 : i32, i32
  }
  func.func @transform_9(%arg0: i32) -> (i32, i32) {
    %c0_i32 = arith.constant 0 : i32
    %c0_i32_0 = arith.constant 0 : i32
    %c0_i32_1 = arith.constant 0 : i32
    return %c0_i32, %c0_i32_0 : i32, i32
  }
  func.func @transform_10(%arg0: i32) -> (i32, i32) {
    %c0_i32 = arith.constant 0 : i32
    %c0_i32_0 = arith.constant 0 : i32
    %c0_i32_1 = arith.constant 0 : i32
    return %c0_i32, %c0_i32_0 : i32, i32
  }
  func.func @transform_11(%arg0: i32) -> (i32, i32) {
    %c0_i32 = arith.constant 0 : i32
    %c0_i32_0 = arith.constant 0 : i32
    %c0_i32_1 = arith.constant 0 : i32
    return %c0_i32, %c0_i32_0 : i32, i32
  }
  func.func @transform_12(%arg0: i32) -> (i32, i32) {
    %c0_i32 = arith.constant 0 : i32
    %c0_i32_0 = arith.constant 0 : i32
    return %arg0, %c0_i32 : i32, i32
  }
  func.func @transform_13(%arg0: i32) -> (i32, i32) {
    %c0_i32 = arith.constant 0 : i32
    %c0_i32_0 = arith.constant 0 : i32
    return %arg0, %c0_i32 : i32, i32
  }
  func.func @transform_14(%arg0: i32) -> (i32, i32) {
    %c0_i32 = arith.constant 0 : i32
    %c0_i32_0 = arith.constant 0 : i32
    return %arg0, %c0_i32 : i32, i32
  }
}

</mosaic_0001>

<bundles_post_ra>
// kernel: tpu_custom_call.1
= control target key start
LH: loop header
LB: loop body
LE: loop exit
PB: predicated region body
PF: predicated region fallthrough
CT: control target
= control target key end

     0   :  { %20 = vsyncpa [#allocation3], 0  ;;  %s3415_s0 = inlined_call_operand.hbm [shape: bf16[8,16,32], index: 0, kind: input, shape index: {}]   ;;  %s3416_s1 = inlined_call_operand.hbm [shape: bf16[8,16,16], index: 1, kind: input, shape index: {}]   ;;  %s3417_s2 = inlined_call_operand.vmem [shape: f32[8,64], index: 2, kind: input, shape index: {}]   ;;  %s3418_s3 = inlined_call_operand.vmem [shape: bf16[64,32], index: 3, kind: input, shape index: {}]   ;;  %s3419_s4 = inlined_call_operand.vmem [shape: f32[1,32], index: 4, kind: input, shape index: {}]   ;;  %s3420_s5 = inlined_call_operand.vmem [shape: bf16[32,32], index: 5, kind: input, shape index: {}]   ;;  %s3421_s6 = inlined_call_operand.vmem [shape: f32[1,32], index: 6, kind: input, shape index: {}]   ;;  %s3422_s7 = inlined_call_operand.vmem [shape: bf16[16,32], index: 7, kind: input, shape index: {}]   ;;  %s3423_s8 = inlined_call_operand.vmem [shape: f32[1,32], index: 8, kind: input, shape index: {}]   ;;  %s3424_s9 = inlined_call_operand.vmem [shape: bf16[1,32], index: 9, kind: input, shape index: {}]   ;;  %s3425_s10 = inlined_call_operand.vmem [shape: bf16[16,32], index: 10, kind: input, shape index: {}]   ;;  %s3426_s11 = inlined_call_operand.vmem [shape: f32[1,32], index: 11, kind: input, shape index: {}]   ;;  %s3427_s12 = inlined_call_operand.hbm [shape: f32[8,640], index: 12, kind: output, shape index: {0}]   ;;  %s3428_s13 = inlined_call_operand.hbm [shape: f32[8,16], index: 13, kind: output, shape index: {1}]   ;;  %s3429_s14 = inlined_call_operand.hbm [shape: f32[8,16], index: 14, kind: output, shape index: {2}]  }
   0x1   :  { %21 = vsyncpa [#allocation6], 0 }
   0x2   :  { %22 = vsyncpa [#allocation4], 0 }
   0x3   :  { %23 = vsyncpa [#allocation9], 0  ;;  %s28_s15 = sshll.u32 %s3415_s0, 4  ;;  %s2438_s16 = smov [#allocation2]   ;;  %s29_s15 = int_to_ptr.hbm [resolvable:$true] %s28_s15 }
   0x4   :  { %s30_s17 = sshll.u32 %s2438_s16, 4  ;;  %s41_s20 = sshll.u32 %s3416_s1, 4  ;;  %s31_s17 = int_to_ptr.vmem [resolvable:$true] %s30_s17  ;;  %s42_s20 = int_to_ptr.hbm [resolvable:$true] %s41_s20 }
   0x5   :  { %s2439_s21 = smov 64   ;;  %s2440_s22 = smov 4  }
   0x6   :  { %36 = dma.hbm_to_vmem [thread:$0]  %s29_s15, 1024, %s31_s17, [#allocation3], %s2439_s21, %s2439_s21, %s2440_s22  }
   0x7   :  { %s2441_s23 = smov [#allocation5]  }
   0x8   :  { %s43_s24 = sshll.u32 %s2441_s23, 4  ;;  %s44_s24 = int_to_ptr.vmem [resolvable:$true] %s43_s24 }
   0x9   :  { %49 = dma.hbm_to_vmem [thread:$0]  %s42_s20, 1024, %s44_s24, [#allocation6], %s2439_s21, %s2439_s21, %s2440_s22  }
   0xa   :  { %2430 = dma.done.wait [#allocation3], 1024  }
   0xb   :  { %2431 = vsyncadd [#allocation3], 4294966272 }
   0xc   :  { %2432 = dma.done.wait [#allocation6], 1024  }
   0xd   :  { %2433 = vsyncadd [#allocation6], 4294966272  ;;  %v2185_v0 = vld [vmem:[%s3418_s3 + $0x18] sm:$0xff]  ;;  %v2184_v1 = vld [vmem:[%s3418_s3 + $0x10] sm:$0xff]  ;;  %vm149_vm0 = vcmask 523264   ;;  %vm188_vm1 = vcmask 261120  }
   0xe   :  { %157 = vmatpush.bf16.msra.mxu2 %v2185_v0  ;;  %v2183_v2 = vld [vmem:[%s3418_s3 + $0x8] sm:$0xff]  ;;  %v2182_v3 = vld [vmem:[%s3418_s3] sm:$0xff]  ;;  %v83_v19 = vld [vmem:[#allocation2 + $0x10] sm:$0xff]   ;;  %vm331_vm2 = vcmask 130112   ;;  %vm354_vm3 = vcmask 1041409   ;;  %vm356_vm4 = vcmask 1042434  }
   0xf   :  { %v111_v4 = vld [vmem:[%s3417_s2] sm:$0xff]  ;;  %v2187_v6 = vld [vmem:[%s3420_s5 + $0x8] sm:$0xff]  ;;  %v218_v24 = vunpack.c.l.bf16 %v83_v19  ;;  %v219_v39 = vunpack.c.h.bf16 %v83_v19  ;;  %v85_v43 = vld [vmem:[#allocation2 + $0x18] sm:$0xff]   ;;  %vm358_vm5 = vcmask 1043459   ;;  %vm360_vm6 = vcmask 1044484   ;;  %s1980_s25 = sshll.u32 %s3428_s13, 4  ;;  %s1981_s25 = int_to_ptr.hbm [resolvable:$true] %s1980_s25 }
  0x10   :  { %v112_v5 = vpack.c.bf16 %v111_v4, %v111_v4  ;;  %198 = vmatpush.bf16.msra.mxu1 %v2187_v6  ;;  %v2186_v7 = vld [vmem:[%s3420_s5] sm:$0xff]  ;;  %v81_v20 = vld [vmem:[#allocation2 + $0x8] sm:$0xff]   ;;  %v220_v49 = vunpack.c.l.bf16 %v85_v43  ;;  %v221_v55 = vunpack.c.h.bf16 %v85_v43  ;;  %vm362_vm7 = vcmask 1045509   ;;  %s2443_s26 = smov [#allocation8]   ;;  %s1991_s29 = sshll.u32 %s3429_s14, 4  ;;  %s1992_s29 = int_to_ptr.hbm [resolvable:$true] %s1991_s29 }
  0x11   :  { %v2202_v8 = vld [vmem:[%s3419_s4] ss:$0 sm:$0xff]  ;;  %v216_v28 = vunpack.c.l.bf16 %v81_v20  ;;  %v217_v40 = vunpack.c.h.bf16 %v81_v20  ;;  %v90_v59 = vld [vmem:[#allocation2 + $0x2c] sm:$0xff]   ;;  %v89_v61 = vld [vmem:[#allocation2 + $0x28] sm:$0xf]  ;;  %vm364_vm8 = vcmask 1046534  }
  0x12   :  { %158 = vmatpush.bf16.msra.mxu2 %v2184_v1  ;;  %v2203_v15 = vld [vmem:[%s3421_s6] ss:$0 sm:$0xff]  ;;  %v225_v0 = vunpack.c.l.bf16 %v90_v59  ;;  %v224_v4 = vunpack.c.l.bf16 %v89_v61  ;;  %vm366_vm9 = vcmask 1047559   ;;  %vm369_vm10 = vcmask 130048   ;;  %s1978_s27 = sshll.u32 %s2443_s26, 4  ;;  %s2444_s30 = smov [#allocation10]   ;;  %s1979_s27 = int_to_ptr.vmem [resolvable:$true] %s1978_s27 }
  0x13   :  { %v79_v17 = vld [vmem:[#allocation2] sm:$0xff]   ;;  %s1989_s15 = sshll.u32 %s2444_s30, 4  ;;  %s2445_s13 = smov [#allocation7]   ;;  %s1990_s15 = int_to_ptr.vmem [resolvable:$true] %s1989_s15 }
  0x14   :  { %199 = vmatpush.bf16.msra.mxu1 %v2186_v7  ;;  %v214_v23 = vunpack.c.l.bf16 %v79_v17  ;;  %v215_v36 = vunpack.c.h.bf16 %v79_v17  ;;  %v87_v46 = vld [vmem:[#allocation2 + $0x20] sm:$0xff]   ;;  %s1967_s18 = sshll.u32 %s2445_s13, 4  ;;  %s1969_s21 = sshll.u32 %s3427_s12, 4  ;;  %s1968_s18 = int_to_ptr.vmem [resolvable:$true] %s1967_s18  ;;  %s1970_s21 = int_to_ptr.hbm [resolvable:$true] %s1969_s21 }
  0x15   :  { %v222_v51 = vunpack.c.l.bf16 %v87_v46  ;;  %v223_v63 = vunpack.c.h.bf16 %v87_v46 }
  0x16   :  { %159 = vmatpush.bf16.msra.mxu2 %v2183_v2 }
  0x1a   :  { %160 = vmatpush.bf16.msra.mxu2 %v2182_v3 }
  0x1d   :  { %2027 = vmatmul.msk.bf16.vlgmr.msra.gmra.mxu2 %vm149_vm0, %v112_v5 }
  0xa0   :  { %v162_v9 = vpop.f32.mrf.mxu2 }
  0xa1   :  { %v163_v10 = vadd.f32 %v2202_v8, %v162_v9  ;;  %v93_v9 = vld [vmem:[#allocation2 + $0x38] sm:$0xff]  }
  0xa3   :  { %2206 = vtanh.f32 %v163_v10 }
  0xa8   :  { %v164_v11 = vpop.f32.mrf.mxu2 }
  0xa9   :  { %v2207_v12 = vpop.eup %2206  ;;  %v92_v11 = vld [vmem:[#allocation2 + $0x34] sm:$0xf] }
  0xaa   :  { %v1762_v13 = vsel %vm188_vm1, %v2207_v12, 0.0  ;;  %v167_v14 = vpack.c.bf16 %v2207_v12, %v2207_v12  ;;  %v227_v19 = vunpack.c.l.bf16 %v92_v11 }
  0xab   :  { %1767 = vst [vmem:[#allocation7 + $0x20] sm:$0xff] %v1762_v13  ;;  %v226_v13 = vunpack.c.h.bf16 %v90_v59 }
  0xac   :  { %2036 = vmatmul.msk.bf16.vlgmr.msra.gmra.mxu1 %vm188_vm1, %v167_v14 }
 0x129   :  { %v201_v16 = vpop.f32.mrf.mxu1 }
 0x12a   :  { %v202_v18 = vadd.f32 %v2203_v15, %v201_v16  ;;  %v228_v15 = vunpack.c.l.bf16 %v93_v9 }
 0x12c   :  { %v2556_v21 = vmul.f32 0.17677669, %v202_v18  ;;  %v1761_v22 = vsel %vm188_vm1, %v202_v18, 0.0 }
 0x12d   :  { %1766 = vst [vmem:[#allocation7 + $0x18] sm:$0xff] %v1761_v22 }
 0x12e   :  { %v230_v25 = vperm.slane %v2556_v21, 0  ;;  %v208_v26 = vrot.slane %v2556_v21, 2  ;;  %v207_v27 = vrot.slane %v2556_v21, 1  ;;  %v209_v42 = vrot.slane %v2556_v21, 3 }
 0x12f   :  { %v210_v47 = vrot.slane %v2556_v21, 4  ;;  %v211_v60 = vrot.slane %v2556_v21, 5  ;;  %v212_v6 = vrot.slane %v2556_v21, 6  ;;  %v213_v10 = vrot.slane %v2556_v21, 7 }
 0x130   :  { %v246_v29 = vmul.f32 %v230_v25, %v214_v23  ;;  %v232_v30 = vperm.slane %v208_v26, 0  ;;  %v231_v31 = vperm.slane %v207_v27, 0  ;;  %v247_v41 = vmul.f32 %v230_v25, %v215_v36 }
 0x131   :  { %v203_v32 = vpop.f32.mrf.mxu1  ;;  %v233_v50 = vperm.slane %v209_v42, 0  ;;  %v234_v54 = vperm.slane %v210_v47, 0  ;;  %v235_v3 = vperm.slane %v211_v60, 0  ;;  %v236_v14 = vperm.slane %v212_v6, 0 }
 0x132   :  { %v262_v33 = vsel %vm188_vm1, %v246_v29, 0.0  ;;  %v250_v34 = vmul.f32 %v232_v30, %v218_v24  ;;  %v248_v35 = vmul.f32 %v231_v31, %v216_v28  ;;  %v251_v44 = vmul.f32 %v232_v30, %v219_v39 }
 0x133   :  { %263 = vadd.xlane.f32.xlu0 %v262_v33  ;;  %v249_v45 = vmul.f32 %v231_v31, %v217_v40  ;;  %v265_v48 = vsel %vm188_vm1, %v247_v41, 0.0  ;;  %v252_v56 = vmul.f32 %v233_v50, %v220_v49  ;;  %v254_v57 = vmul.f32 %v234_v54, %v222_v51 }
 0x134   :  { %v274_v37 = vsel %vm188_vm1, %v250_v34, 0.0  ;;  %v268_v38 = vsel %vm188_vm1, %v248_v35, 0.0  ;;  %v277_v52 = vsel %vm188_vm1, %v251_v44, 0.0  ;;  %v253_v58 = vmul.f32 %v233_v50, %v221_v55 }
 0x135   :  { %275 = vadd.xlane.f32.xlu2 %v274_v37  ;;  %269 = vadd.xlane.f32.xlu1 %v268_v38  ;;  %v271_v53 = vsel %vm188_vm1, %v249_v45, 0.0  ;;  %v280_v62 = vsel %vm188_vm1, %v252_v56, 0.0  ;;  %v286_v1 = vsel %vm188_vm1, %v254_v57, 0.0  ;;  %v255_v5 = vmul.f32 %v234_v54, %v223_v63 }
 0x136   :  { %v283_v2 = vsel %vm188_vm1, %v253_v58, 0.0  ;;  %v257_v7 = vmul.f32 %v235_v3, %v225_v0  ;;  %v256_v8 = vmul.f32 %v235_v3, %v224_v4  ;;  %v237_v18 = vperm.slane %v213_v10, 0 }
 0x137   :  { %v289_v12 = vsel %vm188_vm1, %v255_v5, 0.0  ;;  %v258_v20 = vmul.f32 %v236_v14, %v226_v13  ;;  %v259_v23 = vmul.f32 %v236_v14, %v227_v19  ;;  %v229_v24 = vunpack.c.h.bf16 %v93_v9 }
 0x138   :  { %v295_v16 = vsel %vm188_vm1, %v257_v7, 0.0  ;;  %v292_v17 = vsel %vm188_vm1, %v256_v8, 0.0  ;;  %v260_v22 = vmul.f32 %v237_v18, %v228_v15  ;;  %v326_v38 = vlaneseq }
 0x139   :  { %v298_v21 = vsel %vm188_vm1, %v258_v20, 0.0  ;;  %v301_v26 = vsel %vm188_vm1, %v259_v23, 0.0  ;;  %v261_v27 = vmul.f32 %v237_v18, %v229_v24 }
 0x13a   :  { %v304_v25 = vsel %vm188_vm1, %v260_v22, 0.0  ;;  %v2601_v39 = vand.u32 127, %v326_v38 }
 0x13b   :  { %266 = vadd.xlane.f32.xlu0 %v265_v48  ;;  %v307_v28 = vsel %vm188_vm1, %v261_v27, 0.0 }
 0x13c   :  { %v2606_v41 = vadd.s32 4294967288, %v2601_v39 }
 0x13d   :  { %278 = vadd.xlane.f32.xlu2 %v277_v52  ;;  %272 = vadd.xlane.f32.xlu1 %v271_v53 }
 0x143   :  { %281 = vadd.xlane.f32.xlu0 %v280_v62 }
 0x145   :  { %287 = vadd.xlane.f32.xlu2 %v286_v1  ;;  %284 = vadd.xlane.f32.xlu1 %v283_v2 }
 0x14b   :  { %290 = vadd.xlane.f32.xlu0 %v289_v12 }
 0x14d   :  { %296 = vadd.xlane.f32.xlu2 %v295_v16  ;;  %293 = vadd.xlane.f32.xlu1 %v292_v17  ;;  %v2442_v16 = vmov 0  }
 0x14e   :  { %2201 = vset.pattern.permute.xlu1 %v2442_v16  ;;  %2200 = vset.pattern.permute.xlu0 %v2442_v16 }
 0x14f   :  { %2199 = vset.pattern.permute.xlu2 %v2442_v16 }
 0x153   :  { %299 = vadd.xlane.f32.xlu0 %v298_v21 }
 0x155   :  { %305 = vadd.xlane.f32.xlu2 %v304_v25  ;;  %302 = vadd.xlane.f32.xlu1 %v301_v26 }
 0x15b   :  { %308 = vadd.xlane.f32.xlu0 %v307_v28 }
 0x1a6   :  { %v2583_v29 = vpop.xlane.xlu0 %263 }
 0x1a7   :  { %v328_v48 = vperm.slane %v2583_v29, %v2601_v39 }
 0x1a8   :  { %v2585_v30 = vpop.xlane.xlu2 %275  ;;  %v2587_v31 = vpop.xlane.xlu1 %269 }
 0x1a9   :  { %v333_v45 = vperm.slane %v2587_v31, %v2601_v39  ;;  %v336_v51 = vperm.slane %v2585_v30, %v2601_v39 }
 0x1ae   :  { %v2589_v32 = vpop.xlane.xlu0 %266 }
 0x1af   :  { %v330_v46 = vperm.slane %v2589_v32, %v2606_v41 }
 0x1b0   :  { %v2591_v33 = vpop.xlane.xlu2 %278  ;;  %v2593_v34 = vpop.xlane.xlu1 %272 }
 0x1b1   :  { %v334_v43 = vperm.slane %v2593_v34, %v2606_v41  ;;  %v337_v47 = vperm.slane %v2591_v33, %v2606_v41  ;;  %v332_v54 = vsel %vm331_vm2, %v330_v46, %v328_v48 }
 0x1b3   :  { %v335_v49 = vsel %vm331_vm2, %v334_v43, %v333_v45  ;;  %v338_v56 = vsel %vm331_vm2, %v337_v47, %v336_v51 }
 0x1b4   :  { %v355_v57 = vsel %vm354_vm3, %v335_v49, %v332_v54 }
 0x1b5   :  { %v357_v1 = vsel %vm356_vm4, %v338_v56, %v355_v57 }
 0x1b6   :  { %v2595_v35 = vpop.xlane.xlu0 %281 }
 0x1b7   :  { %v339_v55 = vperm.slane %v2595_v35, %v2601_v39 }
 0x1b8   :  { %v2597_v36 = vpop.xlane.xlu2 %287  ;;  %v2599_v37 = vpop.xlane.xlu1 %284 }
 0x1b9   :  { %v340_v50 = vperm.slane %v2599_v37, %v2606_v41  ;;  %v342_v58 = vperm.slane %v2597_v36, %v2601_v39 }
 0x1bb   :  { %v341_v60 = vsel %vm331_vm2, %v340_v50, %v339_v55 }
 0x1bc   :  { %v359_v2 = vsel %vm358_vm5, %v341_v60, %v357_v1 }
 0x1be   :  { %v2603_v40 = vpop.xlane.xlu0 %290 }
 0x1bf   :  { %v343_v52 = vperm.slane %v2603_v40, %v2606_v41 }
 0x1c0   :  { %v2608_v42 = vpop.xlane.xlu1 %293  ;;  %v2612_v44 = vpop.xlane.xlu2 %296 }
 0x1c1   :  { %v346_v61 = vperm.slane %v2612_v44, %v2606_v41  ;;  %v345_v62 = vperm.slane %v2608_v42, %v2601_v39  ;;  %v344_v63 = vsel %vm331_vm2, %v343_v52, %v342_v58 }
 0x1c2   :  { %v361_v6 = vsel %vm360_vm6, %v344_v63, %v359_v2 }
 0x1c3   :  { %v347_v5 = vsel %vm331_vm2, %v346_v61, %v345_v62 }
 0x1c4   :  { %v363_v11 = vsel %vm362_vm7, %v347_v5, %v361_v6 }
 0x1c6   :  { %v2629_v53 = vpop.xlane.xlu0 %299 }
 0x1c7   :  { %v348_v3 = vperm.slane %v2629_v53, %v2601_v39 }
 0x1c8   :  { %v2638_v59 = vpop.xlane.xlu1 %302  ;;  %v2652_v4 = vpop.xlane.xlu2 %305 }
 0x1c9   :  { %v349_v0 = vperm.slane %v2638_v59, %v2606_v41  ;;  %v351_v9 = vperm.slane %v2652_v4, %v2601_v39 }
 0x1cb   :  { %v350_v8 = vsel %vm331_vm2, %v349_v0, %v348_v3 }
 0x1cc   :  { %v365_v13 = vsel %vm364_vm8, %v350_v8, %v363_v11 }
 0x1ce   :  { %v2656_v7 = vpop.xlane.xlu0 %308 }
 0x1cf   :  { %v352_v10 = vperm.slane %v2656_v7, %v2606_v41 }
 0x1d1   :  { %v353_v12 = vsel %vm331_vm2, %v352_v10, %v351_v9 }
 0x1d2   :  { %v367_v14 = vsel %vm366_vm9, %v353_v12, %v365_v13 }
 0x1d3   :  { %v370_v15 = vsel %vm369_vm10, %v367_v14, -inf }
 0x1d4   :  { %371 = vmax.xlane.f32.xlu1 %v370_v15 }
 0x247   :  { %v2668_v17 = vpop.xlane.xlu1 %371 }
 0x248   :  { %v375_v18 = vperm.slane %v2668_v17, 1  ;;  %v374_v19 = vperm.slane %v2668_v17, 0  ;;  %v376_v21 = vperm.slane %v2668_v17, 2  ;;  %v378_v24 = vperm.slane %v2668_v17, 4 }
 0x249   :  { %v379_v45 = vperm.slane %v2668_v17, 5  ;;  %v381_v52 = vperm.slane %v2668_v17, 7  ;;  %v380_v60 = vperm.slane %v2668_v17, 6 }
 0x24a   :  { %v392_v20 = vsub.f32 %v2587_v31, %v375_v18  ;;  %v391_v22 = vsub.f32 %v2589_v32, %v374_v19  ;;  %v390_v23 = vsub.f32 %v2583_v29, %v374_v19  ;;  %v395_v28 = vsub.f32 %v2591_v33, %v376_v21 }
 0x24b   :  { %v398_v38 = vsub.f32 %v2597_v36, %v378_v24  ;;  %v393_v31 = vsub.f32 %v2593_v34, %v375_v18  ;;  %v377_v32 = vperm.slane %v2668_v17, 3  ;;  %v401_v36 = vsub.f32 %v2612_v44, %v379_v45 }
 0x24c   :  { %v410_v25 = vmul.f32 1.442695, %v392_v20  ;;  %v408_v26 = vmul.f32 1.442695, %v391_v22  ;;  %v406_v27 = vmul.f32 1.442695, %v390_v23  ;;  %v394_v49 = vsub.f32 %v2585_v30, %v376_v21 }
 0x24d   :  { %v416_v43 = vmul.f32 1.442695, %v395_v28  ;;  %v422_v29 = vmul.f32 1.442695, %v398_v38  ;;  %v412_v47 = vmul.f32 1.442695, %v393_v31  ;;  %v397_v34 = vsub.f32 %v2599_v37, %v377_v32 }
 0x24e   :  { %2208 = vpow2.f32 %v410_v25  ;;  %v428_v51 = vmul.f32 1.442695, %v401_v36  ;;  %v414_v55 = vmul.f32 1.442695, %v394_v49  ;;  %v400_v44 = vsub.f32 %v2608_v42, %v379_v45 }
 0x24f   :  { %2210 = vpow2.f32 %v408_v26  ;;  %v420_v50 = vmul.f32 1.442695, %v397_v34  ;;  %v404_v30 = vsub.f32 %v2652_v4, %v381_v52  ;;  %v396_v57 = vsub.f32 %v2595_v35, %v377_v32 }
 0x250   :  { %2212 = vpow2.f32 %v406_v27  ;;  %v426_v58 = vmul.f32 1.442695, %v400_v44  ;;  %v403_v1 = vsub.f32 %v2638_v59, %v380_v60  ;;  %v399_v35 = vsub.f32 %v2603_v40, %v378_v24 }
 0x251   :  { %2214 = vpow2.f32 %v416_v43  ;;  %v434_v61 = vmul.f32 1.442695, %v404_v30  ;;  %v418_v63 = vmul.f32 1.442695, %v396_v57  ;;  %v402_v59 = vsub.f32 %v2629_v53, %v380_v60 }
 0x252   :  { %2216 = vpow2.f32 %v422_v29  ;;  %v432_v2 = vmul.f32 1.442695, %v403_v1  ;;  %v424_v4 = vmul.f32 1.442695, %v399_v35  ;;  %v405_v10 = vsub.f32 %v2656_v7, %v381_v52 }
 0x253   :  { %2218 = vpow2.f32 %v412_v47  ;;  %v430_v40 = vmul.f32 1.442695, %v402_v59 }
 0x254   :  { %v2682_v46 = vpop.eup %2208  ;;  %2220 = vpow2.f32 %v420_v50  ;;  %v436_v11 = vmul.f32 1.442695, %v405_v10 }
 0x255   :  { %v2684_v48 = vpop.eup %2210  ;;  %461 = vperm.xlu1 %2201, %v2682_v46   ;;  %2222 = vpow2.f32 %v428_v51 }
 0x256   :  { %v2687_v33 = vpop.eup %2212  ;;  %458 = vperm.xlu0 %2200, %v2684_v48   ;;  %2224 = vpow2.f32 %v414_v55 }
 0x257   :  { %455 = vperm.xlu2 %2199, %v2687_v33   ;;  %v2695_v54 = vpop.eup %2214  ;;  %2226 = vpow2.f32 %v426_v58 }
 0x258   :  { %v2697_v56 = vpop.eup %2216  ;;  %2228 = vpow2.f32 %v434_v61 }
 0x259   :  { %v2700_v37 = vpop.eup %2218  ;;  %2230 = vpow2.f32 %v418_v63 }
 0x25a   :  { %v2708_v62 = vpop.eup %2220  ;;  %2232 = vpow2.f32 %v432_v2 }
 0x25b   :  { %v2710_v0 = vpop.eup %2222  ;;  %2234 = vpow2.f32 %v424_v4 }
 0x25c   :  { %v2713_v42 = vpop.eup %2224  ;;  %2236 = vpow2.f32 %v430_v40 }
 0x25d   :  { %470 = vperm.xlu1 %2201, %v2695_v54   ;;  %v2719_v3 = vpop.eup %2226  ;;  %2238 = vpow2.f32 %v436_v11 }
 0x25e   :  { %479 = vperm.xlu0 %2200, %v2697_v56   ;;  %v2721_v5 = vpop.eup %2228 }
 0x25f   :  { %464 = vperm.xlu2 %2199, %v2700_v37   ;;  %v2724_v6 = vpop.eup %2230 }
 0x260   :  { %v2729_v8 = vpop.eup %2232 }
 0x261   :  { %v2732_v9 = vpop.eup %2234 }
 0x262   :  { %v2736_v12 = vpop.eup %2236 }
 0x263   :  { %v2739_v13 = vpop.eup %2238 }
 0x265   :  { %476 = vperm.xlu1 %2201, %v2708_v62  }
 0x266   :  { %488 = vperm.xlu0 %2200, %v2710_v0  }
 0x267   :  { %467 = vperm.xlu2 %2199, %v2713_v42  }
 0x26d   :  { %485 = vperm.xlu1 %2201, %v2719_v3  }
 0x26e   :  { %497 = vperm.xlu0 %2200, %v2721_v5  }
 0x26f   :  { %473 = vperm.xlu2 %2199, %v2724_v6  }
 0x275   :  { %494 = vperm.xlu1 %2201, %v2729_v8  }
 0x277   :  { %482 = vperm.xlu2 %2199, %v2732_v9  }
 0x27f   :  { %491 = vperm.xlu2 %2199, %v2736_v12  }
 0x287   :  { %500 = vperm.xlu2 %2199, %v2739_v13  }
 0x2b1   :  { %v456_v53 = vpop.permute.xlu2 %455 }
 0x2b2   :  { %v502_v27 = vperm.slane %v456_v53, %v2601_v39 }
 0x2b9   :  { %v465_v14 = vpop.permute.xlu2 %464 }
 0x2ba   :  { %v506_v28 = vperm.slane %v465_v14, %v2606_v41 }
 0x2c1   :  { %v468_v15 = vpop.permute.xlu2 %467 }
 0x2c2   :  { %v508_v43 = vperm.slane %v468_v15, %v2601_v39 }
 0x2c7   :  { %v462_v16 = vpop.permute.xlu1 %461 }
 0x2c8   :  { %v459_v17 = vpop.permute.xlu0 %458  ;;  %v505_v24 = vperm.slane %v462_v16, %v2601_v39 }
 0x2c9   :  { %v474_v18 = vpop.permute.xlu2 %473  ;;  %v503_v25 = vperm.slane %v459_v17, %v2606_v41 }
 0x2ca   :  { %v507_v32 = vsel %vm331_vm2, %v506_v28, %v505_v24  ;;  %v511_v45 = vperm.slane %v474_v18, %v2601_v39 }
 0x2cb   :  { %v504_v29 = vsel %vm331_vm2, %v503_v25, %v502_v27 }
 0x2cc   :  { %v526_v49 = vsel %vm354_vm3, %v507_v32, %v504_v29  ;;  %v2171_v32 = vld [vmem:[#allocation2 + $0x28] sm:$0xff] }
 0x2cd   :  { %815 = vmatpush.bf16.msra.mxu0 %v2171_v32 }
 0x2cf   :  { %v471_v19 = vpop.permute.xlu1 %470 }
 0x2d0   :  { %v480_v20 = vpop.permute.xlu0 %479  ;;  %v509_v26 = vperm.slane %v471_v19, %v2606_v41 }
 0x2d1   :  { %v483_v22 = vpop.permute.xlu2 %482  ;;  %v514_v50 = vperm.slane %v480_v20, %v2601_v39 }
 0x2d2   :  { %v510_v47 = vsel %vm331_vm2, %v509_v26, %v508_v43  ;;  %v515_v51 = vperm.slane %v483_v22, %v2606_v41  ;;  %v2188_v43 = vld [vmem:[%s3422_s7] sm:$0xff] }
 0x2d3   :  { %v527_v44 = vsel %vm356_vm4, %v510_v47, %v526_v49  ;;  %982 = vmatpush.bf16.msrb.mxu0 %v2188_v43 }
 0x2d4   :  { %v516_v1 = vsel %vm331_vm2, %v515_v51, %v514_v50 }
 0x2d7   :  { %v477_v7 = vpop.permute.xlu1 %476 }
 0x2d8   :  { %v489_v23 = vpop.permute.xlu0 %488  ;;  %v512_v38 = vperm.slane %v477_v7, %v2606_v41 }
 0x2d9   :  { %v492_v21 = vpop.permute.xlu2 %491  ;;  %v518_v30 = vperm.slane %v489_v23, %v2606_v41 }
 0x2da   :  { %v513_v34 = vsel %vm331_vm2, %v512_v38, %v511_v45  ;;  %v520_v35 = vperm.slane %v492_v21, %v2601_v39 }
 0x2db   :  { %v528_v57 = vsel %vm358_vm5, %v513_v34, %v527_v44 }
 0x2dc   :  { %v529_v4 = vsel %vm360_vm6, %v516_v1, %v528_v57  ;;  %v2174_v57 = vld [vmem:[#allocation5] sm:$0xff]  ;;  %v2823_v1 = vld [vmem:[#allocation5 + $0x10] sm:$0xff] }
 0x2df   :  { %v486_v31 = vpop.permute.xlu1 %485 }
 0x2e0   :  { %v517_v36 = vperm.slane %v486_v31, %v2601_v39  ;;  %v498_v52 = vpop.permute.xlu0 %497 }
 0x2e1   :  { %v501_v55 = vpop.permute.xlu2 %500  ;;  %v523_v60 = vperm.slane %v498_v52, %v2601_v39 }
 0x2e2   :  { %v519_v58 = vsel %vm331_vm2, %v518_v30, %v517_v36  ;;  %v524_v61 = vperm.slane %v501_v55, %v2606_v41 }
 0x2e3   :  { %v530_v40 = vsel %vm362_vm7, %v519_v58, %v529_v4  ;;  %v2177_v58 = vld [vmem:[#allocation5 + $0x18] sm:$0xff] }
 0x2e4   :  { %v525_v10 = vsel %vm331_vm2, %v524_v61, %v523_v60  ;;  %v2811_v60 = vld [vmem:[#allocation5 + $0x20] sm:$0xff]  ;;  %v2815_v61 = vld [vmem:[#allocation5 + $0x8] sm:$0xff] }
 0x2e7   :  { %v495_v63 = vpop.permute.xlu1 %494 }
 0x2e8   :  { %v521_v2 = vperm.slane %v495_v63, %v2606_v41  ;;  %v2819_v63 = vld [vmem:[#allocation5 + $0x28] sm:$0xff] }
 0x2ea   :  { %v522_v59 = vsel %vm331_vm2, %v521_v2, %v520_v35  ;;  %v2180_v35 = vld [vmem:[#allocation5 + $0x30] sm:$0xff]  ;;  %v2181_v2 = vld [vmem:[#allocation5 + $0x38] sm:$0xff] }
 0x2eb   :  { %v531_v11 = vsel %vm364_vm8, %v522_v59, %v530_v40 }
 0x2ec   :  { %v532_v53 = vsel %vm366_vm9, %v525_v10, %v531_v11 }
 0x2ed   :  { %v534_v14 = vsel %vm369_vm10, %v532_v53, 0.0  ;;  %v2836_v53 = vld [vmem:[%s3423_s8] ss:$0 sm:$0xff] }
 0x2ee   :  { %535 = vadd.xlane.f32.xlu1 %v534_v14 }
 0x361   :  { %v536_v15 = vpop.xlane.xlu1 %535 }
 0x362   :  { %2240 = vrcp.f32 %v536_v15 }
 0x368   :  { %v2774_v16 = vpop.eup %2240 }
 0x369   :  { %v543_v17 = vperm.slane %v2774_v16, 4  ;;  %v544_v18 = vperm.slane %v2774_v16, 5 }
 0x36b   :  { %v2779_v19 = vmul.f32 %v2732_v9, %v543_v17  ;;  %v2782_v20 = vmul.f32 %v2697_v56, %v543_v17  ;;  %v2789_v23 = vmul.f32 %v2710_v0, %v544_v18  ;;  %v2792_v21 = vmul.f32 %v2719_v3, %v544_v18  ;;  %v2170_v3 = vld [vmem:[#allocation2 + $0x20] sm:$0xff] }
 0x36c   :  { %776 = vmatpush.bf16.msrb.mxu1 %v2170_v3 }
 0x36d   :  { %v580_v22 = vpack.c.bf16 %v2779_v19, %v2779_v19  ;;  %v579_v7 = vpack.c.bf16 %v2782_v20, %v2782_v20  ;;  %v582_v56 = vpack.c.bf16 %v2789_v23, %v2789_v23  ;;  %v581_v27 = vpack.c.bf16 %v2792_v21, %v2792_v21 }
 0x36f   :  { %v746_v24 = vunpack.c.l.b16 %v580_v22  ;;  %v745_v25 = vunpack.c.l.b16 %v579_v7  ;;  %v785_v28 = vunpack.c.l.b16 %v582_v56  ;;  %v784_v38 = vunpack.c.l.b16 %v581_v27  ;;  %v1040_v22 = vld [vmem:[%s3424_s9] sm:$0x1] }
 0x370   :  { %2190 = vmatpush.bf16.msra.mxu1 %v2188_v43 }
 0x371   :  { %v2066_v26 = vunpack.i.l.s16 %v746_v24  ;;  %v2065_v9 = vunpack.i.l.s16 %v745_v25  ;;  %v2073_v31 = vunpack.i.l.s16 %v785_v28  ;;  %v2072_v0 = vunpack.i.l.s16 %v784_v38 }
 0x372   :  { %v1041_v24 = vunpack.c.l.bf16 %v1040_v22 }
 0x373   :  { %754 = vperm.xlu2 %2199, %v2066_v26   ;;  %751 = vperm.xlu0 %2200, %v2065_v9  }
 0x374   :  { %v2844_v9 = vperm.slane %v1041_v24, 0 }
 0x37b   :  { %793 = vperm.xlu2 %2199, %v2073_v31   ;;  %790 = vperm.xlu0 %2200, %v2072_v0  }
 0x3cd   :  { %v755_v29 = vpop.permute.xlu2 %754 }
 0x3ce   :  { %v757_v47 = vperm.slane %v755_v29, %v2606_v41 }
 0x3d5   :  { %v794_v50 = vpop.permute.xlu2 %793 }
 0x3d6   :  { %v796_v52 = vperm.slane %v794_v50, %v2606_v41 }
 0x3e5   :  { %v752_v45 = vpop.permute.xlu0 %751 }
 0x3e6   :  { %v756_v34 = vperm.slane %v752_v45, %v2601_v39 }
 0x3e8   :  { %v758_v36 = vsel %vm331_vm2, %v757_v47, %v756_v34 }
 0x3e9   :  { %v759_v49 = vpack.c.b16 %v758_v36, %v758_v36 }
 0x3eb   :  { %2071 = vmatmul.msk.bf16.vlgmr.msrb.gmra.mxu1 %vm369_vm10, %v759_v49 }
 0x3ed   :  { %v791_v51 = vpop.permute.xlu0 %790 }
 0x3ee   :  { %v795_v55 = vperm.slane %v791_v51, %v2601_v39 }
 0x3f0   :  { %v797_v44 = vsel %vm331_vm2, %v796_v52, %v795_v55 }
 0x3f1   :  { %v798_v30 = vpack.c.b16 %v797_v44, %v797_v44 }
 0x3f3   :  { %2078 = vmatmul.msk.bf16.vlgmr.msra.gmra.mxu0 %vm369_vm10, %v798_v30 }
 0x3f4   :  { %1400 = vmatpush.bf16.msra.mxu0 %v2174_v57 }
 0x3fb   :  { %2132 = vmatmul.msk.bf16.vlgmr.msra.gmra.mxu1 %vm369_vm10, %v2177_v58 }
 0x403   :  { %2129 = vmatmul.msk.bf16.vlgmr.msrb.gmra.mxu0 %vm369_vm10, %v2174_v57 }
 0x404   :  { %1502 = vmatpush.bf16.msrb.mxu0 %v2177_v58 }
 0x40b   :  { %2133 = vmatmul.msk.bf16.gmra.mxu1 %vm369_vm10, %v2811_v60 }
 0x413   :  { %2130 = vmatmul.msk.bf16.gmra.mxu0 %vm369_vm10, %v2815_v61 }
 0x41b   :  { %2134 = vmatmul.msk.bf16.gmra.mxu1 %vm369_vm10, %v2819_v63 }
 0x423   :  { %2131 = vmatmul.msk.bf16.gmra.mxu0 %vm369_vm10, %v2823_v1 }
 0x42b   :  { %2135 = vmatmul.msk.bf16.gmra.mxu1 %vm369_vm10, %v2180_v35 }
 0x43b   :  { %2136 = vmatmul.msk.bf16.gmra.mxu1 %vm369_vm10, %v2181_v2 }
 0x468   :  { %v2829_v4 = vpop.f32.mrf.mxu1 }
 0x470   :  { %v780_v59 = vpop.f32.mrf.mxu1  ;;  %v2831_v40 = vpop.f32.mrf.mxu0 }
 0x478   :  { %v819_v10 = vpop.f32.mrf.mxu0  ;;  %v999_v11 = vpop.f32.mrf.mxu1 }
 0x479   :  { %v1000_v7 = vadd.f32 %v2836_v53, %v999_v11 }
 0x480   :  { %v984_v14 = vpop.f32.mrf.mxu0  ;;  %v1001_v15 = vpop.f32.mrf.mxu1 }
 0x481   :  { %v985_v17 = vadd.f32 %v2836_v53, %v984_v14  ;;  %v1002_v18 = vadd.f32 %v2836_v53, %v1001_v15 }
 0x483   :  { %2242 = vtanh.f32 %v985_v17 }
 0x484   :  { %2244 = vtanh.f32 %v1002_v18 }
 0x485   :  { %2246 = vtanh.f32 %v1000_v7 }
 0x488   :  { %v986_v25 = vpop.f32.mrf.mxu0  ;;  %v1004_v26 = vpop.f32.mrf.mxu1 }
 0x489   :  { %v2243_v56 = vpop.eup %2242  ;;  %v987_v27 = vadd.f32 %v2836_v53, %v986_v25  ;;  %v1005_v31 = vadd.f32 %v2836_v53, %v1004_v26 }
 0x48a   :  { %v2245_v28 = vpop.eup %2244  ;;  %v1043_v38 = vmul.f32 %v2243_v56, %v2844_v9 }
 0x48b   :  { %2248 = vtanh.f32 %v987_v27  ;;  %v1050_v0 = vmul.f32 %v2245_v28, %v2844_v9  ;;  %v2247_v43 = vpop.eup %2246 }
 0x48c   :  { %v1059_v3 = vsel %vm188_vm1, %v1043_v38, 0.0  ;;  %2250 = vtanh.f32 %v1005_v31  ;;  %v1049_v47 = vmul.f32 %v2247_v43, %v2844_v9 }
 0x48d   :  { %v1080_v32 = vsel %vm188_vm1, %v1050_v0, 0.0  ;;  %1060 = vadd.xlane.f32.xlu0 %v1059_v3 }
 0x48e   :  { %1081 = vadd.xlane.f32.xlu1 %v1080_v32  ;;  %v1077_v52 = vsel %vm188_vm1, %v1049_v47, 0.0 }
 0x490   :  { %v989_v29 = vpop.f32.mrf.mxu0  ;;  %v1006_v45 = vpop.f32.mrf.mxu1 }
 0x491   :  { %v2249_v34 = vpop.eup %2248  ;;  %v990_v36 = vadd.f32 %v2836_v53, %v989_v29  ;;  %v1007_v49 = vadd.f32 %v2836_v53, %v1006_v45 }
 0x492   :  { %v1044_v50 = vmul.f32 %v2249_v34, %v2844_v9  ;;  %v2251_v55 = vpop.eup %2250 }
 0x493   :  { %2252 = vtanh.f32 %v990_v36  ;;  %v1051_v57 = vmul.f32 %v2251_v55, %v2844_v9 }
 0x494   :  { %2254 = vtanh.f32 %v1007_v49  ;;  %v1062_v51 = vsel %vm188_vm1, %v1044_v50, 0.0 }
 0x495   :  { %1063 = vadd.xlane.f32.xlu2 %v1062_v51  ;;  %1078 = vadd.xlane.f32.xlu0 %v1077_v52  ;;  %v1083_v14 = vsel %vm188_vm1, %v1051_v57, 0.0 }
 0x498   :  { %v991_v44 = vpop.f32.mrf.mxu0  ;;  %v1009_v30 = vpop.f32.mrf.mxu1 }
 0x499   :  { %v2253_v58 = vpop.eup %2252  ;;  %v992_v35 = vadd.f32 %v2836_v53, %v991_v44  ;;  %v1010_v25 = vadd.f32 %v2836_v53, %v1009_v30 }
 0x49a   :  { %v2255_v2 = vpop.eup %2254  ;;  %v1045_v59 = vmul.f32 %v2253_v58, %v2844_v9 }
 0x49b   :  { %2256 = vtanh.f32 %v992_v35  ;;  %v1052_v10 = vmul.f32 %v2255_v2, %v2844_v9 }
 0x49c   :  { %v1065_v11 = vsel %vm188_vm1, %v1045_v59, 0.0 }
 0x49d   :  { %1066 = vadd.xlane.f32.xlu1 %v1065_v11  ;;  %1084 = vadd.xlane.f32.xlu2 %v1083_v14  ;;  %v1086_v15 = vsel %vm188_vm1, %v1052_v10, 0.0 }
 0x49e   :  { %1087 = vadd.xlane.f32.xlu0 %v1086_v15 }
 0x4a0   :  { %v994_v17 = vpop.f32.mrf.mxu0  ;;  %v1011_v18 = vpop.f32.mrf.mxu1 }
 0x4a1   :  { %v2257_v22 = vpop.eup %2256  ;;  %v995_v7 = vadd.f32 %v2836_v53, %v994_v17  ;;  %v1012_v3 = vadd.f32 %v2836_v53, %v1011_v18 }
 0x4a2   :  { %v1046_v24 = vmul.f32 %v2257_v22, %v2844_v9  ;;  %v540_v22 = vperm.slane %v2774_v16, 1 }
 0x4a3   :  { %2258 = vtanh.f32 %v995_v7 }
 0x4a4   :  { %v1068_v26 = vsel %vm188_vm1, %v1046_v24, 0.0  ;;  %2260 = vtanh.f32 %v1010_v25  ;;  %v2893_v7 = vmul.f32 %v2682_v46, %v540_v22 }
 0x4a5   :  { %1069 = vadd.xlane.f32.xlu1 %v1068_v26  ;;  %v539_v26 = vperm.slane %v2774_v16, 0 }
 0x4a7   :  { %v2906_v46 = vmul.f32 %v2684_v48, %v539_v26 }
 0x4a8   :  { %v996_v56 = vpop.f32.mrf.mxu0  ;;  %v1014_v27 = vpop.f32.mrf.mxu1 }
 0x4a9   :  { %v2259_v28 = vpop.eup %2258  ;;  %v997_v38 = vadd.f32 %v2836_v53, %v996_v56  ;;  %v1015_v31 = vadd.f32 %v2836_v53, %v1014_v27  ;;  %v573_v56 = vpack.c.bf16 %v2893_v7, %v2893_v7  ;;  %v2901_v27 = vmul.f32 %v2687_v33, %v539_v26 }
 0x4aa   :  { %v1047_v0 = vmul.f32 %v2259_v28, %v2844_v9  ;;  %v2261_v32 = vpop.eup %2260 }
 0x4ab   :  { %2262 = vtanh.f32 %v997_v38  ;;  %v1053_v45 = vmul.f32 %v2261_v32, %v2844_v9  ;;  %v628_v28 = vunpack.c.l.b16 %v573_v56  ;;  %v571_v38 = vpack.c.bf16 %v2901_v27, %v2901_v27 }
 0x4ac   :  { %2264 = vtanh.f32 %v1015_v31  ;;  %v1071_v43 = vsel %vm188_vm1, %v1047_v0, 0.0  ;;  %v572_v0 = vpack.c.bf16 %v2906_v46, %v2906_v46 }
 0x4ad   :  { %1072 = vadd.xlane.f32.xlu1 %v1071_v43  ;;  %2266 = vtanh.f32 %v1012_v3  ;;  %v1089_v51 = vsel %vm188_vm1, %v1053_v45, 0.0  ;;  %v2044_v31 = vunpack.i.l.s16 %v628_v28 }
 0x4ae   :  { %v590_v43 = vunpack.c.l.b16 %v572_v0 }
 0x4b0   :  { %v1016_v29 = vpop.f32.mrf.mxu1  ;;  %v2038_v32 = vunpack.i.l.s16 %v590_v43 }
 0x4b1   :  { %v2263_v47 = vpop.eup %2262  ;;  %v1017_v34 = vadd.f32 %v2836_v53, %v1016_v29 }
 0x4b2   :  { %v2265_v36 = vpop.eup %2264  ;;  %v1048_v49 = vmul.f32 %v2263_v47, %v2844_v9 }
 0x4b3   :  { %2268 = vtanh.f32 %v1017_v34  ;;  %v1055_v50 = vmul.f32 %v2265_v36, %v2844_v9  ;;  %v2267_v55 = vpop.eup %2266 }
 0x4b4   :  { %v1074_v52 = vsel %vm188_vm1, %v1048_v49, 0.0  ;;  %v1054_v57 = vmul.f32 %v2267_v55, %v2844_v9 }
 0x4b5   :  { %1090 = vadd.xlane.f32.xlu1 %v1089_v51  ;;  %1075 = vadd.xlane.f32.xlu2 %v1074_v52  ;;  %v1095_v44 = vsel %vm188_vm1, %v1055_v50, 0.0 }
 0x4b6   :  { %1096 = vadd.xlane.f32.xlu0 %v1095_v44  ;;  %v1092_v10 = vsel %vm188_vm1, %v1054_v57, 0.0 }
 0x4b8   :  { %v1019_v30 = vpop.f32.mrf.mxu1 }
 0x4b9   :  { %v2269_v58 = vpop.eup %2268  ;;  %v1020_v35 = vadd.f32 %v2836_v53, %v1019_v30 }
 0x4ba   :  { %v1056_v2 = vmul.f32 %v2269_v58, %v2844_v9 }
 0x4bb   :  { %2270 = vtanh.f32 %v1020_v35 }
 0x4bc   :  { %v1098_v59 = vsel %vm188_vm1, %v1056_v2, 0.0 }
 0x4bd   :  { %1099 = vadd.xlane.f32.xlu1 %v1098_v59  ;;  %1093 = vadd.xlane.f32.xlu2 %v1092_v10  ;;  %v2166_v59 = vld [vmem:[#allocation2] sm:$0xff] }
 0x4be   :  { %620 = vmatpush.bf16.msra.mxu3 %v2166_v59 }
 0x4c0   :  { %v1021_v11 = vpop.f32.mrf.mxu1 }
 0x4c1   :  { %v2271_v14 = vpop.eup %2270  ;;  %v1022_v15 = vadd.f32 %v2836_v53, %v1021_v11 }
 0x4c2   :  { %v1057_v17 = vmul.f32 %v2271_v14, %v2844_v9 }
 0x4c3   :  { %2272 = vtanh.f32 %v1022_v15 }
 0x4c4   :  { %v1101_v18 = vsel %vm188_vm1, %v1057_v17, 0.0 }
 0x4c5   :  { %1102 = vadd.xlane.f32.xlu2 %v1101_v18 }
 0x4c9   :  { %v2273_v24 = vpop.eup %2272 }
 0x4ca   :  { %v1058_v25 = vmul.f32 %v2273_v24, %v2844_v9  ;;  %v589_v9 = vunpack.c.l.b16 %v571_v38 }
 0x4cc   :  { %v1104_v53 = vsel %vm188_vm1, %v1058_v25, 0.0  ;;  %v2037_v3 = vunpack.i.l.s16 %v589_v9 }
 0x4cd   :  { %1105 = vadd.xlane.f32.xlu0 %v1104_v53 }
 0x4d6   :  { %634 = vperm.xlu1 %2201, %v2044_v31  }
 0x4dd   :  { %595 = vperm.xlu2 %2199, %v2037_v3  }
 0x4e1   :  { %598 = vperm.xlu0 %2200, %v2038_v32  }
 0x500   :  { %v1061_v34 = vpop.xlane.xlu0 %1060 }
 0x501   :  { %v2910_v33 = vpop.xlane.xlu1 %1081  ;;  %v1123_v58 = vperm.slane %v1061_v34, %v2601_v39 }
 0x502   :  { %v1133_v24 = vperm.slane %v2910_v33, %v2606_v41 }
 0x508   :  { %v1064_v45 = vpop.xlane.xlu2 %1063  ;;  %v2918_v49 = vpop.xlane.xlu0 %1078 }
 0x509   :  { %v1124_v35 = vperm.slane %v1064_v45, %v2606_v41  ;;  %v1132_v15 = vperm.slane %v2918_v49, %v2601_v39 }
 0x50b   :  { %v1125_v14 = vsel %vm331_vm2, %v1124_v35, %v1123_v58  ;;  %v1134_v38 = vsel %vm331_vm2, %v1133_v24, %v1132_v15 }
 0x510   :  { %v1067_v29 = vpop.xlane.xlu1 %1066  ;;  %v2914_v48 = vpop.xlane.xlu2 %1084 }
 0x511   :  { %v2922_v52 = vpop.xlane.xlu0 %1087  ;;  %v1126_v55 = vperm.slane %v1067_v29, %v2601_v39  ;;  %v1135_v56 = vperm.slane %v2914_v48, %v2601_v39 }
 0x512   :  { %v1136_v28 = vperm.slane %v2922_v52, %v2606_v41 }
 0x514   :  { %v1137_v43 = vsel %vm331_vm2, %v1136_v28, %v1135_v56 }
 0x518   :  { %v2912_v47 = vpop.xlane.xlu1 %1069 }
 0x519   :  { %v1127_v44 = vperm.slane %v2912_v47, %v2606_v41 }
 0x51b   :  { %v1128_v10 = vsel %vm331_vm2, %v1127_v44, %v1126_v55 }
 0x51c   :  { %v1147_v17 = vsel %vm354_vm3, %v1128_v10, %v1125_v14 }
 0x520   :  { %v2916_v36 = vpop.xlane.xlu1 %1072 }
 0x521   :  { %v1129_v30 = vperm.slane %v2916_v36, %v2601_v39 }
 0x528   :  { %v1076_v50 = vpop.xlane.xlu2 %1075  ;;  %v2920_v51 = vpop.xlane.xlu1 %1090 }
 0x529   :  { %v1130_v57 = vperm.slane %v1076_v50, %v2606_v41  ;;  %v2940_v18 = vpop.xlane.xlu0 %1096  ;;  %v1138_v31 = vperm.slane %v2920_v51, %v2601_v39 }
 0x52a   :  { %v1141_v32 = vperm.slane %v2940_v18, %v2601_v39 }
 0x52b   :  { %v1131_v11 = vsel %vm331_vm2, %v1130_v57, %v1129_v30 }
 0x52c   :  { %v1148_v25 = vsel %vm356_vm4, %v1131_v11, %v1147_v17 }
 0x52d   :  { %v1149_v0 = vsel %vm358_vm5, %v1134_v38, %v1148_v25 }
 0x52e   :  { %v1150_v44 = vsel %vm360_vm6, %v1137_v43, %v1149_v0 }
 0x530   :  { %v2932_v2 = vpop.xlane.xlu2 %1093  ;;  %v2945_v26 = vpop.xlane.xlu1 %1099 }
 0x531   :  { %v1139_v53 = vperm.slane %v2932_v2, %v2606_v41  ;;  %v1142_v9 = vperm.slane %v2945_v26, %v2606_v41 }
 0x533   :  { %v1140_v3 = vsel %vm331_vm2, %v1139_v53, %v1138_v31  ;;  %v1143_v57 = vsel %vm331_vm2, %v1142_v9, %v1141_v32 }
 0x534   :  { %v1151_v58 = vsel %vm362_vm7, %v1140_v3, %v1150_v44 }
 0x535   :  { %v1152_v11 = vsel %vm364_vm8, %v1143_v57, %v1151_v58 }
 0x538   :  { %v2963_v55 = vpop.xlane.xlu2 %1102 }
 0x539   :  { %v1144_v35 = vperm.slane %v2963_v55, %v2601_v39 }
 0x540   :  { %v2966_v30 = vpop.xlane.xlu0 %1105  ;;  %v596_v17 = vpop.permute.xlu2 %595 }
 0x541   :  { %v1145_v59 = vperm.slane %v2966_v30, %v2606_v41  ;;  %v600_v25 = vperm.slane %v596_v17, %v2601_v39 }
 0x543   :  { %v1146_v10 = vsel %vm331_vm2, %v1145_v59, %v1144_v35 }
 0x544   :  { %v1153_v14 = vsel %vm366_vm9, %v1146_v10, %v1152_v11 }
 0x545   :  { %v1155_v15 = vsel %vm369_vm10, %v1153_v14, -inf }
 0x546   :  { %1156 = vmax.xlane.f32.xlu1 %v1155_v15 }
 0x548   :  { %v2982_v38 = vpop.permute.xlu1 %634 }
 0x553   :  { %v599_v24 = vpop.permute.xlu0 %598 }
 0x554   :  { %v601_v53 = vperm.slane %v599_v24, %v2606_v41 }
 0x556   :  { %v602_v56 = vsel %vm331_vm2, %v601_v53, %v600_v25 }
 0x557   :  { %v603_v28 = vpack.c.b16 %v602_v56, %v602_v56 }
 0x559   :  { %2043 = vmatmul.msk.bf16.vlgmr.msra.gmra.mxu3 %vm369_vm10, %v603_v28 }
 0x5b9   :  { %v2984_v31 = vpop.xlane.xlu1 %1156 }
 0x5ba   :  { %v1160_v9 = vperm.slane %v2984_v31, 1  ;;  %v1159_v0 = vperm.slane %v2984_v31, 0  ;;  %v1161_v44 = vperm.slane %v2984_v31, 2  ;;  %v1163_v15 = vperm.slane %v2984_v31, 4 }
 0x5bb   :  { %v1164_v56 = vperm.slane %v2984_v31, 5 }
 0x5bc   :  { %v1177_v3 = vsub.f32 %v1067_v29, %v1160_v9  ;;  %v1175_v43 = vsub.f32 %v1061_v34, %v1159_v0  ;;  %v1176_v32 = vsub.f32 %v1064_v45, %v1159_v0  ;;  %v1180_v59 = vsub.f32 %v1076_v50, %v1161_v44 }
 0x5bd   :  { %v1178_v10 = vsub.f32 %v2912_v47, %v1160_v9  ;;  %v1179_v11 = vsub.f32 %v2916_v36, %v1161_v44  ;;  %v1162_v29 = vperm.slane %v2984_v31, 3  ;;  %v1183_v47 = vsub.f32 %v2914_v48, %v1163_v15 }
 0x5be   :  { %v1195_v57 = vmul.f32 1.442695, %v1177_v3  ;;  %v1191_v58 = vmul.f32 1.442695, %v1175_v43  ;;  %v1193_v35 = vmul.f32 1.442695, %v1176_v32  ;;  %v1185_v43 = vsub.f32 %v2920_v51, %v1164_v56 }
 0x5bf   :  { %v1201_v14 = vmul.f32 1.442695, %v1180_v59  ;;  %v1197_v17 = vmul.f32 1.442695, %v1178_v10  ;;  %v1199_v34 = vmul.f32 1.442695, %v1179_v11  ;;  %v1181_v36 = vsub.f32 %v2918_v49, %v1162_v29 }
 0x5c0   :  { %2274 = vpow2.f32 %v1195_v57  ;;  %v1182_v25 = vsub.f32 %v2910_v33, %v1162_v29  ;;  %v1207_v53 = vmul.f32 1.442695, %v1183_v47  ;;  %v1186_v49 = vsub.f32 %v2932_v2, %v1164_v56 }
 0x5c1   :  { %2276 = vpow2.f32 %v1191_v58  ;;  %v1203_v28 = vmul.f32 1.442695, %v1181_v36  ;;  %v1184_v33 = vsub.f32 %v2922_v52, %v1163_v15  ;;  %v1166_v44 = vperm.slane %v2984_v31, 7 }
 0x5c2   :  { %2278 = vpow2.f32 %v1193_v35  ;;  %v1205_v0 = vmul.f32 1.442695, %v1182_v25  ;;  %v1213_v32 = vmul.f32 1.442695, %v1186_v49  ;;  %v1165_v58 = vperm.slane %v2984_v31, 6 }
 0x5c3   :  { %2280 = vpow2.f32 %v1201_v14  ;;  %v1209_v57 = vmul.f32 1.442695, %v1184_v33  ;;  %v1211_v59 = vmul.f32 1.442695, %v1185_v43  ;;  %v1189_v51 = vsub.f32 %v2963_v55, %v1166_v44 }
 0x5c4   :  { %2282 = vpow2.f32 %v1197_v17  ;;  %v1187_v52 = vsub.f32 %v2940_v18, %v1165_v58  ;;  %v1188_v31 = vsub.f32 %v2945_v26, %v1165_v58  ;;  %v3046_v18 = vmul.f32 %v2700_v37, %v540_v22 }
 0x5c5   :  { %2284 = vpow2.f32 %v1199_v34  ;;  %v1219_v14 = vmul.f32 1.442695, %v1189_v51  ;;  %v1190_v26 = vsub.f32 %v2966_v30, %v1166_v44  ;;  %v542_v43 = vperm.slane %v2774_v16, 3 }
 0x5c6   :  { %v2993_v45 = vpop.eup %2274  ;;  %2286 = vpow2.f32 %v1207_v53  ;;  %v1215_v15 = vmul.f32 1.442695, %v1187_v52  ;;  %v1217_v29 = vmul.f32 1.442695, %v1188_v31  ;;  %v574_v36 = vpack.c.bf16 %v3046_v18, %v3046_v18 }
 0x5c7   :  { %v2995_v24 = vpop.eup %2276  ;;  %1246 = vperm.xlu1 %2201, %v2993_v45   ;;  %2288 = vpow2.f32 %v1203_v28  ;;  %v1221_v25 = vmul.f32 1.442695, %v1190_v26  ;;  %v541_v53 = vperm.slane %v2774_v16, 2  ;;  %v3079_v58 = vmul.f32 %v2724_v6, %v542_v43 }
 0x5c8   :  { %v2998_v50 = vpop.eup %2278  ;;  %1240 = vperm.xlu0 %2200, %v2995_v24   ;;  %2290 = vpow2.f32 %v1205_v0  ;;  %v629_v37 = vunpack.c.l.b16 %v574_v36  ;;  %v545_v52 = vperm.slane %v2774_v16, 6  ;;  %v546_v36 = vperm.slane %v2774_v16, 7 }
 0x5c9   :  { %1243 = vperm.xlu2 %2199, %v2998_v50   ;;  %v3006_v9 = vpop.eup %2280  ;;  %2292 = vpow2.f32 %v1213_v32  ;;  %v3062_v22 = vmul.f32 %v2695_v54, %v541_v53  ;;  %v3065_v30 = vmul.f32 %v2713_v42, %v541_v53  ;;  %v3076_v54 = vmul.f32 %v2708_v62, %v542_v43 }
 0x5ca   :  { %v3008_v3 = vpop.eup %2282  ;;  %2294 = vpow2.f32 %v1209_v57  ;;  %v2045_v49 = vunpack.i.l.s16 %v629_v37  ;;  %v3087_v62 = vmul.f32 %v2729_v8, %v545_v52  ;;  %v3090_v6 = vmul.f32 %v2736_v12, %v545_v52 }
 0x5cb   :  { %v3011_v48 = vpop.eup %2284  ;;  %2296 = vpow2.f32 %v1211_v59  ;;  %v576_v33 = vpack.c.bf16 %v3062_v22, %v3062_v22  ;;  %v575_v32 = vpack.c.bf16 %v3065_v30, %v3065_v30  ;;  %v578_v51 = vpack.c.bf16 %v3076_v54, %v3076_v54 }
 0x5cc   :  { %v3020_v35 = vpop.eup %2286  ;;  %2298 = vpow2.f32 %v1219_v14  ;;  %v577_v14 = vpack.c.bf16 %v3079_v58, %v3079_v58  ;;  %v583_v53 = vpack.c.bf16 %v3090_v6, %v3090_v6  ;;  %v3098_v8 = vmul.f32 %v2739_v13, %v546_v36 }
 0x5cd   :  { %v3022_v10 = vpop.eup %2288  ;;  %2300 = vpow2.f32 %v1215_v15  ;;  %v668_v57 = vunpack.c.l.b16 %v576_v33  ;;  %v667_v42 = vunpack.c.l.b16 %v575_v32  ;;  %v707_v15 = vunpack.c.l.b16 %v578_v51 }
 0x5ce   :  { %v3025_v2 = vpop.eup %2290  ;;  %2302 = vpow2.f32 %v1217_v29  ;;  %v706_v29 = vunpack.c.l.b16 %v577_v14  ;;  %3432 = vst [vmem:[#allocation15_spill] sm:$0xff] %v3098_v8  ;;  %v3101_v12 = vmul.f32 %v2721_v5, %v546_v36  ;;  %v586_v43 = vpack.c.bf16 %v3098_v8, %v3098_v8 }
 0x5cf   :  { %1255 = vperm.xlu1 %2201, %v3006_v9   ;;  %v3034_v17 = vpop.eup %2292  ;;  %2304 = vpow2.f32 %v1221_v25  ;;  %v2052_v59 = vunpack.i.l.s16 %v668_v57  ;;  %v2051_v31 = vunpack.i.l.s16 %v667_v42  ;;  %v2059_v26 = vunpack.i.l.s16 %v707_v15 }
 0x5d0   :  { %1249 = vperm.xlu0 %2200, %v3008_v3   ;;  %v3036_v34 = vpop.eup %2294  ;;  %v2058_v25 = vunpack.i.l.s16 %v706_v29  ;;  %3433 = vst [vmem:[#allocation16_spill] sm:$0xff] %v3101_v12  ;;  %v585_v16 = vpack.c.bf16 %v3101_v12, %v3101_v12  ;;  %v863_v57 = vunpack.c.l.b16 %v586_v43  ;;  %v2167_v29 = vld [vmem:[#allocation2 + $0x8] sm:$0xff]  ;;  %v2169_v43 = vld [vmem:[#allocation2 + $0x18] sm:$0xff] }
 0x5d1   :  { %1252 = vperm.xlu2 %2199, %v3011_v48   ;;  %v3039_v55 = vpop.eup %2296  ;;  %659 = vmatpush.bf16.msrb.mxu3 %v2167_v29 }
 0x5d2   :  { %v3052_v56 = vpop.eup %2298  ;;  %v862_v42 = vunpack.c.l.b16 %v585_v16 }
 0x5d3   :  { %v3054_v28 = vpop.eup %2300 }
 0x5d4   :  { %v3057_v0 = vpop.eup %2302  ;;  %v2086_v51 = vunpack.i.l.s16 %v862_v42 }
 0x5d5   :  { %v3072_v44 = vpop.eup %2304  ;;  %737 = vmatpush.bf16.msra.mxu3 %v2169_v43 }
 0x5d7   :  { %1264 = vperm.xlu1 %2201, %v3020_v35  }
 0x5d8   :  { %1258 = vperm.xlu0 %2200, %v3022_v10  }
 0x5d9   :  { %1261 = vperm.xlu2 %2199, %v3025_v2  }
 0x5dc   :  { %v3032_v11 = vpop.f32.mrf.mxu3 }
 0x5df   :  { %1273 = vperm.xlu1 %2201, %v3034_v17  }
 0x5e0   :  { %1267 = vperm.xlu0 %2200, %v3036_v34  }
 0x5e1   :  { %1270 = vperm.xlu2 %2199, %v3039_v55  }
 0x5e4   :  { %v624_v47 = vpop.f32.mrf.mxu3 }
 0x5e5   :  { %v584_v47 = vpack.c.bf16 %v3087_v62, %v3087_v62 }
 0x5e7   :  { %1282 = vperm.xlu1 %2201, %v3052_v56   ;;  %v824_v37 = vunpack.c.l.b16 %v584_v47 }
 0x5e8   :  { %1276 = vperm.xlu0 %2200, %v3054_v28  }
 0x5e9   :  { %1279 = vperm.xlu2 %2199, %v3057_v0   ;;  %v2080_v33 = vunpack.i.l.s16 %v824_v37 }
 0x5ef   :  { %637 = vperm.xlu1 %2201, %v2045_v49   ;;  %v823_v49 = vunpack.c.l.b16 %v583_v53 }
 0x5f0   :  { %1285 = vperm.xlu0 %2200, %v3072_v44  }
 0x5f1   :  { %v2079_v32 = vunpack.i.l.s16 %v823_v49 }
 0x5f7   :  { %676 = vperm.xlu1 %2201, %v2052_v59   ;;  %v2087_v59 = vunpack.i.l.s16 %v863_v57 }
 0x5f8   :  { %673 = vperm.xlu0 %2200, %v2051_v31  }
 0x5ff   :  { %715 = vperm.xlu1 %2201, %v2059_v26  }
 0x600   :  { %712 = vperm.xlu0 %2200, %v2058_v25   ;;  %v2168_v25 = vld [vmem:[#allocation2 + $0x10] sm:$0xff] }
 0x601   :  { %698 = vmatpush.bf16.msrb.mxu2 %v2168_v25 }
 0x607   :  { %832 = vperm.xlu1 %2201, %v2080_v33  }
 0x608   :  { %829 = vperm.xlu0 %2200, %v2079_v32  }
 0x60f   :  { %871 = vperm.xlu1 %2201, %v2087_v59  }
 0x610   :  { %868 = vperm.xlu0 %2200, %v2086_v51  }
 0x623   :  { %v1244_v13 = vpop.permute.xlu2 %1243 }
 0x624   :  { %v1288_v42 = vperm.slane %v1244_v13, %v2606_v41 }
 0x62b   :  { %v1253_v31 = vpop.permute.xlu2 %1252 }
 0x62c   :  { %v1293_v25 = vperm.slane %v1253_v31, %v2601_v39 }
 0x633   :  { %v1262_v26 = vpop.permute.xlu2 %1261 }
 0x634   :  { %v1297_v12 = vperm.slane %v1262_v26, %v2606_v41 }
 0x639   :  { %v1247_v52 = vpop.permute.xlu1 %1246 }
 0x63a   :  { %v1241_v5 = vpop.permute.xlu0 %1240  ;;  %v1290_v32 = vperm.slane %v1247_v52, %v2601_v39 }
 0x63b   :  { %v1271_v49 = vpop.permute.xlu2 %1270  ;;  %v1287_v16 = vperm.slane %v1241_v5, %v2601_v39 }
 0x63c   :  { %v1302_v26 = vperm.slane %v1271_v49, %v2601_v39 }
 0x63d   :  { %v1289_v52 = vsel %vm331_vm2, %v1288_v42, %v1287_v16 }
 0x641   :  { %v1256_v14 = vpop.permute.xlu1 %1255 }
 0x642   :  { %v1250_v15 = vpop.permute.xlu0 %1249  ;;  %v1294_v57 = vperm.slane %v1256_v14, %v2606_v41 }
 0x643   :  { %v1291_v33 = vperm.slane %v1250_v15, %v2606_v41  ;;  %v1280_v43 = vpop.permute.xlu2 %1279 }
 0x644   :  { %v1295_v5 = vsel %vm331_vm2, %v1294_v57, %v1293_v25  ;;  %v1306_v57 = vperm.slane %v1280_v43, %v2606_v41 }
 0x645   :  { %v1292_v59 = vsel %vm331_vm2, %v1291_v33, %v1290_v32  ;;  %v2172_v32 = vld [vmem:[#allocation2 + $0x30] sm:$0xff] }
 0x646   :  { %v1311_v14 = vsel %vm354_vm3, %v1292_v59, %v1289_v52  ;;  %854 = vmatpush.bf16.msra.mxu2 %v2172_v32 }
 0x647   :  { %v1312_v16 = vsel %vm356_vm4, %v1295_v5, %v1311_v14 }
 0x649   :  { %v1265_v47 = vpop.permute.xlu1 %1264 }
 0x64a   :  { %v1259_v36 = vpop.permute.xlu0 %1258  ;;  %v1299_v13 = vperm.slane %v1265_v47, %v2601_v39 }
 0x64b   :  { %v1296_v51 = vperm.slane %v1259_v36, %v2601_v39 }
 0x64d   :  { %v1298_v33 = vsel %vm331_vm2, %v1297_v12, %v1296_v51 }
 0x64e   :  { %v1313_v42 = vsel %vm358_vm5, %v1298_v33, %v1312_v16  ;;  %v2173_v33 = vld [vmem:[#allocation2 + $0x38] sm:$0xff] }
 0x651   :  { %v1274_v53 = vpop.permute.xlu1 %1273 }
 0x652   :  { %v1268_v37 = vpop.permute.xlu0 %1267  ;;  %v1303_v36 = vperm.slane %v1274_v53, %v2606_v41 }
 0x653   :  { %v1300_v8 = vperm.slane %v1268_v37, %v2606_v41 }
 0x654   :  { %v1304_v47 = vsel %vm331_vm2, %v1303_v36, %v1302_v26 }
 0x655   :  { %v1301_v31 = vsel %vm331_vm2, %v1300_v8, %v1299_v13  ;;  %v639_v8 = vperm.slane %v2982_v38, %v2601_v39 }
 0x656   :  { %v1314_v12 = vsel %vm360_vm6, %v1301_v31, %v1313_v42 }
 0x657   :  { %v1315_v5 = vsel %vm362_vm7, %v1304_v47, %v1314_v12 }
 0x659   :  { %v1283_v29 = vpop.permute.xlu1 %1282 }
 0x65a   :  { %v1277_v15 = vpop.permute.xlu0 %1276  ;;  %v1308_v25 = vperm.slane %v1283_v29, %v2601_v39 }
 0x65b   :  { %v1305_v37 = vperm.slane %v1277_v15, %v2601_v39 }
 0x65d   :  { %v1307_v53 = vsel %vm331_vm2, %v1306_v57, %v1305_v37 }
 0x65e   :  { %v1316_v43 = vsel %vm364_vm8, %v1307_v53, %v1315_v5 }
 0x661   :  { %v638_v59 = vpop.permute.xlu1 %637 }
 0x662   :  { %v640_v51 = vperm.slane %v638_v59, %v2606_v41  ;;  %v1286_v49 = vpop.permute.xlu0 %1285 }
 0x663   :  { %v1309_v15 = vperm.slane %v1286_v49, %v2606_v41 }
 0x664   :  { %v641_v52 = vsel %vm331_vm2, %v640_v51, %v639_v8 }
 0x665   :  { %v642_v14 = vpack.c.b16 %v641_v52, %v641_v52  ;;  %v1310_v13 = vsel %vm331_vm2, %v1309_v15, %v1308_v25 }
 0x666   :  { %v1317_v38 = vsel %vm366_vm9, %v1310_v13, %v1316_v43 }
 0x667   :  { %2050 = vmatmul.msk.bf16.vlgmr.msrb.gmra.mxu3 %vm369_vm10, %v642_v14  ;;  %v1319_v36 = vsel %vm369_vm10, %v1317_v38, 0.0 }
 0x668   :  { %1320 = vadd.xlane.f32.xlu2 %v1319_v36  ;;  %893 = vmatpush.bf16.msrb.mxu3 %v2173_v33 }
 0x669   :  { %v677_v29 = vpop.permute.xlu1 %676 }
 0x66a   :  { %v679_v31 = vperm.slane %v677_v29, %v2606_v41  ;;  %v674_v37 = vpop.permute.xlu0 %673 }
 0x66b   :  { %v678_v32 = vperm.slane %v674_v37, %v2601_v39 }
 0x66d   :  { %v680_v26 = vsel %vm331_vm2, %v679_v31, %v678_v32 }
 0x66e   :  { %v681_v16 = vpack.c.b16 %v680_v26, %v680_v26 }
 0x670   :  { %2057 = vmatmul.msk.bf16.vlgmr.msrb.gmra.mxu2 %vm369_vm10, %v681_v16 }
 0x671   :  { %v716_v57 = vpop.permute.xlu1 %715  ;;  %1434 = vmatpush.bf16.msrb.mxu2 %v2815_v61 }
 0x672   :  { %v718_v42 = vperm.slane %v716_v57, %v2606_v41  ;;  %v713_v47 = vpop.permute.xlu0 %712 }
 0x673   :  { %v717_v12 = vperm.slane %v713_v47, %v2601_v39 }
 0x675   :  { %v719_v59 = vsel %vm331_vm2, %v718_v42, %v717_v12 }
 0x676   :  { %v720_v8 = vpack.c.b16 %v719_v59, %v719_v59 }
 0x678   :  { %2064 = vmatmul.msk.bf16.vlgmr.msra.gmra.mxu3 %vm369_vm10, %v720_v8 }
 0x679   :  { %v833_v53 = vpop.permute.xlu1 %832  ;;  %1468 = vmatpush.bf16.msra.mxu3 %v2823_v1 }
 0x67a   :  { %v835_v51 = vperm.slane %v833_v53, %v2606_v41  ;;  %v830_v49 = vpop.permute.xlu0 %829 }
 0x67b   :  { %v834_v25 = vperm.slane %v830_v49, %v2601_v39 }
 0x67d   :  { %v836_v61 = vsel %vm331_vm2, %v835_v51, %v834_v25 }
 0x67e   :  { %v837_v15 = vpack.c.b16 %v836_v61, %v836_v61 }
 0x680   :  { %2085 = vmatmul.msk.bf16.vlgmr.msra.gmra.mxu2 %vm369_vm10, %v837_v15 }
 0x681   :  { %v872_v52 = vpop.permute.xlu1 %871  ;;  %1536 = vmatpush.bf16.msra.mxu2 %v2811_v60 }
 0x682   :  { %v874_v5 = vperm.slane %v872_v52, %v2606_v41  ;;  %v869_v14 = vpop.permute.xlu0 %868 }
 0x683   :  { %v873_v13 = vperm.slane %v869_v14, %v2601_v39 }
 0x685   :  { %v875_v1 = vsel %vm331_vm2, %v874_v5, %v873_v13 }
 0x686   :  { %v876_v43 = vpack.c.b16 %v875_v1, %v875_v1 }
 0x688   :  { %2092 = vmatmul.msk.bf16.vlgmr.msrb.gmra.mxu3 %vm369_vm10, %v876_v43 }
 0x689   :  { %1570 = vmatpush.bf16.msrb.mxu3 %v2819_v63 }
 0x6db   :  { %v1321_v38 = vpop.xlane.xlu2 %1320 }
 0x6dc   :  { %2306 = vrcp.f32 %v1321_v38 }
 0x6e2   :  { %v3164_v33 = vpop.eup %2306 }
 0x6e3   :  { %v1325_v36 = vperm.slane %v3164_v33, 1  ;;  %v1324_v60 = vperm.slane %v3164_v33, 0  ;;  %v1327_v29 = vperm.slane %v3164_v33, 3  ;;  %v1326_v31 = vperm.slane %v3164_v33, 2 }
 0x6e4   :  { %v1329_v8 = vperm.slane %v3164_v33, 5  ;;  %v1330_v43 = vperm.slane %v3164_v33, 6 }
 0x6e5   :  { %v3171_v37 = vmul.f32 %v3008_v3, %v1325_v36  ;;  %v3174_v32 = vmul.f32 %v2993_v45, %v1325_v36  ;;  %v3177_v63 = vmul.f32 %v2995_v24, %v1324_v60  ;;  %v3180_v26 = vmul.f32 %v3022_v10, %v1327_v29 }
 0x6e6   :  { %v3189_v3 = vmul.f32 %v2998_v50, %v1324_v60  ;;  %v3192_v45 = vmul.f32 %v3011_v48, %v1326_v31  ;;  %v1328_v48 = vperm.slane %v3164_v33, 4  ;;  %v3203_v52 = vmul.f32 %v3034_v17, %v1329_v8 }
 0x6e7   :  { %v1359_v16 = vpack.c.bf16 %v3171_v37, %v3171_v37  ;;  %v1358_v57 = vpack.c.bf16 %v3174_v32, %v3174_v32  ;;  %v1356_v42 = vpack.c.bf16 %v3177_v63, %v3177_v63  ;;  %v1362_v59 = vpack.c.bf16 %v3180_v26, %v3180_v26 }
 0x6e8   :  { %v1357_v25 = vpack.c.bf16 %v3189_v3, %v3189_v3  ;;  %v1360_v50 = vpack.c.bf16 %v3192_v45, %v3192_v45  ;;  %v3206_v5 = vmul.f32 %v3006_v9, %v1326_v31  ;;  %v3209_v13 = vmul.f32 %v3020_v35, %v1328_v48 }
 0x6e9   :  { %v1409_v24 = vunpack.c.l.b16 %v1359_v16  ;;  %v1408_v47 = vunpack.c.l.b16 %v1358_v57  ;;  %v1374_v12 = vunpack.c.l.b16 %v1356_v42  ;;  %v1476_v61 = vunpack.c.l.b16 %v1362_v59 }
 0x6ea   :  { %v661_v10 = vpop.f32.mrf.mxu3  ;;  %v1375_v15 = vunpack.c.l.b16 %v1357_v25  ;;  %v1442_v14 = vunpack.c.l.b16 %v1360_v50  ;;  %v1367_v16 = vpack.c.bf16 %v3203_v52, %v3203_v52  ;;  %v1361_v17 = vpack.c.bf16 %v3206_v5, %v3206_v5 }
 0x6eb   :  { %v2141_v53 = vunpack.i.l.s16 %v1409_v24  ;;  %v2140_v51 = vunpack.i.l.s16 %v1408_v47  ;;  %v2137_v49 = vunpack.i.l.s16 %v1374_v12  ;;  %v2146_v36 = vunpack.i.l.s16 %v1476_v61 }
 0x6ec   :  { %v2138_v60 = vunpack.i.l.s16 %v1375_v15  ;;  %v2143_v57 = vunpack.i.l.s16 %v1442_v14  ;;  %v1364_v9 = vpack.c.bf16 %v3209_v13, %v3209_v13  ;;  %v1545_v35 = vunpack.c.l.b16 %v1367_v16 }
 0x6ed   :  { %1417 = vperm.xlu2 %2199, %v2141_v53   ;;  %1414 = vperm.xlu0 %2200, %v2140_v51   ;;  %v1443_v31 = vunpack.c.l.b16 %v1361_v17  ;;  %v3219_v42 = vmul.f32 %v3054_v28, %v1330_v43  ;;  %v3222_v24 = vmul.f32 %v3036_v34, %v1328_v48  ;;  %v1720_v47 = vrot.slane %v661_v10, 7 }
 0x6ee   :  { %1380 = vperm.xlu1 %2201, %v2137_v49   ;;  %v1510_v12 = vunpack.c.l.b16 %v1364_v9  ;;  %v3225_v59 = vmul.f32 %v3025_v2, %v1327_v29  ;;  %v1331_v51 = vperm.slane %v3164_v33, 7  ;;  %v2153_v50 = vunpack.i.l.s16 %v1545_v35 }
 0x6ef   :  { %v2144_v61 = vunpack.i.l.s16 %v1443_v31  ;;  %v1368_v15 = vpack.c.bf16 %v3219_v42, %v3219_v42  ;;  %v1365_v28 = vpack.c.bf16 %v3222_v24, %v3222_v24  ;;  %v1721_v34 = vsel %vm354_vm3, %v1720_v47, %v3032_v11 }
 0x6f0   :  { %v2149_v48 = vunpack.i.l.s16 %v1510_v12  ;;  %v1363_v2 = vpack.c.bf16 %v3225_v59, %v3225_v59  ;;  %v1726_v33 = vrot.slane %v2829_v4, 4  ;;  %v1728_v14 = vrot.slane %v2831_v40, 3 }
 0x6f1   :  { %v1511_v11 = vunpack.c.l.b16 %v1365_v28  ;;  %v3246_v4 = vmul.f32 %v3052_v56, %v1331_v51  ;;  %v1353_v56 = vmul.f32 %v3057_v0, %v1330_v43 }
 0x6f2   :  { %v663_v1 = vpop.f32.mrf.mxu3  ;;  %v1477_v17 = vunpack.c.l.b16 %v1363_v2 }
 0x6f3   :  { %v700_v38 = vpop.f32.mrf.mxu2  ;;  %v2150_v40 = vunpack.i.l.s16 %v1511_v11  ;;  %v1370_v12 = vpack.c.bf16 %v3246_v4, %v3246_v4 }
 0x6f4   :  { %v1722_v53 = vrot.slane %v700_v38, 6  ;;  %v2147_v47 = vunpack.i.l.s16 %v1477_v17 }
 0x6f5   :  { %1482 = vperm.xlu2 %2199, %v2146_v36   ;;  %1383 = vperm.xlu0 %2200, %v2138_v60   ;;  %v1578_v36 = vunpack.c.l.b16 %v1368_v15  ;;  %v3242_v60 = vmul.f32 %v3039_v55, %v1329_v8  ;;  %v1355_v8 = vmul.f32 %v3072_v44, %v1331_v51 }
 0x6f6   :  { %1448 = vperm.xlu1 %2201, %v2143_v57   ;;  %v1723_v29 = vsel %vm356_vm4, %v1722_v53, %v1721_v34  ;;  %v1612_v53 = vunpack.c.l.b16 %v1370_v12 }
 0x6f7   :  { %v2155_v35 = vunpack.i.l.s16 %v1578_v36  ;;  %v1366_v31 = vpack.c.bf16 %v3242_v60, %v3242_v60  ;;  %v1371_v15 = vpack.c.bf16 %v1355_v8, %v1355_v8 }
 0x6f8   :  { %v2158_v34 = vunpack.i.l.s16 %v1612_v53 }
 0x6f9   :  { %v1544_v55 = vunpack.c.l.b16 %v1366_v31  ;;  %v1613_v51 = vunpack.c.l.b16 %v1371_v15 }
 0x6fb   :  { %v702_v49 = vpop.f32.mrf.mxu2  ;;  %v739_v25 = vpop.f32.mrf.mxu3 }
 0x6fc   :  { %v1724_v10 = vrot.slane %v739_v25, 5 }
 0x6fd   :  { %1553 = vperm.xlu2 %2199, %v2153_v50   ;;  %1451 = vperm.xlu0 %2200, %v2144_v61   ;;  %v2152_v61 = vunpack.i.l.s16 %v1544_v55 }
 0x6fe   :  { %v1725_v1 = vsel %vm358_vm5, %v1724_v10, %v1723_v29  ;;  %1516 = vperm.xlu1 %2201, %v2149_v48   ;;  %v1369_v10 = vpack.c.bf16 %v1353_v56, %v1353_v56 }
 0x6ff   :  { %v1727_v38 = vsel %vm360_vm6, %v1726_v33, %v1725_v1  ;;  %v2159_v33 = vunpack.i.l.s16 %v1613_v51 }
 0x700   :  { %v1729_v16 = vsel %vm362_vm7, %v1728_v14, %v1727_v38  ;;  %v1579_v0 = vunpack.c.l.b16 %v1369_v10 }
 0x702   :  { %v2156_v29 = vunpack.i.l.s16 %v1579_v0 }
 0x703   :  { %v741_v57 = vpop.f32.mrf.mxu3  ;;  %v856_v9 = vpop.f32.mrf.mxu2 }
 0x704   :  { %v1730_v49 = vrot.slane %v856_v9, 2 }
 0x705   :  { %1584 = vperm.xlu2 %2199, %v2155_v35   ;;  %1519 = vperm.xlu0 %2200, %v2150_v40  }
 0x706   :  { %1485 = vperm.xlu1 %2201, %v2147_v47   ;;  %v1731_v48 = vsel %vm364_vm8, %v1730_v49, %v1729_v16 }
 0x70b   :  { %v858_v25 = vpop.f32.mrf.mxu2  ;;  %v895_v50 = vpop.f32.mrf.mxu3 }
 0x70c   :  { %v1732_v28 = vrot.slane %v895_v50, 1 }
 0x70d   :  { %1788 = vperm.xlu2 %2199, %v2906_v46   ;;  %1550 = vperm.xlu0 %2200, %v2152_v61  }
 0x70e   :  { %v1733_v2 = vsel %vm366_vm9, %v1732_v28, %v1731_v48  ;;  %1618 = vperm.xlu1 %2201, %v2158_v34  }
 0x70f   :  { %v1735_v44 = vsel %vm188_vm1, %v1733_v2, 0.0 }
 0x710   :  { %1763 = vst [vmem:[#allocation7] sm:$0xff] %v1735_v44 }
 0x713   :  { %v897_v43 = vpop.f32.mrf.mxu3 }
 0x715   :  { %1797 = vperm.xlu2 %2199, %v3065_v30   ;;  %1621 = vperm.xlu0 %2200, %v2159_v33  }
 0x716   :  { %1587 = vperm.xlu1 %2201, %v2156_v29  }
 0x71d   :  { %1806 = vperm.xlu2 %2199, %v3076_v54   ;;  %1785 = vperm.xlu0 %2200, %v2901_v27  }
 0x71e   :  { %1791 = vperm.xlu1 %2201, %v2893_v7   ;;  %v3435_v7 = vld [vmem:[#allocation15_spill] sm:$0xff] }
 0x725   :  { %1815 = vperm.xlu2 %2199, %v2792_v21   ;;  %1794 = vperm.xlu0 %2200, %v3046_v18   ;;  %v3434_v21 = vld [vmem:[#allocation16_spill] sm:$0xff] }
 0x726   :  { %1800 = vperm.xlu1 %2201, %v3062_v22  }
 0x72d   :  { %1824 = vperm.xlu2 %2199, %v3087_v62   ;;  %1803 = vperm.xlu0 %2200, %v3079_v58   ;;  %v2308_v58 = vld [vmem:[#allocation5 + $0x38] sm:$0xff] }
 0x72e   :  { %1809 = vperm.xlu1 %2201, %v2782_v20  }
 0x735   :  { %1812 = vperm.xlu0 %2200, %v2779_v19   ;;  %1882 = vperm.xlu2 %2199, %v3177_v63  }
 0x736   :  { %1818 = vperm.xlu1 %2201, %v2789_v23  }
 0x73d   :  { %1821 = vperm.xlu0 %2200, %v3090_v6   ;;  %1891 = vperm.xlu2 %2199, %v3171_v37  }
 0x73e   :  { %1827 = vperm.xlu1 %2201, %v3434_v21  }
 0x745   :  { %1830 = vperm.xlu0 %2200, %v3435_v7   ;;  %1900 = vperm.xlu2 %2199, %v3180_v26  }
 0x746   :  { %1885 = vperm.xlu1 %2201, %v3189_v3   ;;  %v2309_v3 = vld [vmem:[#allocation5 + $0x30] sm:$0xff] }
 0x747   :  { %v1418_v19 = vpop.permute.xlu2 %1417 }
 0x748   :  { %v1420_v27 = vperm.slane %v1418_v19, %v2606_v41 }
 0x74d   :  { %1888 = vperm.xlu0 %2200, %v3174_v32   ;;  %1909 = vperm.xlu2 %2199, %v3222_v24  }
 0x74e   :  { %1894 = vperm.xlu1 %2201, %v3192_v45  }
 0x74f   :  { %v1483_v20 = vpop.permute.xlu2 %1482 }
 0x750   :  { %v1487_v11 = vperm.slane %v1483_v20, %v2601_v39 }
 0x755   :  { %1897 = vperm.xlu0 %2200, %v3206_v5   ;;  %1918 = vperm.xlu2 %2199, %v3219_v42  }
 0x756   :  { %1903 = vperm.xlu1 %2201, %v3225_v59  }
 0x757   :  { %v1554_v54 = vpop.permute.xlu2 %1553 }
 0x758   :  { %v1556_v40 = vperm.slane %v1554_v54, %v2606_v41 }
 0x75d   :  { %1906 = vperm.xlu0 %2200, %v3209_v13   ;;  %1927 = vperm.xlu2 %2199, %v1355_v8  }
 0x75e   :  { %1912 = vperm.xlu1 %2201, %v3242_v60  }
 0x75f   :  { %v1415_v23 = vpop.permute.xlu0 %1414  ;;  %v1585_v45 = vpop.permute.xlu2 %1584 }
 0x760   :  { %v1419_v46 = vperm.slane %v1415_v23, %v2601_v39  ;;  %v1381_v18 = vpop.permute.xlu1 %1380  ;;  %v1589_v50 = vperm.slane %v1585_v45, %v2601_v39 }
 0x761   :  { %v1385_v6 = vperm.slane %v1381_v18, %v2601_v39 }
 0x762   :  { %v1421_v22 = vsel %vm331_vm2, %v1420_v27, %v1419_v46 }
 0x763   :  { %v1422_v30 = vpack.c.b16 %v1421_v22, %v1421_v22 }
 0x765   :  { %2142 = vmatmul.msk.bf16.vlgmr.msrb.gmra.mxu2 %vm369_vm10, %v1422_v30  ;;  %1915 = vperm.xlu0 %2200, %v3203_v52  }
 0x766   :  { %1921 = vperm.xlu1 %2201, %v1353_v56   ;;  %1638 = vmatpush.bf16.msrb.mxu2 %v2308_v58 }
 0x767   :  { %v1384_v62 = vpop.permute.xlu0 %1383  ;;  %v1789_v60 = vpop.permute.xlu2 %1788 }
 0x768   :  { %v1386_v37 = vperm.slane %v1384_v62, %v2606_v41  ;;  %v1449_v32 = vpop.permute.xlu1 %1448  ;;  %v1833_v22 = vperm.slane %v1789_v60, %v2606_v41 }
 0x769   :  { %v1453_v5 = vperm.slane %v1449_v32, %v2601_v39 }
 0x76a   :  { %v1387_v63 = vsel %vm331_vm2, %v1386_v37, %v1385_v6 }
 0x76b   :  { %v1388_v26 = vpack.c.b16 %v1387_v63, %v1387_v63 }
 0x76d   :  { %1924 = vperm.xlu0 %2200, %v3246_v4   ;;  %2139 = vmatmul.msk.bf16.vlgmr.msra.gmra.mxu0 %vm369_vm10, %v1388_v26 }
 0x76e   :  { %1604 = vmatpush.bf16.msra.mxu0 %v2309_v3 }
 0x76f   :  { %v1452_v52 = vpop.permute.xlu0 %1451  ;;  %v1798_v55 = vpop.permute.xlu2 %1797 }
 0x770   :  { %v1454_v13 = vperm.slane %v1452_v52, %v2606_v41  ;;  %v1517_v42 = vpop.permute.xlu1 %1516  ;;  %v1838_v58 = vperm.slane %v1798_v55, %v2601_v39 }
 0x771   :  { %v1521_v1 = vperm.slane %v1517_v42, %v2601_v39 }
 0x772   :  { %v1455_v24 = vsel %vm331_vm2, %v1454_v13, %v1453_v5 }
 0x773   :  { %v1456_v59 = vpack.c.b16 %v1455_v24, %v1455_v24 }
 0x775   :  { %2145 = vmatmul.msk.bf16.vlgmr.msra.gmra.mxu3 %vm369_vm10, %v1456_v59 }
 0x777   :  { %v1520_v14 = vpop.permute.xlu0 %1519  ;;  %v1807_v48 = vpop.permute.xlu2 %1806 }
 0x778   :  { %v1522_v38 = vperm.slane %v1520_v14, %v2606_v41  ;;  %v1486_v36 = vpop.permute.xlu1 %1485  ;;  %v1842_v37 = vperm.slane %v1807_v48, %v2606_v41 }
 0x779   :  { %v1488_v16 = vperm.slane %v1486_v36, %v2606_v41 }
 0x77a   :  { %v1523_v17 = vsel %vm331_vm2, %v1522_v38, %v1521_v1 }
 0x77b   :  { %v1524_v4 = vpack.c.b16 %v1523_v17, %v1523_v17  ;;  %v1489_v57 = vsel %vm331_vm2, %v1488_v16, %v1487_v11 }
 0x77c   :  { %v1490_v9 = vpack.c.b16 %v1489_v57, %v1489_v57 }
 0x77d   :  { %2151 = vmatmul.msk.bf16.vlgmr.msra.gmra.mxu2 %vm369_vm10, %v1524_v4 }
 0x77e   :  { %2148 = vmatmul.msk.bf16.vlgmr.msrb.gmra.mxu0 %vm369_vm10, %v1490_v9 }
 0x77f   :  { %v1551_v35 = vpop.permute.xlu0 %1550  ;;  %v1816_v51 = vpop.permute.xlu2 %1815 }
 0x780   :  { %v1555_v31 = vperm.slane %v1551_v35, %v2601_v39  ;;  %v1619_v47 = vpop.permute.xlu1 %1618  ;;  %v1847_v24 = vperm.slane %v1816_v51, %v2601_v39 }
 0x781   :  { %v1623_v56 = vperm.slane %v1619_v47, %v2601_v39 }
 0x782   :  { %v1557_v12 = vsel %vm331_vm2, %v1556_v40, %v1555_v31 }
 0x783   :  { %v1558_v8 = vpack.c.b16 %v1557_v12, %v1557_v12 }
 0x785   :  { %2154 = vmatmul.msk.bf16.vlgmr.msrb.gmra.mxu3 %vm369_vm10, %v1558_v8 }
 0x787   :  { %v1622_v53 = vpop.permute.xlu0 %1621  ;;  %v1825_v21 = vpop.permute.xlu2 %1824 }
 0x788   :  { %v1624_v49 = vperm.slane %v1622_v53, %v2606_v41  ;;  %v1588_v25 = vpop.permute.xlu1 %1587  ;;  %v1851_v14 = vperm.slane %v1825_v21, %v2606_v41 }
 0x789   :  { %v1590_v61 = vperm.slane %v1588_v25, %v2606_v41 }
 0x78a   :  { %v1625_v15 = vsel %vm331_vm2, %v1624_v49, %v1623_v56 }
 0x78b   :  { %v1626_v28 = vpack.c.b16 %v1625_v15, %v1625_v15  ;;  %v1591_v34 = vsel %vm331_vm2, %v1590_v61, %v1589_v50 }
 0x78c   :  { %v1592_v10 = vpack.c.b16 %v1591_v34, %v1591_v34 }
 0x78d   :  { %2160 = vmatmul.msk.bf16.vlgmr.msrb.gmra.mxu2 %vm369_vm10, %v1626_v28 }
 0x78e   :  { %2157 = vmatmul.msk.bf16.vlgmr.msra.gmra.mxu0 %vm369_vm10, %v1592_v10 }
 0x78f   :  { %v1786_v2 = vpop.permute.xlu0 %1785  ;;  %v1883_v23 = vpop.permute.xlu2 %1882 }
 0x790   :  { %v1792_v44 = vpop.permute.xlu1 %1791  ;;  %v1832_v27 = vperm.slane %v1786_v2, %v2601_v39  ;;  %v1929_v48 = vperm.slane %v1883_v23, %v2601_v39 }
 0x791   :  { %v1835_v46 = vperm.slane %v1792_v44, %v2601_v39 }
 0x792   :  { %v1834_v32 = vsel %vm331_vm2, %v1833_v22, %v1832_v27 }
 0x797   :  { %v1795_v0 = vpop.permute.xlu0 %1794  ;;  %v1892_v1 = vpop.permute.xlu2 %1891 }
 0x798   :  { %v1801_v43 = vpop.permute.xlu1 %1800  ;;  %v1836_v20 = vperm.slane %v1795_v0, %v2606_v41  ;;  %v1933_v28 = vperm.slane %v1892_v1, %v2606_v41 }
 0x799   :  { %v1839_v18 = vperm.slane %v1801_v43, %v2606_v41 }
 0x79a   :  { %v1837_v30 = vsel %vm331_vm2, %v1836_v20, %v1835_v46 }
 0x79b   :  { %v1856_v26 = vsel %vm354_vm3, %v1837_v30, %v1834_v32  ;;  %v1840_v3 = vsel %vm331_vm2, %v1839_v18, %v1838_v58 }
 0x79c   :  { %v1857_v59 = vsel %vm356_vm4, %v1840_v3, %v1856_v26 }
 0x79f   :  { %v1804_v33 = vpop.permute.xlu0 %1803  ;;  %v1901_v47 = vpop.permute.xlu2 %1900 }
 0x7a0   :  { %v1810_v29 = vpop.permute.xlu1 %1809  ;;  %v1841_v54 = vperm.slane %v1804_v33, %v2601_v39  ;;  %v1938_v33 = vperm.slane %v1901_v47, %v2601_v39 }
 0x7a1   :  { %v1844_v45 = vperm.slane %v1810_v29, %v2601_v39 }
 0x7a2   :  { %v1843_v52 = vsel %vm331_vm2, %v1842_v37, %v1841_v54 }
 0x7a3   :  { %v1858_v38 = vsel %vm358_vm5, %v1843_v52, %v1857_v59 }
 0x7a7   :  { %v1813_v7 = vpop.permute.xlu0 %1812  ;;  %v1910_v56 = vpop.permute.xlu2 %1909 }
 0x7a8   :  { %v1819_v19 = vpop.permute.xlu1 %1818  ;;  %v1845_v62 = vperm.slane %v1813_v7, %v2606_v41 }
 0x7a9   :  { %v1848_v5 = vperm.slane %v1819_v19, %v2606_v41  ;;  %v1942_v19 = vperm.slane %v1910_v56, %v2606_v41 }
 0x7aa   :  { %v1846_v13 = vsel %vm331_vm2, %v1845_v62, %v1844_v45 }
 0x7ab   :  { %v1859_v36 = vsel %vm360_vm6, %v1846_v13, %v1858_v38  ;;  %v1849_v11 = vsel %vm331_vm2, %v1848_v5, %v1847_v24 }
 0x7ac   :  { %v1860_v9 = vsel %vm362_vm7, %v1849_v11, %v1859_v36 }
 0x7af   :  { %v1822_v6 = vpop.permute.xlu0 %1821  ;;  %v1919_v61 = vpop.permute.xlu2 %1918 }
 0x7b0   :  { %v1828_v63 = vpop.permute.xlu1 %1827  ;;  %v1850_v42 = vperm.slane %v1822_v6, %v2601_v39  ;;  %v1947_v54 = vperm.slane %v1919_v61, %v2601_v39 }
 0x7b1   :  { %v1853_v17 = vperm.slane %v1828_v63, %v2601_v39 }
 0x7b2   :  { %v1852_v60 = vsel %vm331_vm2, %v1851_v14, %v1850_v42  ;;  %v2189_v14 = vld [vmem:[%s3425_s10] sm:$0xff] }
 0x7b3   :  { %v1861_v35 = vsel %vm364_vm8, %v1852_v60, %v1860_v9  ;;  %1705 = vmatpush.bf16.msra.mxu3 %v2189_v14 }
 0x7b7   :  { %v1831_v16 = vpop.permute.xlu0 %1830  ;;  %v1928_v58 = vpop.permute.xlu2 %1927 }
 0x7b8   :  { %v1854_v4 = vperm.slane %v1831_v16, %v2606_v41  ;;  %v1886_v57 = vpop.permute.xlu1 %1885  ;;  %v1951_v26 = vperm.slane %v1928_v58, %v2606_v41 }
 0x7b9   :  { %v1930_v34 = vperm.slane %v1886_v57, %v2606_v41 }
 0x7ba   :  { %v1855_v40 = vsel %vm331_vm2, %v1854_v4, %v1853_v17 }
 0x7bb   :  { %v1862_v31 = vsel %vm366_vm9, %v1855_v40, %v1861_v35  ;;  %v1931_v29 = vsel %vm331_vm2, %v1930_v34, %v1929_v48 }
 0x7bc   :  { %1864 = vst.msk [vmem:[#allocation8] sm:$0xff] %vm369_vm10, %v1862_v31 }
 0x7bd   :  { %1983 = dma.vmem_to_hbm [thread:$0]  %s1979_s27, 128, %s1981_s25, [#allocation9]  }
 0x7bf   :  { %v1889_v12 = vpop.permute.xlu0 %1888 }
 0x7c0   :  { %v1895_v55 = vpop.permute.xlu1 %1894  ;;  %v1932_v50 = vperm.slane %v1889_v12, %v2601_v39 }
 0x7c1   :  { %v1935_v10 = vperm.slane %v1895_v55, %v2601_v39 }
 0x7c2   :  { %v1934_v2 = vsel %vm331_vm2, %v1933_v28, %v1932_v50 }
 0x7c3   :  { %v1953_v20 = vsel %vm354_vm3, %v1934_v2, %v1931_v29 }
 0x7c7   :  { %v1898_v8 = vpop.permute.xlu0 %1897 }
 0x7c8   :  { %v1904_v53 = vpop.permute.xlu1 %1903  ;;  %v1936_v15 = vperm.slane %v1898_v8, %v2606_v41 }
 0x7c9   :  { %v1939_v44 = vperm.slane %v1904_v53, %v2606_v41 }
 0x7ca   :  { %v1937_v51 = vsel %vm331_vm2, %v1936_v15, %v1935_v10 }
 0x7cb   :  { %v1954_v23 = vsel %vm356_vm4, %v1937_v51, %v1953_v20  ;;  %v1940_v27 = vsel %vm331_vm2, %v1939_v44, %v1938_v33 }
 0x7cc   :  { %v1955_v62 = vsel %vm358_vm5, %v1940_v27, %v1954_v23 }
 0x7cf   :  { %v1907_v49 = vpop.permute.xlu0 %1906 }
 0x7d0   :  { %v1913_v25 = vpop.permute.xlu1 %1912  ;;  %v1941_v0 = vperm.slane %v1907_v49, %v2601_v39 }
 0x7d1   :  { %v1944_v46 = vperm.slane %v1913_v25, %v2601_v39 }
 0x7d2   :  { %v1943_v18 = vsel %vm331_vm2, %v1942_v19, %v1941_v0 }
 0x7d3   :  { %v1956_v6 = vsel %vm360_vm6, %v1943_v18, %v1955_v62 }
 0x7d7   :  { %v1916_v43 = vpop.permute.xlu0 %1915 }
 0x7d8   :  { %v1945_v21 = vperm.slane %v1916_v43, %v2606_v41  ;;  %v1922_v7 = vpop.permute.xlu1 %1921 }
 0x7d9   :  { %v1948_v22 = vperm.slane %v1922_v7, %v2606_v41 }
 0x7da   :  { %v1946_v30 = vsel %vm331_vm2, %v1945_v21, %v1944_v46 }
 0x7db   :  { %v1957_v37 = vsel %vm362_vm7, %v1946_v30, %v1956_v6  ;;  %v1949_v32 = vsel %vm331_vm2, %v1948_v22, %v1947_v54 }
 0x7dc   :  { %v1958_v45 = vsel %vm364_vm8, %v1949_v32, %v1957_v37 }
 0x7df   :  { %v1925_v63 = vpop.permute.xlu0 %1924 }
 0x7e0   :  { %v1950_v3 = vperm.slane %v1925_v63, %v2601_v39 }
 0x7e2   :  { %v1952_v52 = vsel %vm331_vm2, %v1951_v26, %v1950_v3 }
 0x7e3   :  { %v1959_v5 = vsel %vm366_vm9, %v1952_v52, %v1958_v45 }
 0x7e4   :  { %1961 = vst.msk [vmem:[#allocation10] sm:$0xff] %vm369_vm10, %v1959_v5  ;;  %v2205_v5 = vld [vmem:[%s3426_s11] ss:$0 sm:$0xff] }
 0x7e5   :  { %1994 = dma.vmem_to_hbm [thread:$0]  %s1990_s15, 128, %s1992_s29, [#allocation9]  }
 0x7e8   :  { %v1436_v13 = vpop.f32.mrf.mxu2 }
 0x7e9   :  { %v1645_v39 = vpack.c.bf16 %v1436_v13, %v1436_v13  ;;  %v1745_v17 = vrot.slane %v1436_v13, 7 }
 0x7ea   :  { %v1402_v42 = vpop.f32.mrf.mxu0 }
 0x7eb   :  { %v1667_v16 = vunpack.c.l.b16 %v1645_v39  ;;  %v1644_v4 = vpack.c.bf16 %v1402_v42, %v1402_v42  ;;  %v1746_v12 = vsel %vm354_vm3, %v1745_v17, %v1402_v42 }
 0x7ed   :  { %v1674_v31 = vrot.slane %v1667_v16, 7  ;;  %v1666_v47 = vunpack.c.l.b16 %v1644_v4 }
 0x7ef   :  { %v1675_v48 = vsel %vm354_vm3, %v1674_v31, %v1666_v47 }
 0x7f0   :  { %v1438_v24 = vpop.f32.mrf.mxu2 }
 0x7f2   :  { %v1404_v59 = vpop.f32.mrf.mxu0 }
 0x7f8   :  { %v1470_v41 = vpop.f32.mrf.mxu3 }
 0x7f9   :  { %v1646_v11 = vpack.c.bf16 %v1470_v41, %v1470_v41  ;;  %v1747_v35 = vrot.slane %v1470_v41, 6 }
 0x7fb   :  { %v1504_v1 = vpop.f32.mrf.mxu0  ;;  %v1668_v57 = vunpack.c.l.b16 %v1646_v11  ;;  %v1748_v50 = vsel %vm356_vm4, %v1747_v35, %v1746_v12 }
 0x7fc   :  { %v1647_v9 = vpack.c.bf16 %v1504_v1, %v1504_v1  ;;  %v1749_v49 = vrot.slane %v1504_v1, 5 }
 0x7fd   :  { %v1676_v53 = vrot.slane %v1668_v57, 6 }
 0x7fe   :  { %v1669_v56 = vunpack.c.l.b16 %v1647_v9  ;;  %v1750_v0 = vsel %vm358_vm5, %v1749_v49, %v1748_v50 }
 0x7ff   :  { %v1677_v44 = vsel %vm356_vm4, %v1676_v53, %v1675_v48 }
 0x800   :  { %v1472_v38 = vpop.f32.mrf.mxu3  ;;  %v1538_v36 = vpop.f32.mrf.mxu2  ;;  %v1678_v51 = vrot.slane %v1669_v56, 5 }
 0x801   :  { %v1648_v40 = vpack.c.bf16 %v1538_v36, %v1538_v36  ;;  %v1751_v15 = vrot.slane %v1538_v36, 4 }
 0x802   :  { %v1679_v27 = vsel %vm358_vm5, %v1678_v51, %v1677_v44 }
 0x803   :  { %v1506_v60 = vpop.f32.mrf.mxu0  ;;  %v1670_v61 = vunpack.c.l.b16 %v1648_v40  ;;  %v1752_v33 = vsel %vm360_vm6, %v1751_v15, %v1750_v0 }
 0x805   :  { %v1680_v43 = vrot.slane %v1670_v61, 4 }
 0x807   :  { %v1681_v22 = vsel %vm360_vm6, %v1680_v43, %v1679_v27 }
 0x808   :  { %v1540_v55 = vpop.f32.mrf.mxu2  ;;  %v1572_v8 = vpop.f32.mrf.mxu3 }
 0x809   :  { %v1649_v25 = vpack.c.bf16 %v1572_v8, %v1572_v8  ;;  %v1753_v34 = vrot.slane %v1572_v8, 3 }
 0x80b   :  { %v1671_v28 = vunpack.c.l.b16 %v1649_v25  ;;  %v1606_v10 = vpop.f32.mrf.mxu0  ;;  %v1754_v19 = vsel %vm362_vm7, %v1753_v34, %v1752_v33 }
 0x80c   :  { %v1650_v2 = vpack.c.bf16 %v1606_v10, %v1606_v10  ;;  %v1755_v21 = vrot.slane %v1606_v10, 2 }
 0x80d   :  { %v1682_v7 = vrot.slane %v1671_v28, 3 }
 0x80e   :  { %v1672_v29 = vunpack.c.l.b16 %v1650_v2  ;;  %v1756_v54 = vsel %vm364_vm8, %v1755_v21, %v1754_v19 }
 0x80f   :  { %v1683_v58 = vsel %vm362_vm7, %v1682_v7, %v1681_v22 }
 0x810   :  { %v1574_v20 = vpop.f32.mrf.mxu3  ;;  %v1640_v23 = vpop.f32.mrf.mxu2  ;;  %v1684_v30 = vrot.slane %v1672_v29, 2 }
 0x811   :  { %v1651_v46 = vpack.c.bf16 %v1640_v23, %v1640_v23  ;;  %v1757_v18 = vrot.slane %v1640_v23, 1 }
 0x812   :  { %v1685_v26 = vsel %vm364_vm8, %v1684_v30, %v1683_v58 }
 0x813   :  { %v1673_v62 = vunpack.c.l.b16 %v1651_v46  ;;  %v1758_v6 = vsel %vm366_vm9, %v1757_v18, %v1756_v54  ;;  %v1608_v37 = vpop.f32.mrf.mxu0 }
 0x814   :  { %v1760_v32 = vsel %vm369_vm10, %v1758_v6, 0.0 }
 0x815   :  { %v1686_v63 = vrot.slane %v1673_v62, 1  ;;  %1765 = vst [vmem:[#allocation7 + $0x10] sm:$0xff] %v1760_v32 }
 0x817   :  { %v1687_v3 = vsel %vm366_vm9, %v1686_v63, %v1685_v26 }
 0x818   :  { %v1688_v45 = vpack.c.b16 %v1687_v3, %v1687_v3  ;;  %v1642_v52 = vpop.f32.mrf.mxu2 }
 0x81a   :  { %2165 = vmatmul.msk.bf16.vlgmr.msra.gmra.mxu3 %vm369_vm10, %v1688_v45 }
 0x89d   :  { %v1707_v13 = vpop.f32.mrf.mxu3 }
 0x89e   :  { %v1708_v42 = vadd.f32 %v2205_v5, %v1707_v13 }
 0x8a0   :  { %v1711_v24 = vmax.f32 %v1708_v42, 0.0 }
 0x8a2   :  { %v1736_v59 = vsel %vm188_vm1, %v1711_v24, 0.0 }
 0x8a3   :  { %1764 = vst [vmem:[#allocation7 + $0x8] sm:$0xff] %v1736_v59 }
 0x8a4   :  { %1972 = dma.vmem_to_hbm [thread:$0]  %s1968_s18, 640, %s1970_s21, [#allocation4]  }
 0x8a5   :  { %v1709_v14 = vpop.f32.mrf.mxu3 }
 0x8a6   :  { %2434 = dma.done.wait [#allocation4], 640  }
 0x8a7   :  { %2435 = vsyncadd [#allocation4], 4294966656 }
 0x8a8   :  { %2436 = dma.done.wait [#allocation9], 256  }
 0x8a9   :  { %2437 = vsyncadd [#allocation9], 4294967040 }
 0x8aa   :  { %2007 = vsyncpa [#allocation3], 1 }
 0x8ab   :  { %2008 = vsyncpa [#allocation6], 1 }
 0x8ac   :  { %2009 = vsyncpa [#allocation4], 1 }
 0x8ad   :  { %2010 = vsyncpa [#allocation9], 1 }

// kernel: tpu_custom_call.1
= control target key start
LH: loop header
LB: loop body
LE: loop exit
PB: predicated region body
PF: predicated region fallthrough
CT: control target
= control target key end

     0   :  { %20 = vsyncpa [#allocation3], 0  ;;  %s3415_s0 = inlined_call_operand.hbm [shape: bf16[8,16,32], index: 0, kind: input, shape index: {}]   ;;  %s3416_s1 = inlined_call_operand.hbm [shape: bf16[8,16,16], index: 1, kind: input, shape index: {}]   ;;  %s3417_s2 = inlined_call_operand.vmem [shape: f32[8,64], index: 2, kind: input, shape index: {}]   ;;  %s3418_s3 = inlined_call_operand.vmem [shape: bf16[64,32], index: 3, kind: input, shape index: {}]   ;;  %s3419_s4 = inlined_call_operand.vmem [shape: f32[1,32], index: 4, kind: input, shape index: {}]   ;;  %s3420_s5 = inlined_call_operand.vmem [shape: bf16[32,32], index: 5, kind: input, shape index: {}]   ;;  %s3421_s6 = inlined_call_operand.vmem [shape: f32[1,32], index: 6, kind: input, shape index: {}]   ;;  %s3422_s7 = inlined_call_operand.vmem [shape: bf16[16,32], index: 7, kind: input, shape index: {}]   ;;  %s3423_s8 = inlined_call_operand.vmem [shape: f32[1,32], index: 8, kind: input, shape index: {}]   ;;  %s3424_s9 = inlined_call_operand.vmem [shape: bf16[1,32], index: 9, kind: input, shape index: {}]   ;;  %s3425_s10 = inlined_call_operand.vmem [shape: bf16[16,32], index: 10, kind: input, shape index: {}]   ;;  %s3426_s11 = inlined_call_operand.vmem [shape: f32[1,32], index: 11, kind: input, shape index: {}]   ;;  %s3427_s12 = inlined_call_operand.hbm [shape: f32[8,640], index: 12, kind: output, shape index: {0}]   ;;  %s3428_s13 = inlined_call_operand.hbm [shape: f32[8,16], index: 13, kind: output, shape index: {1}]   ;;  %s3429_s14 = inlined_call_operand.hbm [shape: f32[8,16], index: 14, kind: output, shape index: {2}]  }
   0x1   :  { %21 = vsyncpa [#allocation6], 0 }
   0x2   :  { %22 = vsyncpa [#allocation4], 0 }
   0x3   :  { %23 = vsyncpa [#allocation9], 0  ;;  %s28_s15 = sshll.u32 %s3415_s0, 4  ;;  %s2438_s16 = smov [#allocation2]   ;;  %s29_s15 = int_to_ptr.hbm [resolvable:$true] %s28_s15 }
   0x4   :  { %s30_s17 = sshll.u32 %s2438_s16, 4  ;;  %s41_s20 = sshll.u32 %s3416_s1, 4  ;;  %s31_s17 = int_to_ptr.vmem [resolvable:$true] %s30_s17  ;;  %s42_s20 = int_to_ptr.hbm [resolvable:$true] %s41_s20 }
   0x5   :  { %s2439_s21 = smov 64   ;;  %s2440_s22 = smov 4  }
   0x6   :  { %36 = dma.hbm_to_vmem [thread:$0]  %s29_s15, 1024, %s31_s17, [#allocation3], %s2439_s21, %s2439_s21, %s2440_s22  }
   0x7   :  { %s2441_s23 = smov [#allocation5]  }
   0x8   :  { %s43_s24 = sshll.u32 %s2441_s23, 4  ;;  %s44_s24 = int_to_ptr.vmem [resolvable:$true] %s43_s24 }
   0x9   :  { %49 = dma.hbm_to_vmem [thread:$0]  %s42_s20, 1024, %s44_s24, [#allocation6], %s2439_s21, %s2439_s21, %s2440_s22  }
   0xa   :  { %2430 = dma.done.wait [#allocation3], 1024  }
   0xb   :  { %2431 = vsyncadd [#allocation3], 4294966272 }
   0xc   :  { %2432 = dma.done.wait [#allocation6], 1024  }
   0xd   :  { %2433 = vsyncadd [#allocation6], 4294966272  ;;  %v2185_v0 = vld [vmem:[%s3418_s3 + $0x18] sm:$0xff]  ;;  %v2184_v1 = vld [vmem:[%s3418_s3 + $0x10] sm:$0xff]  ;;  %vm149_vm0 = vcmask 523264   ;;  %vm188_vm1 = vcmask 261120  }
   0xe   :  { %157 = vmatpush.bf16.msra.mxu2 %v2185_v0  ;;  %v2183_v2 = vld [vmem:[%s3418_s3 + $0x8] sm:$0xff]  ;;  %v2182_v3 = vld [vmem:[%s3418_s3] sm:$0xff]  ;;  %v83_v19 = vld [vmem:[#allocation2 + $0x10] sm:$0xff]   ;;  %vm331_vm2 = vcmask 130112   ;;  %vm354_vm3 = vcmask 1041409   ;;  %vm356_vm4 = vcmask 1042434  }
   0xf   :  { %v111_v4 = vld [vmem:[%s3417_s2] sm:$0xff]  ;;  %v2187_v6 = vld [vmem:[%s3420_s5 + $0x8] sm:$0xff]  ;;  %v218_v24 = vunpack.c.l.bf16 %v83_v19  ;;  %v219_v39 = vunpack.c.h.bf16 %v83_v19  ;;  %v85_v43 = vld [vmem:[#allocation2 + $0x18] sm:$0xff]   ;;  %vm358_vm5 = vcmask 1043459   ;;  %vm360_vm6 = vcmask 1044484   ;;  %s1980_s25 = sshll.u32 %s3428_s13, 4  ;;  %s1981_s25 = int_to_ptr.hbm [resolvable:$true] %s1980_s25 }
  0x10   :  { %v112_v5 = vpack.c.bf16 %v111_v4, %v111_v4  ;;  %198 = vmatpush.bf16.msra.mxu1 %v2187_v6  ;;  %v2186_v7 = vld [vmem:[%s3420_s5] sm:$0xff]  ;;  %v81_v20 = vld [vmem:[#allocation2 + $0x8] sm:$0xff]   ;;  %v220_v49 = vunpack.c.l.bf16 %v85_v43  ;;  %v221_v55 = vunpack.c.h.bf16 %v85_v43  ;;  %vm362_vm7 = vcmask 1045509   ;;  %s2443_s26 = smov [#allocation8]   ;;  %s1991_s29 = sshll.u32 %s3429_s14, 4  ;;  %s1992_s29 = int_to_ptr.hbm [resolvable:$true] %s1991_s29 }
  0x11   :  { %v2202_v8 = vld [vmem:[%s3419_s4] ss:$0 sm:$0xff]  ;;  %v216_v28 = vunpack.c.l.bf16 %v81_v20  ;;  %v217_v40 = vunpack.c.h.bf16 %v81_v20  ;;  %v90_v59 = vld [vmem:[#allocation2 + $0x2c] sm:$0xff]   ;;  %v89_v61 = vld [vmem:[#allocation2 + $0x28] sm:$0xf]  ;;  %vm364_vm8 = vcmask 1046534  }
  0x12   :  { %158 = vmatpush.bf16.msra.mxu2 %v2184_v1  ;;  %v2203_v15 = vld [vmem:[%s3421_s6] ss:$0 sm:$0xff]  ;;  %v225_v0 = vunpack.c.l.bf16 %v90_v59  ;;  %v224_v4 = vunpack.c.l.bf16 %v89_v61  ;;  %vm366_vm9 = vcmask 1047559   ;;  %vm369_vm10 = vcmask 130048   ;;  %s1978_s27 = sshll.u32 %s2443_s26, 4  ;;  %s2444_s30 = smov [#allocation10]   ;;  %s1979_s27 = int_to_ptr.vmem [resolvable:$true] %s1978_s27 }
  0x13   :  { %v79_v17 = vld [vmem:[#allocation2] sm:$0xff]   ;;  %s1989_s15 = sshll.u32 %s2444_s30, 4  ;;  %s2445_s13 = smov [#allocation7]   ;;  %s1990_s15 = int_to_ptr.vmem [resolvable:$true] %s1989_s15 }
  0x14   :  { %199 = vmatpush.bf16.msra.mxu1 %v2186_v7  ;;  %v214_v23 = vunpack.c.l.bf16 %v79_v17  ;;  %v215_v36 = vunpack.c.h.bf16 %v79_v17  ;;  %v87_v46 = vld [vmem:[#allocation2 + $0x20] sm:$0xff]   ;;  %s1967_s18 = sshll.u32 %s2445_s13, 4  ;;  %s1969_s21 = sshll.u32 %s3427_s12, 4  ;;  %s1968_s18 = int_to_ptr.vmem [resolvable:$true] %s1967_s18  ;;  %s1970_s21 = int_to_ptr.hbm [resolvable:$true] %s1969_s21 }
  0x15   :  { %v222_v51 = vunpack.c.l.bf16 %v87_v46  ;;  %v223_v63 = vunpack.c.h.bf16 %v87_v46 }
  0x16   :  { %159 = vmatpush.bf16.msra.mxu2 %v2183_v2 }
  0x1a   :  { %160 = vmatpush.bf16.msra.mxu2 %v2182_v3 }
  0x1d   :  { %2027 = vmatmul.msk.bf16.vlgmr.msra.gmra.mxu2 %vm149_vm0, %v112_v5 }
  0xa0   :  { %v162_v9 = vpop.f32.mrf.mxu2 }
  0xa1   :  { %v163_v10 = vadd.f32 %v2202_v8, %v162_v9  ;;  %v93_v9 = vld [vmem:[#allocation2 + $0x38] sm:$0xff]  }
  0xa3   :  { %2206 = vtanh.f32 %v163_v10 }
  0xa8   :  { %v164_v11 = vpop.f32.mrf.mxu2 }
  0xa9   :  { %v2207_v12 = vpop.eup %2206  ;;  %v92_v11 = vld [vmem:[#allocation2 + $0x34] sm:$0xf] }
  0xaa   :  { %v1762_v13 = vsel %vm188_vm1, %v2207_v12, 0.0  ;;  %v167_v14 = vpack.c.bf16 %v2207_v12, %v2207_v12  ;;  %v227_v19 = vunpack.c.l.bf16 %v92_v11 }
  0xab   :  { %1767 = vst [vmem:[#allocation7 + $0x20] sm:$0xff] %v1762_v13  ;;  %v226_v13 = vunpack.c.h.bf16 %v90_v59 }
  0xac   :  { %2036 = vmatmul.msk.bf16.vlgmr.msra.gmra.mxu1 %vm188_vm1, %v167_v14 }
 0x129   :  { %v201_v16 = vpop.f32.mrf.mxu1 }
 0x12a   :  { %v202_v18 = vadd.f32 %v2203_v15, %v201_v16  ;;  %v228_v15 = vunpack.c.l.bf16 %v93_v9 }
 0x12c   :  { %v2556_v21 = vmul.f32 0.17677669, %v202_v18  ;;  %v1761_v22 = vsel %vm188_vm1, %v202_v18, 0.0 }
 0x12d   :  { %1766 = vst [vmem:[#allocation7 + $0x18] sm:$0xff] %v1761_v22 }
 0x12e   :  { %v230_v25 = vperm.slane %v2556_v21, 0  ;;  %v208_v26 = vrot.slane %v2556_v21, 2  ;;  %v207_v27 = vrot.slane %v2556_v21, 1  ;;  %v209_v42 = vrot.slane %v2556_v21, 3 }
 0x12f   :  { %v210_v47 = vrot.slane %v2556_v21, 4  ;;  %v211_v60 = vrot.slane %v2556_v21, 5  ;;  %v212_v6 = vrot.slane %v2556_v21, 6  ;;  %v213_v10 = vrot.slane %v2556_v21, 7 }
 0x130   :  { %v246_v29 = vmul.f32 %v230_v25, %v214_v23  ;;  %v232_v30 = vperm.slane %v208_v26, 0  ;;  %v231_v31 = vperm.slane %v207_v27, 0  ;;  %v247_v41 = vmul.f32 %v230_v25, %v215_v36 }
 0x131   :  { %v203_v32 = vpop.f32.mrf.mxu1  ;;  %v233_v50 = vperm.slane %v209_v42, 0  ;;  %v234_v54 = vperm.slane %v210_v47, 0  ;;  %v235_v3 = vperm.slane %v211_v60, 0  ;;  %v236_v14 = vperm.slane %v212_v6, 0 }
 0x132   :  { %v262_v33 = vsel %vm188_vm1, %v246_v29, 0.0  ;;  %v250_v34 = vmul.f32 %v232_v30, %v218_v24  ;;  %v248_v35 = vmul.f32 %v231_v31, %v216_v28  ;;  %v251_v44 = vmul.f32 %v232_v30, %v219_v39 }
 0x133   :  { %263 = vadd.xlane.f32.xlu0 %v262_v33  ;;  %v249_v45 = vmul.f32 %v231_v31, %v217_v40  ;;  %v265_v48 = vsel %vm188_vm1, %v247_v41, 0.0  ;;  %v252_v56 = vmul.f32 %v233_v50, %v220_v49  ;;  %v254_v57 = vmul.f32 %v234_v54, %v222_v51 }
 0x134   :  { %v274_v37 = vsel %vm188_vm1, %v250_v34, 0.0  ;;  %v268_v38 = vsel %vm188_vm1, %v248_v35, 0.0  ;;  %v277_v52 = vsel %vm188_vm1, %v251_v44, 0.0  ;;  %v253_v58 = vmul.f32 %v233_v50, %v221_v55 }
 0x135   :  { %275 = vadd.xlane.f32.xlu2 %v274_v37  ;;  %269 = vadd.xlane.f32.xlu1 %v268_v38  ;;  %v271_v53 = vsel %vm188_vm1, %v249_v45, 0.0  ;;  %v280_v62 = vsel %vm188_vm1, %v252_v56, 0.0  ;;  %v286_v1 = vsel %vm188_vm1, %v254_v57, 0.0  ;;  %v255_v5 = vmul.f32 %v234_v54, %v223_v63 }
 0x136   :  { %v283_v2 = vsel %vm188_vm1, %v253_v58, 0.0  ;;  %v257_v7 = vmul.f32 %v235_v3, %v225_v0  ;;  %v256_v8 = vmul.f32 %v235_v3, %v224_v4  ;;  %v237_v18 = vperm.slane %v213_v10, 0 }
 0x137   :  { %v289_v12 = vsel %vm188_vm1, %v255_v5, 0.0  ;;  %v258_v20 = vmul.f32 %v236_v14, %v226_v13  ;;  %v259_v23 = vmul.f32 %v236_v14, %v227_v19  ;;  %v229_v24 = vunpack.c.h.bf16 %v93_v9 }
 0x138   :  { %v295_v16 = vsel %vm188_vm1, %v257_v7, 0.0  ;;  %v292_v17 = vsel %vm188_vm1, %v256_v8, 0.0  ;;  %v260_v22 = vmul.f32 %v237_v18, %v228_v15  ;;  %v326_v38 = vlaneseq }
 0x139   :  { %v298_v21 = vsel %vm188_vm1, %v258_v20, 0.0  ;;  %v301_v26 = vsel %vm188_vm1, %v259_v23, 0.0  ;;  %v261_v27 = vmul.f32 %v237_v18, %v229_v24 }
 0x13a   :  { %v304_v25 = vsel %vm188_vm1, %v260_v22, 0.0  ;;  %v2601_v39 = vand.u32 127, %v326_v38 }
 0x13b   :  { %266 = vadd.xlane.f32.xlu0 %v265_v48  ;;  %v307_v28 = vsel %vm188_vm1, %v261_v27, 0.0 }
 0x13c   :  { %v2606_v41 = vadd.s32 4294967288, %v2601_v39 }
 0x13d   :  { %278 = vadd.xlane.f32.xlu2 %v277_v52  ;;  %272 = vadd.xlane.f32.xlu1 %v271_v53 }
 0x143   :  { %281 = vadd.xlane.f32.xlu0 %v280_v62 }
 0x145   :  { %287 = vadd.xlane.f32.xlu2 %v286_v1  ;;  %284 = vadd.xlane.f32.xlu1 %v283_v2 }
 0x14b   :  { %290 = vadd.xlane.f32.xlu0 %v289_v12 }
 0x14d   :  { %296 = vadd.xlane.f32.xlu2 %v295_v16  ;;  %293 = vadd.xlane.f32.xlu1 %v292_v17  ;;  %v2442_v16 = vmov 0  }
 0x14e   :  { %2201 = vset.pattern.permute.xlu1 %v2442_v16  ;;  %2200 = vset.pattern.permute.xlu0 %v2442_v16 }
 0x14f   :  { %2199 = vset.pattern.permute.xlu2 %v2442_v16 }
 0x153   :  { %299 = vadd.xlane.f32.xlu0 %v298_v21 }
 0x155   :  { %305 = vadd.xlane.f32.xlu2 %v304_v25  ;;  %302 = vadd.xlane.f32.xlu1 %v301_v26 }
 0x15b   :  { %308 = vadd.xlane.f32.xlu0 %v307_v28 }
 0x1a6   :  { %v2583_v29 = vpop.xlane.xlu0 %263 }
 0x1a7   :  { %v328_v48 = vperm.slane %v2583_v29, %v2601_v39 }
 0x1a8   :  { %v2585_v30 = vpop.xlane.xlu2 %275  ;;  %v2587_v31 = vpop.xlane.xlu1 %269 }
 0x1a9   :  { %v333_v45 = vperm.slane %v2587_v31, %v2601_v39  ;;  %v336_v51 = vperm.slane %v2585_v30, %v2601_v39 }
 0x1ae   :  { %v2589_v32 = vpop.xlane.xlu0 %266 }
 0x1af   :  { %v330_v46 = vperm.slane %v2589_v32, %v2606_v41 }
 0x1b0   :  { %v2591_v33 = vpop.xlane.xlu2 %278  ;;  %v2593_v34 = vpop.xlane.xlu1 %272 }
 0x1b1   :  { %v334_v43 = vperm.slane %v2593_v34, %v2606_v41  ;;  %v337_v47 = vperm.slane %v2591_v33, %v2606_v41  ;;  %v332_v54 = vsel %vm331_vm2, %v330_v46, %v328_v48 }
 0x1b3   :  { %v335_v49 = vsel %vm331_vm2, %v334_v43, %v333_v45  ;;  %v338_v56 = vsel %vm331_vm2, %v337_v47, %v336_v51 }
 0x1b4   :  { %v355_v57 = vsel %vm354_vm3, %v335_v49, %v332_v54 }
 0x1b5   :  { %v357_v1 = vsel %vm356_vm4, %v338_v56, %v355_v57 }
 0x1b6   :  { %v2595_v35 = vpop.xlane.xlu0 %281 }
 0x1b7   :  { %v339_v55 = vperm.slane %v2595_v35, %v2601_v39 }
 0x1b8   :  { %v2597_v36 = vpop.xlane.xlu2 %287  ;;  %v2599_v37 = vpop.xlane.xlu1 %284 }
 0x1b9   :  { %v340_v50 = vperm.slane %v2599_v37, %v2606_v41  ;;  %v342_v58 = vperm.slane %v2597_v36, %v2601_v39 }
 0x1bb   :  { %v341_v60 = vsel %vm331_vm2, %v340_v50, %v339_v55 }
 0x1bc   :  { %v359_v2 = vsel %vm358_vm5, %v341_v60, %v357_v1 }
 0x1be   :  { %v2603_v40 = vpop.xlane.xlu0 %290 }
 0x1bf   :  { %v343_v52 = vperm.slane %v2603_v40, %v2606_v41 }
 0x1c0   :  { %v2608_v42 = vpop.xlane.xlu1 %293  ;;  %v2612_v44 = vpop.xlane.xlu2 %296 }
 0x1c1   :  { %v346_v61 = vperm.slane %v2612_v44, %v2606_v41  ;;  %v345_v62 = vperm.slane %v2608_v42, %v2601_v39  ;;  %v344_v63 = vsel %vm331_vm2, %v343_v52, %v342_v58 }
 0x1c2   :  { %v361_v6 = vsel %vm360_vm6, %v344_v63, %v359_v2 }
 0x1c3   :  { %v347_v5 = vsel %vm331_vm2, %v346_v61, %v345_v62 }
 0x1c4   :  { %v363_v11 = vsel %vm362_vm7, %v347_v5, %v361_v6 }
 0x1c6   :  { %v2629_v53 = vpop.xlane.xlu0 %299 }
 0x1c7   :  { %v348_v3 = vperm.slane %v2629_v53, %v2601_v39 }
 0x1c8   :  { %v2638_v59 = vpop.xlane.xlu1 %302  ;;  %v2652_v4 = vpop.xlane.xlu2 %305 }
 0x1c9   :  { %v349_v0 = vperm.slane %v2638_v59, %v2606_v41  ;;  %v351_v9 = vperm.slane %v2652_v4, %v2601_v39 }
 0x1cb   :  { %v350_v8 = vsel %vm331_vm2, %v349_v0, %v348_v3 }
 0x1cc   :  { %v365_v13 = vsel %vm364_vm8, %v350_v8, %v363_v11 }
 0x1ce   :  { %v2656_v7 = vpop.xlane.xlu0 %308 }
 0x1cf   :  { %v352_v10 = vperm.slane %v2656_v7, %v2606_v41 }
 0x1d1   :  { %v353_v12 = vsel %vm331_vm2, %v352_v10, %v351_v9 }
 0x1d2   :  { %v367_v14 = vsel %vm366_vm9, %v353_v12, %v365_v13 }
 0x1d3   :  { %v370_v15 = vsel %vm369_vm10, %v367_v14, -inf }
 0x1d4   :  { %371 = vmax.xlane.f32.xlu1 %v370_v15 }
 0x247   :  { %v2668_v17 = vpop.xlane.xlu1 %371 }
 0x248   :  { %v375_v18 = vperm.slane %v2668_v17, 1  ;;  %v374_v19 = vperm.slane %v2668_v17, 0  ;;  %v376_v21 = vperm.slane %v2668_v17, 2  ;;  %v378_v24 = vperm.slane %v2668_v17, 4 }
 0x249   :  { %v379_v45 = vperm.slane %v2668_v17, 5  ;;  %v381_v52 = vperm.slane %v2668_v17, 7  ;;  %v380_v60 = vperm.slane %v2668_v17, 6 }
 0x24a   :  { %v392_v20 = vsub.f32 %v2587_v31, %v375_v18  ;;  %v391_v22 = vsub.f32 %v2589_v32, %v374_v19  ;;  %v390_v23 = vsub.f32 %v2583_v29, %v374_v19  ;;  %v395_v28 = vsub.f32 %v2591_v33, %v376_v21 }
 0x24b   :  { %v398_v38 = vsub.f32 %v2597_v36, %v378_v24  ;;  %v393_v31 = vsub.f32 %v2593_v34, %v375_v18  ;;  %v377_v32 = vperm.slane %v2668_v17, 3  ;;  %v401_v36 = vsub.f32 %v2612_v44, %v379_v45 }
 0x24c   :  { %v410_v25 = vmul.f32 1.442695, %v392_v20  ;;  %v408_v26 = vmul.f32 1.442695, %v391_v22  ;;  %v406_v27 = vmul.f32 1.442695, %v390_v23  ;;  %v394_v49 = vsub.f32 %v2585_v30, %v376_v21 }
 0x24d   :  { %v416_v43 = vmul.f32 1.442695, %v395_v28  ;;  %v422_v29 = vmul.f32 1.442695, %v398_v38  ;;  %v412_v47 = vmul.f32 1.442695, %v393_v31  ;;  %v397_v34 = vsub.f32 %v2599_v37, %v377_v32 }
 0x24e   :  { %2208 = vpow2.f32 %v410_v25  ;;  %v428_v51 = vmul.f32 1.442695, %v401_v36  ;;  %v414_v55 = vmul.f32 1.442695, %v394_v49  ;;  %v400_v44 = vsub.f32 %v2608_v42, %v379_v45 }
 0x24f   :  { %2210 = vpow2.f32 %v408_v26  ;;  %v420_v50 = vmul.f32 1.442695, %v397_v34  ;;  %v404_v30 = vsub.f32 %v2652_v4, %v381_v52  ;;  %v396_v57 = vsub.f32 %v2595_v35, %v377_v32 }
 0x250   :  { %2212 = vpow2.f32 %v406_v27  ;;  %v426_v58 = vmul.f32 1.442695, %v400_v44  ;;  %v403_v1 = vsub.f32 %v2638_v59, %v380_v60  ;;  %v399_v35 = vsub.f32 %v2603_v40, %v378_v24 }
 0x251   :  { %2214 = vpow2.f32 %v416_v43  ;;  %v434_v61 = vmul.f32 1.442695, %v404_v30  ;;  %v418_v63 = vmul.f32 1.442695, %v396_v57  ;;  %v402_v59 = vsub.f32 %v2629_v53, %v380_v60 }
 0x252   :  { %2216 = vpow2.f32 %v422_v29  ;;  %v432_v2 = vmul.f32 1.442695, %v403_v1  ;;  %v424_v4 = vmul.f32 1.442695, %v399_v35  ;;  %v405_v10 = vsub.f32 %v2656_v7, %v381_v52 }
 0x253   :  { %2218 = vpow2.f32 %v412_v47  ;;  %v430_v40 = vmul.f32 1.442695, %v402_v59 }
 0x254   :  { %v2682_v46 = vpop.eup %2208  ;;  %2220 = vpow2.f32 %v420_v50  ;;  %v436_v11 = vmul.f32 1.442695, %v405_v10 }
 0x255   :  { %v2684_v48 = vpop.eup %2210  ;;  %461 = vperm.xlu1 %2201, %v2682_v46   ;;  %2222 = vpow2.f32 %v428_v51 }
 0x256   :  { %v2687_v33 = vpop.eup %2212  ;;  %458 = vperm.xlu0 %2200, %v2684_v48   ;;  %2224 = vpow2.f32 %v414_v55 }
 0x257   :  { %455 = vperm.xlu2 %2199, %v2687_v33   ;;  %v2695_v54 = vpop.eup %2214  ;;  %2226 = vpow2.f32 %v426_v58 }
 0x258   :  { %v2697_v56 = vpop.eup %2216  ;;  %2228 = vpow2.f32 %v434_v61 }
 0x259   :  { %v2700_v37 = vpop.eup %2218  ;;  %2230 = vpow2.f32 %v418_v63 }
 0x25a   :  { %v2708_v62 = vpop.eup %2220  ;;  %2232 = vpow2.f32 %v432_v2 }
 0x25b   :  { %v2710_v0 = vpop.eup %2222  ;;  %2234 = vpow2.f32 %v424_v4 }
 0x25c   :  { %v2713_v42 = vpop.eup %2224  ;;  %2236 = vpow2.f32 %v430_v40 }
 0x25d   :  { %470 = vperm.xlu1 %2201, %v2695_v54   ;;  %v2719_v3 = vpop.eup %2226  ;;  %2238 = vpow2.f32 %v436_v11 }
 0x25e   :  { %479 = vperm.xlu0 %2200, %v2697_v56   ;;  %v2721_v5 = vpop.eup %2228 }
 0x25f   :  { %464 = vperm.xlu2 %2199, %v2700_v37   ;;  %v2724_v6 = vpop.eup %2230 }
 0x260   :  { %v2729_v8 = vpop.eup %2232 }
 0x261   :  { %v2732_v9 = vpop.eup %2234 }
 0x262   :  { %v2736_v12 = vpop.eup %2236 }
 0x263   :  { %v2739_v13 = vpop.eup %2238 }
 0x265   :  { %476 = vperm.xlu1 %2201, %v2708_v62  }
 0x266   :  { %488 = vperm.xlu0 %2200, %v2710_v0  }
 0x267   :  { %467 = vperm.xlu2 %2199, %v2713_v42  }
 0x26d   :  { %485 = vperm.xlu1 %2201, %v2719_v3  }
 0x26e   :  { %497 = vperm.xlu0 %2200, %v2721_v5  }
 0x26f   :  { %473 = vperm.xlu2 %2199, %v2724_v6  }
 0x275   :  { %494 = vperm.xlu1 %2201, %v2729_v8  }
 0x277   :  { %482 = vperm.xlu2 %2199, %v2732_v9  }
 0x27f   :  { %491 = vperm.xlu2 %2199, %v2736_v12  }
 0x287   :  { %500 = vperm.xlu2 %2199, %v2739_v13  }
 0x2b1   :  { %v456_v53 = vpop.permute.xlu2 %455 }
 0x2b2   :  { %v502_v27 = vperm.slane %v456_v53, %v2601_v39 }
 0x2b9   :  { %v465_v14 = vpop.permute.xlu2 %464 }
 0x2ba   :  { %v506_v28 = vperm.slane %v465_v14, %v2606_v41 }
 0x2c1   :  { %v468_v15 = vpop.permute.xlu2 %467 }
 0x2c2   :  { %v508_v43 = vperm.slane %v468_v15, %v2601_v39 }
 0x2c7   :  { %v462_v16 = vpop.permute.xlu1 %461 }
 0x2c8   :  { %v459_v17 = vpop.permute.xlu0 %458  ;;  %v505_v24 = vperm.slane %v462_v16, %v2601_v39 }
 0x2c9   :  { %v474_v18 = vpop.permute.xlu2 %473  ;;  %v503_v25 = vperm.slane %v459_v17, %v2606_v41 }
 0x2ca   :  { %v507_v32 = vsel %vm331_vm2, %v506_v28, %v505_v24  ;;  %v511_v45 = vperm.slane %v474_v18, %v2601_v39 }
 0x2cb   :  { %v504_v29 = vsel %vm331_vm2, %v503_v25, %v502_v27 }
 0x2cc   :  { %v526_v49 = vsel %vm354_vm3, %v507_v32, %v504_v29  ;;  %v2171_v32 = vld [vmem:[#allocation2 + $0x28] sm:$0xff] }
 0x2cd   :  { %815 = vmatpush.bf16.msra.mxu0 %v2171_v32 }
 0x2cf   :  { %v471_v19 = vpop.permute.xlu1 %470 }
 0x2d0   :  { %v480_v20 = vpop.permute.xlu0 %479  ;;  %v509_v26 = vperm.slane %v471_v19, %v2606_v41 }
 0x2d1   :  { %v483_v22 = vpop.permute.xlu2 %482  ;;  %v514_v50 = vperm.slane %v480_v20, %v2601_v39 }
 0x2d2   :  { %v510_v47 = vsel %vm331_vm2, %v509_v26, %v508_v43  ;;  %v515_v51 = vperm.slane %v483_v22, %v2606_v41  ;;  %v2188_v43 = vld [vmem:[%s3422_s7] sm:$0xff] }
 0x2d3   :  { %v527_v44 = vsel %vm356_vm4, %v510_v47, %v526_v49  ;;  %982 = vmatpush.bf16.msrb.mxu0 %v2188_v43 }
 0x2d4   :  { %v516_v1 = vsel %vm331_vm2, %v515_v51, %v514_v50 }
 0x2d7   :  { %v477_v7 = vpop.permute.xlu1 %476 }
 0x2d8   :  { %v489_v23 = vpop.permute.xlu0 %488  ;;  %v512_v38 = vperm.slane %v477_v7, %v2606_v41 }
 0x2d9   :  { %v492_v21 = vpop.permute.xlu2 %491  ;;  %v518_v30 = vperm.slane %v489_v23, %v2606_v41 }
 0x2da   :  { %v513_v34 = vsel %vm331_vm2, %v512_v38, %v511_v45  ;;  %v520_v35 = vperm.slane %v492_v21, %v2601_v39 }
 0x2db   :  { %v528_v57 = vsel %vm358_vm5, %v513_v34, %v527_v44 }
 0x2dc   :  { %v529_v4 = vsel %vm360_vm6, %v516_v1, %v528_v57  ;;  %v2174_v57 = vld [vmem:[#allocation5] sm:$0xff]  ;;  %v2823_v1 = vld [vmem:[#allocation5 + $0x10] sm:$0xff] }
 0x2df   :  { %v486_v31 = vpop.permute.xlu1 %485 }
 0x2e0   :  { %v517_v36 = vperm.slane %v486_v31, %v2601_v39  ;;  %v498_v52 = vpop.permute.xlu0 %497 }
 0x2e1   :  { %v501_v55 = vpop.permute.xlu2 %500  ;;  %v523_v60 = vperm.slane %v498_v52, %v2601_v39 }
 0x2e2   :  { %v519_v58 = vsel %vm331_vm2, %v518_v30, %v517_v36  ;;  %v524_v61 = vperm.slane %v501_v55, %v2606_v41 }
 0x2e3   :  { %v530_v40 = vsel %vm362_vm7, %v519_v58, %v529_v4  ;;  %v2177_v58 = vld [vmem:[#allocation5 + $0x18] sm:$0xff] }
 0x2e4   :  { %v525_v10 = vsel %vm331_vm2, %v524_v61, %v523_v60  ;;  %v2811_v60 = vld [vmem:[#allocation5 + $0x20] sm:$0xff]  ;;  %v2815_v61 = vld [vmem:[#allocation5 + $0x8] sm:$0xff] }
 0x2e7   :  { %v495_v63 = vpop.permute.xlu1 %494 }
 0x2e8   :  { %v521_v2 = vperm.slane %v495_v63, %v2606_v41  ;;  %v2819_v63 = vld [vmem:[#allocation5 + $0x28] sm:$0xff] }
 0x2ea   :  { %v522_v59 = vsel %vm331_vm2, %v521_v2, %v520_v35  ;;  %v2180_v35 = vld [vmem:[#allocation5 + $0x30] sm:$0xff]  ;;  %v2181_v2 = vld [vmem:[#allocation5 + $0x38] sm:$0xff] }
 0x2eb   :  { %v531_v11 = vsel %vm364_vm8, %v522_v59, %v530_v40 }
 0x2ec   :  { %v532_v53 = vsel %vm366_vm9, %v525_v10, %v531_v11 }
 0x2ed   :  { %v534_v14 = vsel %vm369_vm10, %v532_v53, 0.0  ;;  %v2836_v53 = vld [vmem:[%s3423_s8] ss:$0 sm:$0xff] }
 0x2ee   :  { %535 = vadd.xlane.f32.xlu1 %v534_v14 }
 0x361   :  { %v536_v15 = vpop.xlane.xlu1 %535 }
 0x362   :  { %2240 = vrcp.f32 %v536_v15 }
 0x368   :  { %v2774_v16 = vpop.eup %2240 }
 0x369   :  { %v543_v17 = vperm.slane %v2774_v16, 4  ;;  %v544_v18 = vperm.slane %v2774_v16, 5 }
 0x36b   :  { %v2779_v19 = vmul.f32 %v2732_v9, %v543_v17  ;;  %v2782_v20 = vmul.f32 %v2697_v56, %v543_v17  ;;  %v2789_v23 = vmul.f32 %v2710_v0, %v544_v18  ;;  %v2792_v21 = vmul.f32 %v2719_v3, %v544_v18  ;;  %v2170_v3 = vld [vmem:[#allocation2 + $0x20] sm:$0xff] }
 0x36c   :  { %776 = vmatpush.bf16.msrb.mxu1 %v2170_v3 }
 0x36d   :  { %v580_v22 = vpack.c.bf16 %v2779_v19, %v2779_v19  ;;  %v579_v7 = vpack.c.bf16 %v2782_v20, %v2782_v20  ;;  %v582_v56 = vpack.c.bf16 %v2789_v23, %v2789_v23  ;;  %v581_v27 = vpack.c.bf16 %v2792_v21, %v2792_v21 }
 0x36f   :  { %v746_v24 = vunpack.c.l.b16 %v580_v22  ;;  %v745_v25 = vunpack.c.l.b16 %v579_v7  ;;  %v785_v28 = vunpack.c.l.b16 %v582_v56  ;;  %v784_v38 = vunpack.c.l.b16 %v581_v27  ;;  %v1040_v22 = vld [vmem:[%s3424_s9] sm:$0x1] }
 0x370   :  { %2190 = vmatpush.bf16.msra.mxu1 %v2188_v43 }
 0x371   :  { %v2066_v26 = vunpack.i.l.s16 %v746_v24  ;;  %v2065_v9 = vunpack.i.l.s16 %v745_v25  ;;  %v2073_v31 = vunpack.i.l.s16 %v785_v28  ;;  %v2072_v0 = vunpack.i.l.s16 %v784_v38 }
 0x372   :  { %v1041_v24 = vunpack.c.l.bf16 %v1040_v22 }
 0x373   :  { %754 = vperm.xlu2 %2199, %v2066_v26   ;;  %751 = vperm.xlu0 %2200, %v2065_v9  }
 0x374   :  { %v2844_v9 = vperm.slane %v1041_v24, 0 }
 0x37b   :  { %793 = vperm.xlu2 %2199, %v2073_v31   ;;  %790 = vperm.xlu0 %2200, %v2072_v0  }
 0x3cd   :  { %v755_v29 = vpop.permute.xlu2 %754 }
 0x3ce   :  { %v757_v47 = vperm.slane %v755_v29, %v2606_v41 }
 0x3d5   :  { %v794_v50 = vpop.permute.xlu2 %793 }
 0x3d6   :  { %v796_v52 = vperm.slane %v794_v50, %v2606_v41 }
 0x3e5   :  { %v752_v45 = vpop.permute.xlu0 %751 }
 0x3e6   :  { %v756_v34 = vperm.slane %v752_v45, %v2601_v39 }
 0x3e8   :  { %v758_v36 = vsel %vm331_vm2, %v757_v47, %v756_v34 }
 0x3e9   :  { %v759_v49 = vpack.c.b16 %v758_v36, %v758_v36 }
 0x3eb   :  { %2071 = vmatmul.msk.bf16.vlgmr.msrb.gmra.mxu1 %vm369_vm10, %v759_v49 }
 0x3ed   :  { %v791_v51 = vpop.permute.xlu0 %790 }
 0x3ee   :  { %v795_v55 = vperm.slane %v791_v51, %v2601_v39 }
 0x3f0   :  { %v797_v44 = vsel %vm331_vm2, %v796_v52, %v795_v55 }
 0x3f1   :  { %v798_v30 = vpack.c.b16 %v797_v44, %v797_v44 }
 0x3f3   :  { %2078 = vmatmul.msk.bf16.vlgmr.msra.gmra.mxu0 %vm369_vm10, %v798_v30 }
 0x3f4   :  { %1400 = vmatpush.bf16.msra.mxu0 %v2174_v57 }
 0x3fb   :  { %2132 = vmatmul.msk.bf16.vlgmr.msra.gmra.mxu1 %vm369_vm10, %v2177_v58 }
 0x403   :  { %2129 = vmatmul.msk.bf16.vlgmr.msrb.gmra.mxu0 %vm369_vm10, %v2174_v57 }
 0x404   :  { %1502 = vmatpush.bf16.msrb.mxu0 %v2177_v58 }
 0x40b   :  { %2133 = vmatmul.msk.bf16.gmra.mxu1 %vm369_vm10, %v2811_v60 }
 0x413   :  { %2130 = vmatmul.msk.bf16.gmra.mxu0 %vm369_vm10, %v2815_v61 }
 0x41b   :  { %2134 = vmatmul.msk.bf16.gmra.mxu1 %vm369_vm10, %v2819_v63 }
 0x423   :  { %2131 = vmatmul.msk.bf16.gmra.mxu0 %vm369_vm10, %v2823_v1 }
 0x42b   :  { %2135 = vmatmul.msk.bf16.gmra.mxu1 %vm369_vm10, %v2180_v35 }
 0x43b   :  { %2136 = vmatmul.msk.bf16.gmra.mxu1 %vm369_vm10, %v2181_v2 }
 0x468   :  { %v2829_v4 = vpop.f32.mrf.mxu1 }
 0x470   :  { %v780_v59 = vpop.f32.mrf.mxu1  ;;  %v2831_v40 = vpop.f32.mrf.mxu0 }
 0x478   :  { %v819_v10 = vpop.f32.mrf.mxu0  ;;  %v999_v11 = vpop.f32.mrf.mxu1 }
 0x479   :  { %v1000_v7 = vadd.f32 %v2836_v53, %v999_v11 }
 0x480   :  { %v984_v14 = vpop.f32.mrf.mxu0  ;;  %v1001_v15 = vpop.f32.mrf.mxu1 }
 0x481   :  { %v985_v17 = vadd.f32 %v2836_v53, %v984_v14  ;;  %v1002_v18 = vadd.f32 %v2836_v53, %v1001_v15 }
 0x483   :  { %2242 = vtanh.f32 %v985_v17 }
 0x484   :  { %2244 = vtanh.f32 %v1002_v18 }
 0x485   :  { %2246 = vtanh.f32 %v1000_v7 }
 0x488   :  { %v986_v25 = vpop.f32.mrf.mxu0  ;;  %v1004_v26 = vpop.f32.mrf.mxu1 }
 0x489   :  { %v2243_v56 = vpop.eup %2242  ;;  %v987_v27 = vadd.f32 %v2836_v53, %v986_v25  ;;  %v1005_v31 = vadd.f32 %v2836_v53, %v1004_v26 }
 0x48a   :  { %v2245_v28 = vpop.eup %2244  ;;  %v1043_v38 = vmul.f32 %v2243_v56, %v2844_v9 }
 0x48b   :  { %2248 = vtanh.f32 %v987_v27  ;;  %v1050_v0 = vmul.f32 %v2245_v28, %v2844_v9  ;;  %v2247_v43 = vpop.eup %2246 }
 0x48c   :  { %v1059_v3 = vsel %vm188_vm1, %v1043_v38, 0.0  ;;  %2250 = vtanh.f32 %v1005_v31  ;;  %v1049_v47 = vmul.f32 %v2247_v43, %v2844_v9 }
 0x48d   :  { %v1080_v32 = vsel %vm188_vm1, %v1050_v0, 0.0  ;;  %1060 = vadd.xlane.f32.xlu0 %v1059_v3 }
 0x48e   :  { %1081 = vadd.xlane.f32.xlu1 %v1080_v32  ;;  %v1077_v52 = vsel %vm188_vm1, %v1049_v47, 0.0 }
 0x490   :  { %v989_v29 = vpop.f32.mrf.mxu0  ;;  %v1006_v45 = vpop.f32.mrf.mxu1 }
 0x491   :  { %v2249_v34 = vpop.eup %2248  ;;  %v990_v36 = vadd.f32 %v2836_v53, %v989_v29  ;;  %v1007_v49 = vadd.f32 %v2836_v53, %v1006_v45 }
 0x492   :  { %v1044_v50 = vmul.f32 %v2249_v34, %v2844_v9  ;;  %v2251_v55 = vpop.eup %2250 }
 0x493   :  { %2252 = vtanh.f32 %v990_v36  ;;  %v1051_v57 = vmul.f32 %v2251_v55, %v2844_v9 }
 0x494   :  { %2254 = vtanh.f32 %v1007_v49  ;;  %v1062_v51 = vsel %vm188_vm1, %v1044_v50, 0.0 }
 0x495   :  { %1063 = vadd.xlane.f32.xlu2 %v1062_v51  ;;  %1078 = vadd.xlane.f32.xlu0 %v1077_v52  ;;  %v1083_v14 = vsel %vm188_vm1, %v1051_v57, 0.0 }
 0x498   :  { %v991_v44 = vpop.f32.mrf.mxu0  ;;  %v1009_v30 = vpop.f32.mrf.mxu1 }
 0x499   :  { %v2253_v58 = vpop.eup %2252  ;;  %v992_v35 = vadd.f32 %v2836_v53, %v991_v44  ;;  %v1010_v25 = vadd.f32 %v2836_v53, %v1009_v30 }
 0x49a   :  { %v2255_v2 = vpop.eup %2254  ;;  %v1045_v59 = vmul.f32 %v2253_v58, %v2844_v9 }
 0x49b   :  { %2256 = vtanh.f32 %v992_v35  ;;  %v1052_v10 = vmul.f32 %v2255_v2, %v2844_v9 }
 0x49c   :  { %v1065_v11 = vsel %vm188_vm1, %v1045_v59, 0.0 }
 0x49d   :  { %1066 = vadd.xlane.f32.xlu1 %v1065_v11  ;;  %1084 = vadd.xlane.f32.xlu2 %v1083_v14  ;;  %v1086_v15 = vsel %vm188_vm1, %v1052_v10, 0.0 }
 0x49e   :  { %1087 = vadd.xlane.f32.xlu0 %v1086_v15 }
 0x4a0   :  { %v994_v17 = vpop.f32.mrf.mxu0  ;;  %v1011_v18 = vpop.f32.mrf.mxu1 }
 0x4a1   :  { %v2257_v22 = vpop.eup %2256  ;;  %v995_v7 = vadd.f32 %v2836_v53, %v994_v17  ;;  %v1012_v3 = vadd.f32 %v2836_v53, %v1011_v18 }
 0x4a2   :  { %v1046_v24 = vmul.f32 %v2257_v22, %v2844_v9  ;;  %v540_v22 = vperm.slane %v2774_v16, 1 }
 0x4a3   :  { %2258 = vtanh.f32 %v995_v7 }
 0x4a4   :  { %v1068_v26 = vsel %vm188_vm1, %v1046_v24, 0.0  ;;  %2260 = vtanh.f32 %v1010_v25  ;;  %v2893_v7 = vmul.f32 %v2682_v46, %v540_v22 }
 0x4a5   :  { %1069 = vadd.xlane.f32.xlu1 %v1068_v26  ;;  %v539_v26 = vperm.slane %v2774_v16, 0 }
 0x4a7   :  { %v2906_v46 = vmul.f32 %v2684_v48, %v539_v26 }
 0x4a8   :  { %v996_v56 = vpop.f32.mrf.mxu0  ;;  %v1014_v27 = vpop.f32.mrf.mxu1 }
 0x4a9   :  { %v2259_v28 = vpop.eup %2258  ;;  %v997_v38 = vadd.f32 %v2836_v53, %v996_v56  ;;  %v1015_v31 = vadd.f32 %v2836_v53, %v1014_v27  ;;  %v573_v56 = vpack.c.bf16 %v2893_v7, %v2893_v7  ;;  %v2901_v27 = vmul.f32 %v2687_v33, %v539_v26 }
 0x4aa   :  { %v1047_v0 = vmul.f32 %v2259_v28, %v2844_v9  ;;  %v2261_v32 = vpop.eup %2260 }
 0x4ab   :  { %2262 = vtanh.f32 %v997_v38  ;;  %v1053_v45 = vmul.f32 %v2261_v32, %v2844_v9  ;;  %v628_v28 = vunpack.c.l.b16 %v573_v56  ;;  %v571_v38 = vpack.c.bf16 %v2901_v27, %v2901_v27 }
 0x4ac   :  { %2264 = vtanh.f32 %v1015_v31  ;;  %v1071_v43 = vsel %vm188_vm1, %v1047_v0, 0.0  ;;  %v572_v0 = vpack.c.bf16 %v2906_v46, %v2906_v46 }
 0x4ad   :  { %1072 = vadd.xlane.f32.xlu1 %v1071_v43  ;;  %2266 = vtanh.f32 %v1012_v3  ;;  %v1089_v51 = vsel %vm188_vm1, %v1053_v45, 0.0  ;;  %v2044_v31 = vunpack.i.l.s16 %v628_v28 }
 0x4ae   :  { %v590_v43 = vunpack.c.l.b16 %v572_v0 }
 0x4b0   :  { %v1016_v29 = vpop.f32.mrf.mxu1  ;;  %v2038_v32 = vunpack.i.l.s16 %v590_v43 }
 0x4b1   :  { %v2263_v47 = vpop.eup %2262  ;;  %v1017_v34 = vadd.f32 %v2836_v53, %v1016_v29 }
 0x4b2   :  { %v2265_v36 = vpop.eup %2264  ;;  %v1048_v49 = vmul.f32 %v2263_v47, %v2844_v9 }
 0x4b3   :  { %2268 = vtanh.f32 %v1017_v34  ;;  %v1055_v50 = vmul.f32 %v2265_v36, %v2844_v9  ;;  %v2267_v55 = vpop.eup %2266 }
 0x4b4   :  { %v1074_v52 = vsel %vm188_vm1, %v1048_v49, 0.0  ;;  %v1054_v57 = vmul.f32 %v2267_v55, %v2844_v9 }
 0x4b5   :  { %1090 = vadd.xlane.f32.xlu1 %v1089_v51  ;;  %1075 = vadd.xlane.f32.xlu2 %v1074_v52  ;;  %v1095_v44 = vsel %vm188_vm1, %v1055_v50, 0.0 }
 0x4b6   :  { %1096 = vadd.xlane.f32.xlu0 %v1095_v44  ;;  %v1092_v10 = vsel %vm188_vm1, %v1054_v57, 0.0 }
 0x4b8   :  { %v1019_v30 = vpop.f32.mrf.mxu1 }
 0x4b9   :  { %v2269_v58 = vpop.eup %2268  ;;  %v1020_v35 = vadd.f32 %v2836_v53, %v1019_v30 }
 0x4ba   :  { %v1056_v2 = vmul.f32 %v2269_v58, %v2844_v9 }
 0x4bb   :  { %2270 = vtanh.f32 %v1020_v35 }
 0x4bc   :  { %v1098_v59 = vsel %vm188_vm1, %v1056_v2, 0.0 }
 0x4bd   :  { %1099 = vadd.xlane.f32.xlu1 %v1098_v59  ;;  %1093 = vadd.xlane.f32.xlu2 %v1092_v10  ;;  %v2166_v59 = vld [vmem:[#allocation2] sm:$0xff] }
 0x4be   :  { %620 = vmatpush.bf16.msra.mxu3 %v2166_v59 }
 0x4c0   :  { %v1021_v11 = vpop.f32.mrf.mxu1 }
 0x4c1   :  { %v2271_v14 = vpop.eup %2270  ;;  %v1022_v15 = vadd.f32 %v2836_v53, %v1021_v11 }
 0x4c2   :  { %v1057_v17 = vmul.f32 %v2271_v14, %v2844_v9 }
 0x4c3   :  { %2272 = vtanh.f32 %v1022_v15 }
 0x4c4   :  { %v1101_v18 = vsel %vm188_vm1, %v1057_v17, 0.0 }
 0x4c5   :  { %1102 = vadd.xlane.f32.xlu2 %v1101_v18 }
 0x4c9   :  { %v2273_v24 = vpop.eup %2272 }
 0x4ca   :  { %v1058_v25 = vmul.f32 %v2273_v24, %v2844_v9  ;;  %v589_v9 = vunpack.c.l.b16 %v571_v38 }
 0x4cc   :  { %v1104_v53 = vsel %vm188_vm1, %v1058_v25, 0.0  ;;  %v2037_v3 = vunpack.i.l.s16 %v589_v9 }
 0x4cd   :  { %1105 = vadd.xlane.f32.xlu0 %v1104_v53 }
 0x4d6   :  { %634 = vperm.xlu1 %2201, %v2044_v31  }
 0x4dd   :  { %595 = vperm.xlu2 %2199, %v2037_v3  }
 0x4e1   :  { %598 = vperm.xlu0 %2200, %v2038_v32  }
 0x500   :  { %v1061_v34 = vpop.xlane.xlu0 %1060 }
 0x501   :  { %v2910_v33 = vpop.xlane.xlu1 %1081  ;;  %v1123_v58 = vperm.slane %v1061_v34, %v2601_v39 }
 0x502   :  { %v1133_v24 = vperm.slane %v2910_v33, %v2606_v41 }
 0x508   :  { %v1064_v45 = vpop.xlane.xlu2 %1063  ;;  %v2918_v49 = vpop.xlane.xlu0 %1078 }
 0x509   :  { %v1124_v35 = vperm.slane %v1064_v45, %v2606_v41  ;;  %v1132_v15 = vperm.slane %v2918_v49, %v2601_v39 }
 0x50b   :  { %v1125_v14 = vsel %vm331_vm2, %v1124_v35, %v1123_v58  ;;  %v1134_v38 = vsel %vm331_vm2, %v1133_v24, %v1132_v15 }
 0x510   :  { %v1067_v29 = vpop.xlane.xlu1 %1066  ;;  %v2914_v48 = vpop.xlane.xlu2 %1084 }
 0x511   :  { %v2922_v52 = vpop.xlane.xlu0 %1087  ;;  %v1126_v55 = vperm.slane %v1067_v29, %v2601_v39  ;;  %v1135_v56 = vperm.slane %v2914_v48, %v2601_v39 }
 0x512   :  { %v1136_v28 = vperm.slane %v2922_v52, %v2606_v41 }
 0x514   :  { %v1137_v43 = vsel %vm331_vm2, %v1136_v28, %v1135_v56 }
 0x518   :  { %v2912_v47 = vpop.xlane.xlu1 %1069 }
 0x519   :  { %v1127_v44 = vperm.slane %v2912_v47, %v2606_v41 }
 0x51b   :  { %v1128_v10 = vsel %vm331_vm2, %v1127_v44, %v1126_v55 }
 0x51c   :  { %v1147_v17 = vsel %vm354_vm3, %v1128_v10, %v1125_v14 }
 0x520   :  { %v2916_v36 = vpop.xlane.xlu1 %1072 }
 0x521   :  { %v1129_v30 = vperm.slane %v2916_v36, %v2601_v39 }
 0x528   :  { %v1076_v50 = vpop.xlane.xlu2 %1075  ;;  %v2920_v51 = vpop.xlane.xlu1 %1090 }
 0x529   :  { %v1130_v57 = vperm.slane %v1076_v50, %v2606_v41  ;;  %v2940_v18 = vpop.xlane.xlu0 %1096  ;;  %v1138_v31 = vperm.slane %v2920_v51, %v2601_v39 }
 0x52a   :  { %v1141_v32 = vperm.slane %v2940_v18, %v2601_v39 }
 0x52b   :  { %v1131_v11 = vsel %vm331_vm2, %v1130_v57, %v1129_v30 }
 0x52c   :  { %v1148_v25 = vsel %vm356_vm4, %v1131_v11, %v1147_v17 }
 0x52d   :  { %v1149_v0 = vsel %vm358_vm5, %v1134_v38, %v1148_v25 }
 0x52e   :  { %v1150_v44 = vsel %vm360_vm6, %v1137_v43, %v1149_v0 }
 0x530   :  { %v2932_v2 = vpop.xlane.xlu2 %1093  ;;  %v2945_v26 = vpop.xlane.xlu1 %1099 }
 0x531   :  { %v1139_v53 = vperm.slane %v2932_v2, %v2606_v41  ;;  %v1142_v9 = vperm.slane %v2945_v26, %v2606_v41 }
 0x533   :  { %v1140_v3 = vsel %vm331_vm2, %v1139_v53, %v1138_v31  ;;  %v1143_v57 = vsel %vm331_vm2, %v1142_v9, %v1141_v32 }
 0x534   :  { %v1151_v58 = vsel %vm362_vm7, %v1140_v3, %v1150_v44 }
 0x535   :  { %v1152_v11 = vsel %vm364_vm8, %v1143_v57, %v1151_v58 }
 0x538   :  { %v2963_v55 = vpop.xlane.xlu2 %1102 }
 0x539   :  { %v1144_v35 = vperm.slane %v2963_v55, %v2601_v39 }
 0x540   :  { %v2966_v30 = vpop.xlane.xlu0 %1105  ;;  %v596_v17 = vpop.permute.xlu2 %595 }
 0x541   :  { %v1145_v59 = vperm.slane %v2966_v30, %v2606_v41  ;;  %v600_v25 = vperm.slane %v596_v17, %v2601_v39 }
 0x543   :  { %v1146_v10 = vsel %vm331_vm2, %v1145_v59, %v1144_v35 }
 0x544   :  { %v1153_v14 = vsel %vm366_vm9, %v1146_v10, %v1152_v11 }
 0x545   :  { %v1155_v15 = vsel %vm369_vm10, %v1153_v14, -inf }
 0x546   :  { %1156 = vmax.xlane.f32.xlu1 %v1155_v15 }
 0x548   :  { %v2982_v38 = vpop.permute.xlu1 %634 }
 0x553   :  { %v599_v24 = vpop.permute.xlu0 %598 }
 0x554   :  { %v601_v53 = vperm.slane %v599_v24, %v2606_v41 }
 0x556   :  { %v602_v56 = vsel %vm331_vm2, %v601_v53, %v600_v25 }
 0x557   :  { %v603_v28 = vpack.c.b16 %v602_v56, %v602_v56 }
 0x559   :  { %2043 = vmatmul.msk.bf16.vlgmr.msra.gmra.mxu3 %vm369_vm10, %v603_v28 }
 0x5b9   :  { %v2984_v31 = vpop.xlane.xlu1 %1156 }
 0x5ba   :  { %v1160_v9 = vperm.slane %v2984_v31, 1  ;;  %v1159_v0 = vperm.slane %v2984_v31, 0  ;;  %v1161_v44 = vperm.slane %v2984_v31, 2  ;;  %v1163_v15 = vperm.slane %v2984_v31, 4 }
 0x5bb   :  { %v1164_v56 = vperm.slane %v2984_v31, 5 }
 0x5bc   :  { %v1177_v3 = vsub.f32 %v1067_v29, %v1160_v9  ;;  %v1175_v43 = vsub.f32 %v1061_v34, %v1159_v0  ;;  %v1176_v32 = vsub.f32 %v1064_v45, %v1159_v0  ;;  %v1180_v59 = vsub.f32 %v1076_v50, %v1161_v44 }
 0x5bd   :  { %v1178_v10 = vsub.f32 %v2912_v47, %v1160_v9  ;;  %v1179_v11 = vsub.f32 %v2916_v36, %v1161_v44  ;;  %v1162_v29 = vperm.slane %v2984_v31, 3  ;;  %v1183_v47 = vsub.f32 %v2914_v48, %v1163_v15 }
 0x5be   :  { %v1195_v57 = vmul.f32 1.442695, %v1177_v3  ;;  %v1191_v58 = vmul.f32 1.442695, %v1175_v43  ;;  %v1193_v35 = vmul.f32 1.442695, %v1176_v32  ;;  %v1185_v43 = vsub.f32 %v2920_v51, %v1164_v56 }
 0x5bf   :  { %v1201_v14 = vmul.f32 1.442695, %v1180_v59  ;;  %v1197_v17 = vmul.f32 1.442695, %v1178_v10  ;;  %v1199_v34 = vmul.f32 1.442695, %v1179_v11  ;;  %v1181_v36 = vsub.f32 %v2918_v49, %v1162_v29 }
 0x5c0   :  { %2274 = vpow2.f32 %v1195_v57  ;;  %v1182_v25 = vsub.f32 %v2910_v33, %v1162_v29  ;;  %v1207_v53 = vmul.f32 1.442695, %v1183_v47  ;;  %v1186_v49 = vsub.f32 %v2932_v2, %v1164_v56 }
 0x5c1   :  { %2276 = vpow2.f32 %v1191_v58  ;;  %v1203_v28 = vmul.f32 1.442695, %v1181_v36  ;;  %v1184_v33 = vsub.f32 %v2922_v52, %v1163_v15  ;;  %v1166_v44 = vperm.slane %v2984_v31, 7 }
 0x5c2   :  { %2278 = vpow2.f32 %v1193_v35  ;;  %v1205_v0 = vmul.f32 1.442695, %v1182_v25  ;;  %v1213_v32 = vmul.f32 1.442695, %v1186_v49  ;;  %v1165_v58 = vperm.slane %v2984_v31, 6 }
 0x5c3   :  { %2280 = vpow2.f32 %v1201_v14  ;;  %v1209_v57 = vmul.f32 1.442695, %v1184_v33  ;;  %v1211_v59 = vmul.f32 1.442695, %v1185_v43  ;;  %v1189_v51 = vsub.f32 %v2963_v55, %v1166_v44 }
 0x5c4   :  { %2282 = vpow2.f32 %v1197_v17  ;;  %v1187_v52 = vsub.f32 %v2940_v18, %v1165_v58  ;;  %v1188_v31 = vsub.f32 %v2945_v26, %v1165_v58  ;;  %v3046_v18 = vmul.f32 %v2700_v37, %v540_v22 }
 0x5c5   :  { %2284 = vpow2.f32 %v1199_v34  ;;  %v1219_v14 = vmul.f32 1.442695, %v1189_v51  ;;  %v1190_v26 = vsub.f32 %v2966_v30, %v1166_v44  ;;  %v542_v43 = vperm.slane %v2774_v16, 3 }
 0x5c6   :  { %v2993_v45 = vpop.eup %2274  ;;  %2286 = vpow2.f32 %v1207_v53  ;;  %v1215_v15 = vmul.f32 1.442695, %v1187_v52  ;;  %v1217_v29 = vmul.f32 1.442695, %v1188_v31  ;;  %v574_v36 = vpack.c.bf16 %v3046_v18, %v3046_v18 }
 0x5c7   :  { %v2995_v24 = vpop.eup %2276  ;;  %1246 = vperm.xlu1 %2201, %v2993_v45   ;;  %2288 = vpow2.f32 %v1203_v28  ;;  %v1221_v25 = vmul.f32 1.442695, %v1190_v26  ;;  %v541_v53 = vperm.slane %v2774_v16, 2  ;;  %v3079_v58 = vmul.f32 %v2724_v6, %v542_v43 }
 0x5c8   :  { %v2998_v50 = vpop.eup %2278  ;;  %1240 = vperm.xlu0 %2200, %v2995_v24   ;;  %2290 = vpow2.f32 %v1205_v0  ;;  %v629_v37 = vunpack.c.l.b16 %v574_v36  ;;  %v545_v52 = vperm.slane %v2774_v16, 6  ;;  %v546_v36 = vperm.slane %v2774_v16, 7 }
 0x5c9   :  { %1243 = vperm.xlu2 %2199, %v2998_v50   ;;  %v3006_v9 = vpop.eup %2280  ;;  %2292 = vpow2.f32 %v1213_v32  ;;  %v3062_v22 = vmul.f32 %v2695_v54, %v541_v53  ;;  %v3065_v30 = vmul.f32 %v2713_v42, %v541_v53  ;;  %v3076_v54 = vmul.f32 %v2708_v62, %v542_v43 }
 0x5ca   :  { %v3008_v3 = vpop.eup %2282  ;;  %2294 = vpow2.f32 %v1209_v57  ;;  %v2045_v49 = vunpack.i.l.s16 %v629_v37  ;;  %v3087_v62 = vmul.f32 %v2729_v8, %v545_v52  ;;  %v3090_v6 = vmul.f32 %v2736_v12, %v545_v52 }
 0x5cb   :  { %v3011_v48 = vpop.eup %2284  ;;  %2296 = vpow2.f32 %v1211_v59  ;;  %v576_v33 = vpack.c.bf16 %v3062_v22, %v3062_v22  ;;  %v575_v32 = vpack.c.bf16 %v3065_v30, %v3065_v30  ;;  %v578_v51 = vpack.c.bf16 %v3076_v54, %v3076_v54 }
 0x5cc   :  { %v3020_v35 = vpop.eup %2286  ;;  %2298 = vpow2.f32 %v1219_v14  ;;  %v577_v14 = vpack.c.bf16 %v3079_v58, %v3079_v58  ;;  %v583_v53 = vpack.c.bf16 %v3090_v6, %v3090_v6  ;;  %v3098_v8 = vmul.f32 %v2739_v13, %v546_v36 }
 0x5cd   :  { %v3022_v10 = vpop.eup %2288  ;;  %2300 = vpow2.f32 %v1215_v15  ;;  %v668_v57 = vunpack.c.l.b16 %v576_v33  ;;  %v667_v42 = vunpack.c.l.b16 %v575_v32  ;;  %v707_v15 = vunpack.c.l.b16 %v578_v51 }
 0x5ce   :  { %v3025_v2 = vpop.eup %2290  ;;  %2302 = vpow2.f32 %v1217_v29  ;;  %v706_v29 = vunpack.c.l.b16 %v577_v14  ;;  %3432 = vst [vmem:[#allocation15_spill] sm:$0xff] %v3098_v8  ;;  %v3101_v12 = vmul.f32 %v2721_v5, %v546_v36  ;;  %v586_v43 = vpack.c.bf16 %v3098_v8, %v3098_v8 }
 0x5cf   :  { %1255 = vperm.xlu1 %2201, %v3006_v9   ;;  %v3034_v17 = vpop.eup %2292  ;;  %2304 = vpow2.f32 %v1221_v25  ;;  %v2052_v59 = vunpack.i.l.s16 %v668_v57  ;;  %v2051_v31 = vunpack.i.l.s16 %v667_v42  ;;  %v2059_v26 = vunpack.i.l.s16 %v707_v15 }
 0x5d0   :  { %1249 = vperm.xlu0 %2200, %v3008_v3   ;;  %v3036_v34 = vpop.eup %2294  ;;  %v2058_v25 = vunpack.i.l.s16 %v706_v29  ;;  %3433 = vst [vmem:[#allocation16_spill] sm:$0xff] %v3101_v12  ;;  %v585_v16 = vpack.c.bf16 %v3101_v12, %v3101_v12  ;;  %v863_v57 = vunpack.c.l.b16 %v586_v43  ;;  %v2167_v29 = vld [vmem:[#allocation2 + $0x8] sm:$0xff]  ;;  %v2169_v43 = vld [vmem:[#allocation2 + $0x18] sm:$0xff] }
 0x5d1   :  { %1252 = vperm.xlu2 %2199, %v3011_v48   ;;  %v3039_v55 = vpop.eup %2296  ;;  %659 = vmatpush.bf16.msrb.mxu3 %v2167_v29 }
 0x5d2   :  { %v3052_v56 = vpop.eup %2298  ;;  %v862_v42 = vunpack.c.l.b16 %v585_v16 }
 0x5d3   :  { %v3054_v28 = vpop.eup %2300 }
 0x5d4   :  { %v3057_v0 = vpop.eup %2302  ;;  %v2086_v51 = vunpack.i.l.s16 %v862_v42 }
 0x5d5   :  { %v3072_v44 = vpop.eup %2304  ;;  %737 = vmatpush.bf16.msra.mxu3 %v2169_v43 }
 0x5d7   :  { %1264 = vperm.xlu1 %2201, %v3020_v35  }
 0x5d8   :  { %1258 = vperm.xlu0 %2200, %v3022_v10  }
 0x5d9   :  { %1261 = vperm.xlu2 %2199, %v3025_v2  }
 0x5dc   :  { %v3032_v11 = vpop.f32.mrf.mxu3 }
 0x5df   :  { %1273 = vperm.xlu1 %2201, %v3034_v17  }
 0x5e0   :  { %1267 = vperm.xlu0 %2200, %v3036_v34  }
 0x5e1   :  { %1270 = vperm.xlu2 %2199, %v3039_v55  }
 0x5e4   :  { %v624_v47 = vpop.f32.mrf.mxu3 }
 0x5e5   :  { %v584_v47 = vpack.c.bf16 %v3087_v62, %v3087_v62 }
 0x5e7   :  { %1282 = vperm.xlu1 %2201, %v3052_v56   ;;  %v824_v37 = vunpack.c.l.b16 %v584_v47 }
 0x5e8   :  { %1276 = vperm.xlu0 %2200, %v3054_v28  }
 0x5e9   :  { %1279 = vperm.xlu2 %2199, %v3057_v0   ;;  %v2080_v33 = vunpack.i.l.s16 %v824_v37 }
 0x5ef   :  { %637 = vperm.xlu1 %2201, %v2045_v49   ;;  %v823_v49 = vunpack.c.l.b16 %v583_v53 }
 0x5f0   :  { %1285 = vperm.xlu0 %2200, %v3072_v44  }
 0x5f1   :  { %v2079_v32 = vunpack.i.l.s16 %v823_v49 }
 0x5f7   :  { %676 = vperm.xlu1 %2201, %v2052_v59   ;;  %v2087_v59 = vunpack.i.l.s16 %v863_v57 }
 0x5f8   :  { %673 = vperm.xlu0 %2200, %v2051_v31  }
 0x5ff   :  { %715 = vperm.xlu1 %2201, %v2059_v26  }
 0x600   :  { %712 = vperm.xlu0 %2200, %v2058_v25   ;;  %v2168_v25 = vld [vmem:[#allocation2 + $0x10] sm:$0xff] }
 0x601   :  { %698 = vmatpush.bf16.msrb.mxu2 %v2168_v25 }
 0x607   :  { %832 = vperm.xlu1 %2201, %v2080_v33  }
 0x608   :  { %829 = vperm.xlu0 %2200, %v2079_v32  }
 0x60f   :  { %871 = vperm.xlu1 %2201, %v2087_v59  }
 0x610   :  { %868 = vperm.xlu0 %2200, %v2086_v51  }
 0x623   :  { %v1244_v13 = vpop.permute.xlu2 %1243 }
 0x624   :  { %v1288_v42 = vperm.slane %v1244_v13, %v2606_v41 }
 0x62b   :  { %v1253_v31 = vpop.permute.xlu2 %1252 }
 0x62c   :  { %v1293_v25 = vperm.slane %v1253_v31, %v2601_v39 }
 0x633   :  { %v1262_v26 = vpop.permute.xlu2 %1261 }
 0x634   :  { %v1297_v12 = vperm.slane %v1262_v26, %v2606_v41 }
 0x639   :  { %v1247_v52 = vpop.permute.xlu1 %1246 }
 0x63a   :  { %v1241_v5 = vpop.permute.xlu0 %1240  ;;  %v1290_v32 = vperm.slane %v1247_v52, %v2601_v39 }
 0x63b   :  { %v1271_v49 = vpop.permute.xlu2 %1270  ;;  %v1287_v16 = vperm.slane %v1241_v5, %v2601_v39 }
 0x63c   :  { %v1302_v26 = vperm.slane %v1271_v49, %v2601_v39 }
 0x63d   :  { %v1289_v52 = vsel %vm331_vm2, %v1288_v42, %v1287_v16 }
 0x641   :  { %v1256_v14 = vpop.permute.xlu1 %1255 }
 0x642   :  { %v1250_v15 = vpop.permute.xlu0 %1249  ;;  %v1294_v57 = vperm.slane %v1256_v14, %v2606_v41 }
 0x643   :  { %v1291_v33 = vperm.slane %v1250_v15, %v2606_v41  ;;  %v1280_v43 = vpop.permute.xlu2 %1279 }
 0x644   :  { %v1295_v5 = vsel %vm331_vm2, %v1294_v57, %v1293_v25  ;;  %v1306_v57 = vperm.slane %v1280_v43, %v2606_v41 }
 0x645   :  { %v1292_v59 = vsel %vm331_vm2, %v1291_v33, %v1290_v32  ;;  %v2172_v32 = vld [vmem:[#allocation2 + $0x30] sm:$0xff] }
 0x646   :  { %v1311_v14 = vsel %vm354_vm3, %v1292_v59, %v1289_v52  ;;  %854 = vmatpush.bf16.msra.mxu2 %v2172_v32 }
 0x647   :  { %v1312_v16 = vsel %vm356_vm4, %v1295_v5, %v1311_v14 }
 0x649   :  { %v1265_v47 = vpop.permute.xlu1 %1264 }
 0x64a   :  { %v1259_v36 = vpop.permute.xlu0 %1258  ;;  %v1299_v13 = vperm.slane %v1265_v47, %v2601_v39 }
 0x64b   :  { %v1296_v51 = vperm.slane %v1259_v36, %v2601_v39 }
 0x64d   :  { %v1298_v33 = vsel %vm331_vm2, %v1297_v12, %v1296_v51 }
 0x64e   :  { %v1313_v42 = vsel %vm358_vm5, %v1298_v33, %v1312_v16  ;;  %v2173_v33 = vld [vmem:[#allocation2 + $0x38] sm:$0xff] }
 0x651   :  { %v1274_v53 = vpop.permute.xlu1 %1273 }
 0x652   :  { %v1268_v37 = vpop.permute.xlu0 %1267  ;;  %v1303_v36 = vperm.slane %v1274_v53, %v2606_v41 }
 0x653   :  { %v1300_v8 = vperm.slane %v1268_v37, %v2606_v41 }
 0x654   :  { %v1304_v47 = vsel %vm331_vm2, %v1303_v36, %v1302_v26 }
 0x655   :  { %v1301_v31 = vsel %vm331_vm2, %v1300_v8, %v1299_v13  ;;  %v639_v8 = vperm.slane %v2982_v38, %v2601_v39 }
 0x656   :  { %v1314_v12 = vsel %vm360_vm6, %v1301_v31, %v1313_v42 }
 0x657   :  { %v1315_v5 = vsel %vm362_vm7, %v1304_v47, %v1314_v12 }
 0x659   :  { %v1283_v29 = vpop.permute.xlu1 %1282 }
 0x65a   :  { %v1277_v15 = vpop.permute.xlu0 %1276  ;;  %v1308_v25 = vperm.slane %v1283_v29, %v2601_v39 }
 0x65b   :  { %v1305_v37 = vperm.slane %v1277_v15, %v2601_v39 }
 0x65d   :  { %v1307_v53 = vsel %vm331_vm2, %v1306_v57, %v1305_v37 }
 0x65e   :  { %v1316_v43 = vsel %vm364_vm8, %v1307_v53, %v1315_v5 }
 0x661   :  { %v638_v59 = vpop.permute.xlu1 %637 }
 0x662   :  { %v640_v51 = vperm.slane %v638_v59, %v2606_v41  ;;  %v1286_v49 = vpop.permute.xlu0 %1285 }
 0x663   :  { %v1309_v15 = vperm.slane %v1286_v49, %v2606_v41 }
 0x664   :  { %v641_v52 = vsel %vm331_vm2, %v640_v51, %v639_v8 }
 0x665   :  { %v642_v14 = vpack.c.b16 %v641_v52, %v641_v52  ;;  %v1310_v13 = vsel %vm331_vm2, %v1309_v15, %v1308_v25 }
 0x666   :  { %v1317_v38 = vsel %vm366_vm9, %v1310_v13, %v1316_v43 }
 0x667   :  { %2050 = vmatmul.msk.bf16.vlgmr.msrb.gmra.mxu3 %vm369_vm10, %v642_v14  ;;  %v1319_v36 = vsel %vm369_vm10, %v1317_v38, 0.0 }
 0x668   :  { %1320 = vadd.xlane.f32.xlu2 %v1319_v36  ;;  %893 = vmatpush.bf16.msrb.mxu3 %v2173_v33 }
 0x669   :  { %v677_v29 = vpop.permute.xlu1 %676 }
 0x66a   :  { %v679_v31 = vperm.slane %v677_v29, %v2606_v41  ;;  %v674_v37 = vpop.permute.xlu0 %673 }
 0x66b   :  { %v678_v32 = vperm.slane %v674_v37, %v2601_v39 }
 0x66d   :  { %v680_v26 = vsel %vm331_vm2, %v679_v31, %v678_v32 }
 0x66e   :  { %v681_v16 = vpack.c.b16 %v680_v26, %v680_v26 }
 0x670   :  { %2057 = vmatmul.msk.bf16.vlgmr.msrb.gmra.mxu2 %vm369_vm10, %v681_v16 }
 0x671   :  { %v716_v57 = vpop.permute.xlu1 %715  ;;  %1434 = vmatpush.bf16.msrb.mxu2 %v2815_v61 }
 0x672   :  { %v718_v42 = vperm.slane %v716_v57, %v2606_v41  ;;  %v713_v47 = vpop.permute.xlu0 %712 }
 0x673   :  { %v717_v12 = vperm.slane %v713_v47, %v2601_v39 }
 0x675   :  { %v719_v59 = vsel %vm331_vm2, %v718_v42, %v717_v12 }
 0x676   :  { %v720_v8 = vpack.c.b16 %v719_v59, %v719_v59 }
 0x678   :  { %2064 = vmatmul.msk.bf16.vlgmr.msra.gmra.mxu3 %vm369_vm10, %v720_v8 }
 0x679   :  { %v833_v53 = vpop.permute.xlu1 %832  ;;  %1468 = vmatpush.bf16.msra.mxu3 %v2823_v1 }
 0x67a   :  { %v835_v51 = vperm.slane %v833_v53, %v2606_v41  ;;  %v830_v49 = vpop.permute.xlu0 %829 }
 0x67b   :  { %v834_v25 = vperm.slane %v830_v49, %v2601_v39 }
 0x67d   :  { %v836_v61 = vsel %vm331_vm2, %v835_v51, %v834_v25 }
 0x67e   :  { %v837_v15 = vpack.c.b16 %v836_v61, %v836_v61 }
 0x680   :  { %2085 = vmatmul.msk.bf16.vlgmr.msra.gmra.mxu2 %vm369_vm10, %v837_v15 }
 0x681   :  { %v872_v52 = vpop.permute.xlu1 %871  ;;  %1536 = vmatpush.bf16.msra.mxu2 %v2811_v60 }
 0x682   :  { %v874_v5 = vperm.slane %v872_v52, %v2606_v41  ;;  %v869_v14 = vpop.permute.xlu0 %868 }
 0x683   :  { %v873_v13 = vperm.slane %v869_v14, %v2601_v39 }
 0x685   :  { %v875_v1 = vsel %vm331_vm2, %v874_v5, %v873_v13 }
 0x686   :  { %v876_v43 = vpack.c.b16 %v875_v1, %v875_v1 }
 0x688   :  { %2092 = vmatmul.msk.bf16.vlgmr.msrb.gmra.mxu3 %vm369_vm10, %v876_v43 }
 0x689   :  { %1570 = vmatpush.bf16.msrb.mxu3 %v2819_v63 }
 0x6db   :  { %v1321_v38 = vpop.xlane.xlu2 %1320 }
 0x6dc   :  { %2306 = vrcp.f32 %v1321_v38 }
 0x6e2   :  { %v3164_v33 = vpop.eup %2306 }
 0x6e3   :  { %v1325_v36 = vperm.slane %v3164_v33, 1  ;;  %v1324_v60 = vperm.slane %v3164_v33, 0  ;;  %v1327_v29 = vperm.slane %v3164_v33, 3  ;;  %v1326_v31 = vperm.slane %v3164_v33, 2 }
 0x6e4   :  { %v1329_v8 = vperm.slane %v3164_v33, 5  ;;  %v1330_v43 = vperm.slane %v3164_v33, 6 }
 0x6e5   :  { %v3171_v37 = vmul.f32 %v3008_v3, %v1325_v36  ;;  %v3174_v32 = vmul.f32 %v2993_v45, %v1325_v36  ;;  %v3177_v63 = vmul.f32 %v2995_v24, %v1324_v60  ;;  %v3180_v26 = vmul.f32 %v3022_v10, %v1327_v29 }
 0x6e6   :  { %v3189_v3 = vmul.f32 %v2998_v50, %v1324_v60  ;;  %v3192_v45 = vmul.f32 %v3011_v48, %v1326_v31  ;;  %v1328_v48 = vperm.slane %v3164_v33, 4  ;;  %v3203_v52 = vmul.f32 %v3034_v17, %v1329_v8 }
 0x6e7   :  { %v1359_v16 = vpack.c.bf16 %v3171_v37, %v3171_v37  ;;  %v1358_v57 = vpack.c.bf16 %v3174_v32, %v3174_v32  ;;  %v1356_v42 = vpack.c.bf16 %v3177_v63, %v3177_v63  ;;  %v1362_v59 = vpack.c.bf16 %v3180_v26, %v3180_v26 }
 0x6e8   :  { %v1357_v25 = vpack.c.bf16 %v3189_v3, %v3189_v3  ;;  %v1360_v50 = vpack.c.bf16 %v3192_v45, %v3192_v45  ;;  %v3206_v5 = vmul.f32 %v3006_v9, %v1326_v31  ;;  %v3209_v13 = vmul.f32 %v3020_v35, %v1328_v48 }
 0x6e9   :  { %v1409_v24 = vunpack.c.l.b16 %v1359_v16  ;;  %v1408_v47 = vunpack.c.l.b16 %v1358_v57  ;;  %v1374_v12 = vunpack.c.l.b16 %v1356_v42  ;;  %v1476_v61 = vunpack.c.l.b16 %v1362_v59 }
 0x6ea   :  { %v661_v10 = vpop.f32.mrf.mxu3  ;;  %v1375_v15 = vunpack.c.l.b16 %v1357_v25  ;;  %v1442_v14 = vunpack.c.l.b16 %v1360_v50  ;;  %v1367_v16 = vpack.c.bf16 %v3203_v52, %v3203_v52  ;;  %v1361_v17 = vpack.c.bf16 %v3206_v5, %v3206_v5 }
 0x6eb   :  { %v2141_v53 = vunpack.i.l.s16 %v1409_v24  ;;  %v2140_v51 = vunpack.i.l.s16 %v1408_v47  ;;  %v2137_v49 = vunpack.i.l.s16 %v1374_v12  ;;  %v2146_v36 = vunpack.i.l.s16 %v1476_v61 }
 0x6ec   :  { %v2138_v60 = vunpack.i.l.s16 %v1375_v15  ;;  %v2143_v57 = vunpack.i.l.s16 %v1442_v14  ;;  %v1364_v9 = vpack.c.bf16 %v3209_v13, %v3209_v13  ;;  %v1545_v35 = vunpack.c.l.b16 %v1367_v16 }
 0x6ed   :  { %1417 = vperm.xlu2 %2199, %v2141_v53   ;;  %1414 = vperm.xlu0 %2200, %v2140_v51   ;;  %v1443_v31 = vunpack.c.l.b16 %v1361_v17  ;;  %v3219_v42 = vmul.f32 %v3054_v28, %v1330_v43  ;;  %v3222_v24 = vmul.f32 %v3036_v34, %v1328_v48  ;;  %v1720_v47 = vrot.slane %v661_v10, 7 }
 0x6ee   :  { %1380 = vperm.xlu1 %2201, %v2137_v49   ;;  %v1510_v12 = vunpack.c.l.b16 %v1364_v9  ;;  %v3225_v59 = vmul.f32 %v3025_v2, %v1327_v29  ;;  %v1331_v51 = vperm.slane %v3164_v33, 7  ;;  %v2153_v50 = vunpack.i.l.s16 %v1545_v35 }
 0x6ef   :  { %v2144_v61 = vunpack.i.l.s16 %v1443_v31  ;;  %v1368_v15 = vpack.c.bf16 %v3219_v42, %v3219_v42  ;;  %v1365_v28 = vpack.c.bf16 %v3222_v24, %v3222_v24  ;;  %v1721_v34 = vsel %vm354_vm3, %v1720_v47, %v3032_v11 }
 0x6f0   :  { %v2149_v48 = vunpack.i.l.s16 %v1510_v12  ;;  %v1363_v2 = vpack.c.bf16 %v3225_v59, %v3225_v59  ;;  %v1726_v33 = vrot.slane %v2829_v4, 4  ;;  %v1728_v14 = vrot.slane %v2831_v40, 3 }
 0x6f1   :  { %v1511_v11 = vunpack.c.l.b16 %v1365_v28  ;;  %v3246_v4 = vmul.f32 %v3052_v56, %v1331_v51  ;;  %v1353_v56 = vmul.f32 %v3057_v0, %v1330_v43 }
 0x6f2   :  { %v663_v1 = vpop.f32.mrf.mxu3  ;;  %v1477_v17 = vunpack.c.l.b16 %v1363_v2 }
 0x6f3   :  { %v700_v38 = vpop.f32.mrf.mxu2  ;;  %v2150_v40 = vunpack.i.l.s16 %v1511_v11  ;;  %v1370_v12 = vpack.c.bf16 %v3246_v4, %v3246_v4 }
 0x6f4   :  { %v1722_v53 = vrot.slane %v700_v38, 6  ;;  %v2147_v47 = vunpack.i.l.s16 %v1477_v17 }
 0x6f5   :  { %1482 = vperm.xlu2 %2199, %v2146_v36   ;;  %1383 = vperm.xlu0 %2200, %v2138_v60   ;;  %v1578_v36 = vunpack.c.l.b16 %v1368_v15  ;;  %v3242_v60 = vmul.f32 %v3039_v55, %v1329_v8  ;;  %v1355_v8 = vmul.f32 %v3072_v44, %v1331_v51 }
 0x6f6   :  { %1448 = vperm.xlu1 %2201, %v2143_v57   ;;  %v1723_v29 = vsel %vm356_vm4, %v1722_v53, %v1721_v34  ;;  %v1612_v53 = vunpack.c.l.b16 %v1370_v12 }
 0x6f7   :  { %v2155_v35 = vunpack.i.l.s16 %v1578_v36  ;;  %v1366_v31 = vpack.c.bf16 %v3242_v60, %v3242_v60  ;;  %v1371_v15 = vpack.c.bf16 %v1355_v8, %v1355_v8 }
 0x6f8   :  { %v2158_v34 = vunpack.i.l.s16 %v1612_v53 }
 0x6f9   :  { %v1544_v55 = vunpack.c.l.b16 %v1366_v31  ;;  %v1613_v51 = vunpack.c.l.b16 %v1371_v15 }
 0x6fb   :  { %v702_v49 = vpop.f32.mrf.mxu2  ;;  %v739_v25 = vpop.f32.mrf.mxu3 }
 0x6fc   :  { %v1724_v10 = vrot.slane %v739_v25, 5 }
 0x6fd   :  { %1553 = vperm.xlu2 %2199, %v2153_v50   ;;  %1451 = vperm.xlu0 %2200, %v2144_v61   ;;  %v2152_v61 = vunpack.i.l.s16 %v1544_v55 }
 0x6fe   :  { %v1725_v1 = vsel %vm358_vm5, %v1724_v10, %v1723_v29  ;;  %1516 = vperm.xlu1 %2201, %v2149_v48   ;;  %v1369_v10 = vpack.c.bf16 %v1353_v56, %v1353_v56 }
 0x6ff   :  { %v1727_v38 = vsel %vm360_vm6, %v1726_v33, %v1725_v1  ;;  %v2159_v33 = vunpack.i.l.s16 %v1613_v51 }
 0x700   :  { %v1729_v16 = vsel %vm362_vm7, %v1728_v14, %v1727_v38  ;;  %v1579_v0 = vunpack.c.l.b16 %v1369_v10 }
 0x702   :  { %v2156_v29 = vunpack.i.l.s16 %v1579_v0 }
 0x703   :  { %v741_v57 = vpop.f32.mrf.mxu3  ;;  %v856_v9 = vpop.f32.mrf.mxu2 }
 0x704   :  { %v1730_v49 = vrot.slane %v856_v9, 2 }
 0x705   :  { %1584 = vperm.xlu2 %2199, %v2155_v35   ;;  %1519 = vperm.xlu0 %2200, %v2150_v40  }
 0x706   :  { %1485 = vperm.xlu1 %2201, %v2147_v47   ;;  %v1731_v48 = vsel %vm364_vm8, %v1730_v49, %v1729_v16 }
 0x70b   :  { %v858_v25 = vpop.f32.mrf.mxu2  ;;  %v895_v50 = vpop.f32.mrf.mxu3 }
 0x70c   :  { %v1732_v28 = vrot.slane %v895_v50, 1 }
 0x70d   :  { %1788 = vperm.xlu2 %2199, %v2906_v46   ;;  %1550 = vperm.xlu0 %2200, %v2152_v61  }
 0x70e   :  { %v1733_v2 = vsel %vm366_vm9, %v1732_v28, %v1731_v48  ;;  %1618 = vperm.xlu1 %2201, %v2158_v34  }
 0x70f   :  { %v1735_v44 = vsel %vm188_vm1, %v1733_v2, 0.0 }
 0x710   :  { %1763 = vst [vmem:[#allocation7] sm:$0xff] %v1735_v44 }
 0x713   :  { %v897_v43 = vpop.f32.mrf.mxu3 }
 0x715   :  { %1797 = vperm.xlu2 %2199, %v3065_v30   ;;  %1621 = vperm.xlu0 %2200, %v2159_v33  }
 0x716   :  { %1587 = vperm.xlu1 %2201, %v2156_v29  }
 0x71d   :  { %1806 = vperm.xlu2 %2199, %v3076_v54   ;;  %1785 = vperm.xlu0 %2200, %v2901_v27  }
 0x71e   :  { %1791 = vperm.xlu1 %2201, %v2893_v7   ;;  %v3435_v7 = vld [vmem:[#allocation15_spill] sm:$0xff] }
 0x725   :  { %1815 = vperm.xlu2 %2199, %v2792_v21   ;;  %1794 = vperm.xlu0 %2200, %v3046_v18   ;;  %v3434_v21 = vld [vmem:[#allocation16_spill] sm:$0xff] }
 0x726   :  { %1800 = vperm.xlu1 %2201, %v3062_v22  }
 0x72d   :  { %1824 = vperm.xlu2 %2199, %v3087_v62   ;;  %1803 = vperm.xlu0 %2200, %v3079_v58   ;;  %v2308_v58 = vld [vmem:[#allocation5 + $0x38] sm:$0xff] }
 0x72e   :  { %1809 = vperm.xlu1 %2201, %v2782_v20  }
 0x735   :  { %1812 = vperm.xlu0 %2200, %v2779_v19   ;;  %1882 = vperm.xlu2 %2199, %v3177_v63  }
 0x736   :  { %1818 = vperm.xlu1 %2201, %v2789_v23  }
 0x73d   :  { %1821 = vperm.xlu0 %2200, %v3090_v6   ;;  %1891 = vperm.xlu2 %2199, %v3171_v37  }
 0x73e   :  { %1827 = vperm.xlu1 %2201, %v3434_v21  }
 0x745   :  { %1830 = vperm.xlu0 %2200, %v3435_v7   ;;  %1900 = vperm.xlu2 %2199, %v3180_v26  }
 0x746   :  { %1885 = vperm.xlu1 %2201, %v3189_v3   ;;  %v2309_v3 = vld [vmem:[#allocation5 + $0x30] sm:$0xff] }
 0x747   :  { %v1418_v19 = vpop.permute.xlu2 %1417 }
 0x748   :  { %v1420_v27 = vperm.slane %v1418_v19, %v2606_v41 }
 0x74d   :  { %1888 = vperm.xlu0 %2200, %v3174_v32   ;;  %1909 = vperm.xlu2 %2199, %v3222_v24  }
 0x74e   :  { %1894 = vperm.xlu1 %2201, %v3192_v45  }
 0x74f   :  { %v1483_v20 = vpop.permute.xlu2 %1482 }
 0x750   :  { %v1487_v11 = vperm.slane %v1483_v20, %v2601_v39 }
 0x755   :  { %1897 = vperm.xlu0 %2200, %v3206_v5   ;;  %1918 = vperm.xlu2 %2199, %v3219_v42  }
 0x756   :  { %1903 = vperm.xlu1 %2201, %v3225_v59  }
 0x757   :  { %v1554_v54 = vpop.permute.xlu2 %1553 }
 0x758   :  { %v1556_v40 = vperm.slane %v1554_v54, %v2606_v41 }
 0x75d   :  { %1906 = vperm.xlu0 %2200, %v3209_v13   ;;  %1927 = vperm.xlu2 %2199, %v1355_v8  }
 0x75e   :  { %1912 = vperm.xlu1 %2201, %v3242_v60  }
 0x75f   :  { %v1415_v23 = vpop.permute.xlu0 %1414  ;;  %v1585_v45 = vpop.permute.xlu2 %1584 }
 0x760   :  { %v1419_v46 = vperm.slane %v1415_v23, %v2601_v39  ;;  %v1381_v18 = vpop.permute.xlu1 %1380  ;;  %v1589_v50 = vperm.slane %v1585_v45, %v2601_v39 }
 0x761   :  { %v1385_v6 = vperm.slane %v1381_v18, %v2601_v39 }
 0x762   :  { %v1421_v22 = vsel %vm331_vm2, %v1420_v27, %v1419_v46 }
 0x763   :  { %v1422_v30 = vpack.c.b16 %v1421_v22, %v1421_v22 }
 0x765   :  { %2142 = vmatmul.msk.bf16.vlgmr.msrb.gmra.mxu2 %vm369_vm10, %v1422_v30  ;;  %1915 = vperm.xlu0 %2200, %v3203_v52  }
 0x766   :  { %1921 = vperm.xlu1 %2201, %v1353_v56   ;;  %1638 = vmatpush.bf16.msrb.mxu2 %v2308_v58 }
 0x767   :  { %v1384_v62 = vpop.permute.xlu0 %1383  ;;  %v1789_v60 = vpop.permute.xlu2 %1788 }
 0x768   :  { %v1386_v37 = vperm.slane %v1384_v62, %v2606_v41  ;;  %v1449_v32 = vpop.permute.xlu1 %1448  ;;  %v1833_v22 = vperm.slane %v1789_v60, %v2606_v41 }
 0x769   :  { %v1453_v5 = vperm.slane %v1449_v32, %v2601_v39 }
 0x76a   :  { %v1387_v63 = vsel %vm331_vm2, %v1386_v37, %v1385_v6 }
 0x76b   :  { %v1388_v26 = vpack.c.b16 %v1387_v63, %v1387_v63 }
 0x76d   :  { %1924 = vperm.xlu0 %2200, %v3246_v4   ;;  %2139 = vmatmul.msk.bf16.vlgmr.msra.gmra.mxu0 %vm369_vm10, %v1388_v26 }
 0x76e   :  { %1604 = vmatpush.bf16.msra.mxu0 %v2309_v3 }
 0x76f   :  { %v1452_v52 = vpop.permute.xlu0 %1451  ;;  %v1798_v55 = vpop.permute.xlu2 %1797 }
 0x770   :  { %v1454_v13 = vperm.slane %v1452_v52, %v2606_v41  ;;  %v1517_v42 = vpop.permute.xlu1 %1516  ;;  %v1838_v58 = vperm.slane %v1798_v55, %v2601_v39 }
 0x771   :  { %v1521_v1 = vperm.slane %v1517_v42, %v2601_v39 }
 0x772   :  { %v1455_v24 = vsel %vm331_vm2, %v1454_v13, %v1453_v5 }
 0x773   :  { %v1456_v59 = vpack.c.b16 %v1455_v24, %v1455_v24 }
 0x775   :  { %2145 = vmatmul.msk.bf16.vlgmr.msra.gmra.mxu3 %vm369_vm10, %v1456_v59 }
 0x777   :  { %v1520_v14 = vpop.permute.xlu0 %1519  ;;  %v1807_v48 = vpop.permute.xlu2 %1806 }
 0x778   :  { %v1522_v38 = vperm.slane %v1520_v14, %v2606_v41  ;;  %v1486_v36 = vpop.permute.xlu1 %1485  ;;  %v1842_v37 = vperm.slane %v1807_v48, %v2606_v41 }
 0x779   :  { %v1488_v16 = vperm.slane %v1486_v36, %v2606_v41 }
 0x77a   :  { %v1523_v17 = vsel %vm331_vm2, %v1522_v38, %v1521_v1 }
 0x77b   :  { %v1524_v4 = vpack.c.b16 %v1523_v17, %v1523_v17  ;;  %v1489_v57 = vsel %vm331_vm2, %v1488_v16, %v1487_v11 }
 0x77c   :  { %v1490_v9 = vpack.c.b16 %v1489_v57, %v1489_v57 }
 0x77d   :  { %2151 = vmatmul.msk.bf16.vlgmr.msra.gmra.mxu2 %vm369_vm10, %v1524_v4 }
 0x77e   :  { %2148 = vmatmul.msk.bf16.vlgmr.msrb.gmra.mxu0 %vm369_vm10, %v1490_v9 }
 0x77f   :  { %v1551_v35 = vpop.permute.xlu0 %1550  ;;  %v1816_v51 = vpop.permute.xlu2 %1815 }
 0x780   :  { %v1555_v31 = vperm.slane %v1551_v35, %v2601_v39  ;;  %v1619_v47 = vpop.permute.xlu1 %1618  ;;  %v1847_v24 = vperm.slane %v1816_v51, %v2601_v39 }
 0x781   :  { %v1623_v56 = vperm.slane %v1619_v47, %v2601_v39 }
 0x782   :  { %v1557_v12 = vsel %vm331_vm2, %v1556_v40, %v1555_v31 }
 0x783   :  { %v1558_v8 = vpack.c.b16 %v1557_v12, %v1557_v12 }
 0x785   :  { %2154 = vmatmul.msk.bf16.vlgmr.msrb.gmra.mxu3 %vm369_vm10, %v1558_v8 }
 0x787   :  { %v1622_v53 = vpop.permute.xlu0 %1621  ;;  %v1825_v21 = vpop.permute.xlu2 %1824 }
 0x788   :  { %v1624_v49 = vperm.slane %v1622_v53, %v2606_v41  ;;  %v1588_v25 = vpop.permute.xlu1 %1587  ;;  %v1851_v14 = vperm.slane %v1825_v21, %v2606_v41 }
 0x789   :  { %v1590_v61 = vperm.slane %v1588_v25, %v2606_v41 }
 0x78a   :  { %v1625_v15 = vsel %vm331_vm2, %v1624_v49, %v1623_v56 }
 0x78b   :  { %v1626_v28 = vpack.c.b16 %v1625_v15, %v1625_v15  ;;  %v1591_v34 = vsel %vm331_vm2, %v1590_v61, %v1589_v50 }
 0x78c   :  { %v1592_v10 = vpack.c.b16 %v1591_v34, %v1591_v34 }
 0x78d   :  { %2160 = vmatmul.msk.bf16.vlgmr.msrb.gmra.mxu2 %vm369_vm10, %v1626_v28 }
 0x78e   :  { %2157 = vmatmul.msk.bf16.vlgmr.msra.gmra.mxu0 %vm369_vm10, %v1592_v10 }
 0x78f   :  { %v1786_v2 = vpop.permute.xlu0 %1785  ;;  %v1883_v23 = vpop.permute.xlu2 %1882 }
 0x790   :  { %v1792_v44 = vpop.permute.xlu1 %1791  ;;  %v1832_v27 = vperm.slane %v1786_v2, %v2601_v39  ;;  %v1929_v48 = vperm.slane %v1883_v23, %v2601_v39 }
 0x791   :  { %v1835_v46 = vperm.slane %v1792_v44, %v2601_v39 }
 0x792   :  { %v1834_v32 = vsel %vm331_vm2, %v1833_v22, %v1832_v27 }
 0x797   :  { %v1795_v0 = vpop.permute.xlu0 %1794  ;;  %v1892_v1 = vpop.permute.xlu2 %1891 }
 0x798   :  { %v1801_v43 = vpop.permute.xlu1 %1800  ;;  %v1836_v20 = vperm.slane %v1795_v0, %v2606_v41  ;;  %v1933_v28 = vperm.slane %v1892_v1, %v2606_v41 }
 0x799   :  { %v1839_v18 = vperm.slane %v1801_v43, %v2606_v41 }
 0x79a   :  { %v1837_v30 = vsel %vm331_vm2, %v1836_v20, %v1835_v46 }
 0x79b   :  { %v1856_v26 = vsel %vm354_vm3, %v1837_v30, %v1834_v32  ;;  %v1840_v3 = vsel %vm331_vm2, %v1839_v18, %v1838_v58 }
 0x79c   :  { %v1857_v59 = vsel %vm356_vm4, %v1840_v3, %v1856_v26 }
 0x79f   :  { %v1804_v33 = vpop.permute.xlu0 %1803  ;;  %v1901_v47 = vpop.permute.xlu2 %1900 }
 0x7a0   :  { %v1810_v29 = vpop.permute.xlu1 %1809  ;;  %v1841_v54 = vperm.slane %v1804_v33, %v2601_v39  ;;  %v1938_v33 = vperm.slane %v1901_v47, %v2601_v39 }
 0x7a1   :  { %v1844_v45 = vperm.slane %v1810_v29, %v2601_v39 }
 0x7a2   :  { %v1843_v52 = vsel %vm331_vm2, %v1842_v37, %v1841_v54 }
 0x7a3   :  { %v1858_v38 = vsel %vm358_vm5, %v1843_v52, %v1857_v59 }
 0x7a7   :  { %v1813_v7 = vpop.permute.xlu0 %1812  ;;  %v1910_v56 = vpop.permute.xlu2 %1909 }
 0x7a8   :  { %v1819_v19 = vpop.permute.xlu1 %1818  ;;  %v1845_v62 = vperm.slane %v1813_v7, %v2606_v41 }
 0x7a9   :  { %v1848_v5 = vperm.slane %v1819_v19, %v2606_v41  ;;  %v1942_v19 = vperm.slane %v1910_v56, %v2606_v41 }
 0x7aa   :  { %v1846_v13 = vsel %vm331_vm2, %v1845_v62, %v1844_v45 }
 0x7ab   :  { %v1859_v36 = vsel %vm360_vm6, %v1846_v13, %v1858_v38  ;;  %v1849_v11 = vsel %vm331_vm2, %v1848_v5, %v1847_v24 }
 0x7ac   :  { %v1860_v9 = vsel %vm362_vm7, %v1849_v11, %v1859_v36 }
 0x7af   :  { %v1822_v6 = vpop.permute.xlu0 %1821  ;;  %v1919_v61 = vpop.permute.xlu2 %1918 }
 0x7b0   :  { %v1828_v63 = vpop.permute.xlu1 %1827  ;;  %v1850_v42 = vperm.slane %v1822_v6, %v2601_v39  ;;  %v1947_v54 = vperm.slane %v1919_v61, %v2601_v39 }
 0x7b1   :  { %v1853_v17 = vperm.slane %v1828_v63, %v2601_v39 }
 0x7b2   :  { %v1852_v60 = vsel %vm331_vm2, %v1851_v14, %v1850_v42  ;;  %v2189_v14 = vld [vmem:[%s3425_s10] sm:$0xff] }
 0x7b3   :  { %v1861_v35 = vsel %vm364_vm8, %v1852_v60, %v1860_v9  ;;  %1705 = vmatpush.bf16.msra.mxu3 %v2189_v14 }
 0x7b7   :  { %v1831_v16 = vpop.permute.xlu0 %1830  ;;  %v1928_v58 = vpop.permute.xlu2 %1927 }
 0x7b8   :  { %v1854_v4 = vperm.slane %v1831_v16, %v2606_v41  ;;  %v1886_v57 = vpop.permute.xlu1 %1885  ;;  %v1951_v26 = vperm.slane %v1928_v58, %v2606_v41 }
 0x7b9   :  { %v1930_v34 = vperm.slane %v1886_v57, %v2606_v41 }
 0x7ba   :  { %v1855_v40 = vsel %vm331_vm2, %v1854_v4, %v1853_v17 }
 0x7bb   :  { %v1862_v31 = vsel %vm366_vm9, %v1855_v40, %v1861_v35  ;;  %v1931_v29 = vsel %vm331_vm2, %v1930_v34, %v1929_v48 }
 0x7bc   :  { %1864 = vst.msk [vmem:[#allocation8] sm:$0xff] %vm369_vm10, %v1862_v31 }
 0x7bd   :  { %1983 = dma.vmem_to_hbm [thread:$0]  %s1979_s27, 128, %s1981_s25, [#allocation9]  }
 0x7bf   :  { %v1889_v12 = vpop.permute.xlu0 %1888 }
 0x7c0   :  { %v1895_v55 = vpop.permute.xlu1 %1894  ;;  %v1932_v50 = vperm.slane %v1889_v12, %v2601_v39 }
 0x7c1   :  { %v1935_v10 = vperm.slane %v1895_v55, %v2601_v39 }
 0x7c2   :  { %v1934_v2 = vsel %vm331_vm2, %v1933_v28, %v1932_v50 }
 0x7c3   :  { %v1953_v20 = vsel %vm354_vm3, %v1934_v2, %v1931_v29 }
 0x7c7   :  { %v1898_v8 = vpop.permute.xlu0 %1897 }
 0x7c8   :  { %v1904_v53 = vpop.permute.xlu1 %1903  ;;  %v1936_v15 = vperm.slane %v1898_v8, %v2606_v41 }
 0x7c9   :  { %v1939_v44 = vperm.slane %v1904_v53, %v2606_v41 }
 0x7ca   :  { %v1937_v51 = vsel %vm331_vm2, %v1936_v15, %v1935_v10 }
 0x7cb   :  { %v1954_v23 = vsel %vm356_vm4, %v1937_v51, %v1953_v20  ;;  %v1940_v27 = vsel %vm331_vm2, %v1939_v44, %v1938_v33 }
 0x7cc   :  { %v1955_v62 = vsel %vm358_vm5, %v1940_v27, %v1954_v23 }
 0x7cf   :  { %v1907_v49 = vpop.permute.xlu0 %1906 }
 0x7d0   :  { %v1913_v25 = vpop.permute.xlu1 %1912  ;;  %v1941_v0 = vperm.slane %v1907_v49, %v2601_v39 }
 0x7d1   :  { %v1944_v46 = vperm.slane %v1913_v25, %v2601_v39 }
 0x7d2   :  { %v1943_v18 = vsel %vm331_vm2, %v1942_v19, %v1941_v0 }
 0x7d3   :  { %v1956_v6 = vsel %vm360_vm6, %v1943_v18, %v1955_v62 }
 0x7d7   :  { %v1916_v43 = vpop.permute.xlu0 %1915 }
 0x7d8   :  { %v1945_v21 = vperm.slane %v1916_v43, %v2606_v41  ;;  %v1922_v7 = vpop.permute.xlu1 %1921 }
 0x7d9   :  { %v1948_v22 = vperm.slane %v1922_v7, %v2606_v41 }
 0x7da   :  { %v1946_v30 = vsel %vm331_vm2, %v1945_v21, %v1944_v46 }
 0x7db   :  { %v1957_v37 = vsel %vm362_vm7, %v1946_v30, %v1956_v6  ;;  %v1949_v32 = vsel %vm331_vm2, %v1948_v22, %v1947_v54 }
 0x7dc   :  { %v1958_v45 = vsel %vm364_vm8, %v1949_v32, %v1957_v37 }
 0x7df   :  { %v1925_v63 = vpop.permute.xlu0 %1924 }
 0x7e0   :  { %v1950_v3 = vperm.slane %v1925_v63, %v2601_v39 }
 0x7e2   :  { %v1952_v52 = vsel %vm331_vm2, %v1951_v26, %v1950_v3 }
 0x7e3   :  { %v1959_v5 = vsel %vm366_vm9, %v1952_v52, %v1958_v45 }
 0x7e4   :  { %1961 = vst.msk [vmem:[#allocation10] sm:$0xff] %vm369_vm10, %v1959_v5  ;;  %v2205_v5 = vld [vmem:[%s3426_s11] ss:$0 sm:$0xff] }
 0x7e5   :  { %1994 = dma.vmem_to_hbm [thread:$0]  %s1990_s15, 128, %s1992_s29, [#allocation9]  }
 0x7e8   :  { %v1436_v13 = vpop.f32.mrf.mxu2 }
 0x7e9   :  { %v1645_v39 = vpack.c.bf16 %v1436_v13, %v1436_v13  ;;  %v1745_v17 = vrot.slane %v1436_v13, 7 }
 0x7ea   :  { %v1402_v42 = vpop.f32.mrf.mxu0 }
 0x7eb   :  { %v1667_v16 = vunpack.c.l.b16 %v1645_v39  ;;  %v1644_v4 = vpack.c.bf16 %v1402_v42, %v1402_v42  ;;  %v1746_v12 = vsel %vm354_vm3, %v1745_v17, %v1402_v42 }
 0x7ed   :  { %v1674_v31 = vrot.slane %v1667_v16, 7  ;;  %v1666_v47 = vunpack.c.l.b16 %v1644_v4 }
 0x7ef   :  { %v1675_v48 = vsel %vm354_vm3, %v1674_v31, %v1666_v47 }
 0x7f0   :  { %v1438_v24 = vpop.f32.mrf.mxu2 }
 0x7f2   :  { %v1404_v59 = vpop.f32.mrf.mxu0 }
 0x7f8   :  { %v1470_v41 = vpop.f32.mrf.mxu3 }
 0x7f9   :  { %v1646_v11 = vpack.c.bf16 %v1470_v41, %v1470_v41  ;;  %v1747_v35 = vrot.slane %v1470_v41, 6 }
 0x7fb   :  { %v1504_v1 = vpop.f32.mrf.mxu0  ;;  %v1668_v57 = vunpack.c.l.b16 %v1646_v11  ;;  %v1748_v50 = vsel %vm356_vm4, %v1747_v35, %v1746_v12 }
 0x7fc   :  { %v1647_v9 = vpack.c.bf16 %v1504_v1, %v1504_v1  ;;  %v1749_v49 = vrot.slane %v1504_v1, 5 }
 0x7fd   :  { %v1676_v53 = vrot.slane %v1668_v57, 6 }
 0x7fe   :  { %v1669_v56 = vunpack.c.l.b16 %v1647_v9  ;;  %v1750_v0 = vsel %vm358_vm5, %v1749_v49, %v1748_v50 }
 0x7ff   :  { %v1677_v44 = vsel %vm356_vm4, %v1676_v53, %v1675_v48 }
 0x800   :  { %v1472_v38 = vpop.f32.mrf.mxu3  ;;  %v1538_v36 = vpop.f32.mrf.mxu2  ;;  %v1678_v51 = vrot.slane %v1669_v56, 5 }
 0x801   :  { %v1648_v40 = vpack.c.bf16 %v1538_v36, %v1538_v36  ;;  %v1751_v15 = vrot.slane %v1538_v36, 4 }
 0x802   :  { %v1679_v27 = vsel %vm358_vm5, %v1678_v51, %v1677_v44 }
 0x803   :  { %v1506_v60 = vpop.f32.mrf.mxu0  ;;  %v1670_v61 = vunpack.c.l.b16 %v1648_v40  ;;  %v1752_v33 = vsel %vm360_vm6, %v1751_v15, %v1750_v0 }
 0x805   :  { %v1680_v43 = vrot.slane %v1670_v61, 4 }
 0x807   :  { %v1681_v22 = vsel %vm360_vm6, %v1680_v43, %v1679_v27 }
 0x808   :  { %v1540_v55 = vpop.f32.mrf.mxu2  ;;  %v1572_v8 = vpop.f32.mrf.mxu3 }
 0x809   :  { %v1649_v25 = vpack.c.bf16 %v1572_v8, %v1572_v8  ;;  %v1753_v34 = vrot.slane %v1572_v8, 3 }
 0x80b   :  { %v1671_v28 = vunpack.c.l.b16 %v1649_v25  ;;  %v1606_v10 = vpop.f32.mrf.mxu0  ;;  %v1754_v19 = vsel %vm362_vm7, %v1753_v34, %v1752_v33 }
 0x80c   :  { %v1650_v2 = vpack.c.bf16 %v1606_v10, %v1606_v10  ;;  %v1755_v21 = vrot.slane %v1606_v10, 2 }
 0x80d   :  { %v1682_v7 = vrot.slane %v1671_v28, 3 }
 0x80e   :  { %v1672_v29 = vunpack.c.l.b16 %v1650_v2  ;;  %v1756_v54 = vsel %vm364_vm8, %v1755_v21, %v1754_v19 }
 0x80f   :  { %v1683_v58 = vsel %vm362_vm7, %v1682_v7, %v1681_v22 }
 0x810   :  { %v1574_v20 = vpop.f32.mrf.mxu3  ;;  %v1640_v23 = vpop.f32.mrf.mxu2  ;;  %v1684_v30 = vrot.slane %v1672_v29, 2 }
 0x811   :  { %v1651_v46 = vpack.c.bf16 %v1640_v23, %v1640_v23  ;;  %v1757_v18 = vrot.slane %v1640_v23, 1 }
 0x812   :  { %v1685_v26 = vsel %vm364_vm8, %v1684_v30, %v1683_v58 }
 0x813   :  { %v1673_v62 = vunpack.c.l.b16 %v1651_v46  ;;  %v1758_v6 = vsel %vm366_vm9, %v1757_v18, %v1756_v54  ;;  %v1608_v37 = vpop.f32.mrf.mxu0 }
 0x814   :  { %v1760_v32 = vsel %vm369_vm10, %v1758_v6, 0.0 }
 0x815   :  { %v1686_v63 = vrot.slane %v1673_v62, 1  ;;  %1765 = vst [vmem:[#allocation7 + $0x10] sm:$0xff] %v1760_v32 }
 0x817   :  { %v1687_v3 = vsel %vm366_vm9, %v1686_v63, %v1685_v26 }
 0x818   :  { %v1688_v45 = vpack.c.b16 %v1687_v3, %v1687_v3  ;;  %v1642_v52 = vpop.f32.mrf.mxu2 }
 0x81a   :  { %2165 = vmatmul.msk.bf16.vlgmr.msra.gmra.mxu3 %vm369_vm10, %v1688_v45 }
 0x89d   :  { %v1707_v13 = vpop.f32.mrf.mxu3 }
 0x89e   :  { %v1708_v42 = vadd.f32 %v2205_v5, %v1707_v13 }
 0x8a0   :  { %v1711_v24 = vmax.f32 %v1708_v42, 0.0 }
 0x8a2   :  { %v1736_v59 = vsel %vm188_vm1, %v1711_v24, 0.0 }
 0x8a3   :  { %1764 = vst [vmem:[#allocation7 + $0x8] sm:$0xff] %v1736_v59 }
 0x8a4   :  { %1972 = dma.vmem_to_hbm [thread:$0]  %s1968_s18, 640, %s1970_s21, [#allocation4]  }
 0x8a5   :  { %v1709_v14 = vpop.f32.mrf.mxu3 }
 0x8a6   :  { %2434 = dma.done.wait [#allocation4], 640  }
 0x8a7   :  { %2435 = vsyncadd [#allocation4], 4294966656 }
 0x8a8   :  { %2436 = dma.done.wait [#allocation9], 256  }
 0x8a9   :  { %2437 = vsyncadd [#allocation9], 4294967040 }
 0x8aa   :  { %2007 = vsyncpa [#allocation3], 1 }
 0x8ab   :  { %2008 = vsyncpa [#allocation6], 1 }
 0x8ac   :  { %2009 = vsyncpa [#allocation4], 1 }
 0x8ad   :  { %2010 = vsyncpa [#allocation9], 1 }

</bundles_post_ra>
